<compile_context>
chip_gen: v5e
topology: v5e:2x2
jax: 0.10.0
libtpu: 0.0.40
codegen_flags: <defaults>
</compile_context>

<pallas_src>
import jax
import jax.numpy as jnp
from jax.experimental import pallas as pl
from jax.experimental.pallas import tpu as pltpu

# Static mic-pair indices from ipd_index='1,0;2,0;3,0;4,0;5,0;6,0'
INDEX_L = (1, 2, 3, 4, 5, 6)
INDEX_R = (0, 0, 0, 0, 0, 0)
NUM_PAIRS = len(INDEX_L)


def _make_ipd_kernel(t_true, t_pad):
    """Build the kernel with the (static) true / padded time extents baked in."""
    # Input is zero-padded along T, so padded lanes contribute exactly
    # cos(0)=1 to the yr-sum and sin(0)=0 to the yi-sum.  A scalar correction
    # on the (F_TILE, 1) sums replaces a per-element lane mask.
    corr = float(t_pad - t_true)

    def ipd_kernel(p_ref, out_ref):
        # p_ref  : (C, F_TILE, T_pad)  phase
        # out_ref: (M, F_TILE, T_pad)  mean-normalized cos-IPD
        p0 = p_ref[0]  # reference channel, shared by all pairs (hoisted)

        # M = 6 is static -> Python loop unrolls at trace time.
        for m in range(NUM_PAIRS):
            l, r = INDEX_L[m], INDEX_R[m]
            pr = p0 if r == 0 else p_ref[r]
            pd = p_ref[l] - pr                      # (F_TILE, T_pad)
            yr = jnp.cos(pd)
            yi = jnp.sin(pd)
            # Sums (not means): the normalization below is scale-invariant in
            # (yrs, yis), so the 1/T factor is unnecessary.
            yrs = jnp.sum(yr, axis=-1, keepdims=True) - corr   # (F_TILE, 1)
            yis = jnp.sum(yi, axis=-1, keepdims=True)           # (F_TILE, 1)
            # version-2 mean normalization followed by cos:
            #   cos(pd - atan2(yis, yrs)) == yr*cos(a) + yi*sin(a)
            # with cos(a)=yrs*rsqrt(yrs^2+yis^2), sin(a)=yis*rsqrt(...).
            # All transcendental / guard work stays on the (F_TILE, 1) tile;
            # per-element work is pure VPU mul/add.  torch's atan2(0,0)==0
            # => cos(a)=1, sin(a)=0.
            sq = yrs * yrs + yis * yis              # (F_TILE, 1)
            inv = jax.lax.rsqrt(sq)                 # (F_TILE, 1) EUP only
            sr = jnp.where(sq > 0.0, yrs * inv, 1.0)  # cos(mean angle)
            si = jnp.where(sq > 0.0, yis * inv, 0.0)  # sin(mean angle)
            out_ref[m] = yr * sr + yi * si

    return ipd_kernel


def _choose_f_tile(C, M, F, t_pad, itemsize, budget_bytes=8 << 20, cap=1024):
    """F padded to a multiple of 8; tile = largest multiple-of-8 divisor of the
    padded F that fits the (double-buffered) VMEM budget.  Returns (tile, f_pad)."""
    f8 = -(-F // 8) * 8
    per_row = (C + M) * t_pad * itemsize * 2      # double-buffered in + out
    max_rows = max(8, (budget_bytes // per_row) // 8 * 8)
    max_rows = min(max_rows, cap, f8)
    blocks = f8 // 8
    tile = 8
    for d in range(1, blocks + 1):
        if blocks % d == 0 and d * 8 <= max_rows:
            tile = d * 8
    return int(tile), int(f8)


def ipd_feature(p):
    """p: (N, C, F, T) or (C, F, T) float32 phase  ->  (N, M*F, T) cos-IPD."""
    if p.ndim == 3:
        p = p[None]
    assert p.ndim == 4, "expect N x C x F x T"
    N, C, F, T = p.shape
    assert C > max(INDEX_L), "need at least 7 channels for default ipd_index"
    M = NUM_PAIRS

    # Lane-dense T and sublane-friendly F tiling.
    t_pad = -(-T // 128) * 128
    f_tile, f_pad = _choose_f_tile(C, M, F, t_pad, p.dtype.itemsize)

    if (t_pad != T) or (f_pad != F):
        p = jnp.pad(p, ((0, 0), (0, 0), (0, f_pad - F), (0, t_pad - T)))

    grid = (N, f_pad // f_tile)

    cost = pl.CostEstimate(
        flops=int(6 * N * M * f_pad * t_pad),
        transcendentals=int(2 * N * M * f_pad * t_pad),
        bytes_accessed=int(N * (C + M) * f_pad * t_pad * p.dtype.itemsize),
    )

    out = pl.pallas_call(
        _make_ipd_kernel(T, t_pad),
        out_shape=jax.ShapeDtypeStruct((N, M, f_pad, t_pad), p.dtype),
        grid_spec=pltpu.PrefetchScalarGridSpec(
            num_scalar_prefetch=0,
            grid=grid,
            in_specs=[
                pl.BlockSpec((None, C, f_tile, t_pad), lambda n, f: (n, 0, f, 0)),
            ],
            out_specs=pl.BlockSpec((None, M, f_tile, t_pad), lambda n, f: (n, 0, f, 0)),
        ),
        compiler_params=pltpu.CompilerParams(
            dimension_semantics=("parallel", "parallel"),
        ),
        cost_estimate=cost,
    )(p)

    # Drop padding and collapse (M, F) -> M*F, matching torch's ipd.view(N, -1, T).
    out = out[:, :, :F, :T]
    return out.reshape(N, M * F, T)


def ipd_reference(p):
    """Pure-JAX reference mirroring the torch forward (version 2, cos only)."""
    if p.ndim == 3:
        p = p[None]
    pd = p[:, list(INDEX_L)] - p[:, list(INDEX_R)]          # (N, M, F, T)
    yr = jnp.cos(pd)
    yi = jnp.sin(pd)
    yrm = yr.mean(-1, keepdims=True)
    yim = yi.mean(-1, keepdims=True)
    pd = pd - jnp.arctan2(yim, yrm)
    ipd = jnp.cos(pd)
    N, M, F, T = ipd.shape
    return ipd.reshape(N, M * F, T)


if __name__ == "__main__":
    key = jax.random.PRNGKey(0)
    ok = True

    # Case 1: lane-dense T, F already a multiple of 8.
    N, C, F, T = 2, 7, 16, 128
    k1, k2 = jax.random.split(key)
    p1 = jax.random.uniform(k1, (N, C, F, T), dtype=jnp.float32,
                            minval=-jnp.pi, maxval=jnp.pi)
    out1 = jax.block_until_ready(ipd_feature(p1))
    ref1 = ipd_reference(p1)
    ok &= out1.shape == (N, NUM_PAIRS * F, T)
    ok &= bool(jnp.allclose(out1, ref1, rtol=2e-5, atol=2e-5))

    # Case 2: ragged F / T exercises the padding + sum-correction path.
    N2, C2, F2, T2 = 1, 7, 10, 100
    p2 = jax.random.uniform(k2, (N2, C2, F2, T2), dtype=jnp.float32,
                            minval=-jnp.pi, maxval=jnp.pi)
    out2 = jax.block_until_ready(ipd_feature(p2))
    ref2 = ipd_reference(p2)
    ok &= out2.shape == (N2, NUM_PAIRS * F2, T2)
    ok &= bool(jnp.allclose(out2, ref2, rtol=2e-5, atol=2e-5))

    assert ok, (
        float(jnp.max(jnp.abs(out1 - ref1))),
        float(jnp.max(jnp.abs(out2 - ref2))),
    )
    print("KERNEL_OK")
</pallas_src>

<mosaic_0001>
module attributes {stable_mosaic.version = 11 : i64} {
  func.func @ipd_kernel(%arg0: i32, %arg1: i32, %arg2: memref<1x7x16x128xf32, #tpu.memory_space<vmem>>, %arg3: memref<1x6x16x128xf32, #tpu.memory_space<vmem>>) attributes {dimension_semantics = [#tpu.dimension_semantics<parallel>, #tpu.dimension_semantics<parallel>], iteration_bounds = array<i64: 2, 1>, scalar_prefetch = 0 : i64, scratch_operands = 0 : i64, tpu.core_type = #tpu.core_type<tc>, window_params = [{transform_indices = @transform_0, window_bounds = array<i64: 1, 7, 16, 128>}, {transform_indices = @transform_1, window_bounds = array<i64: 1, 6, 16, 128>}]} {
    %c0 = arith.constant 0 : index
    %c0_0 = arith.constant 0 : index
    %c0_1 = arith.constant 0 : index
    %c0_2 = arith.constant 0 : index
    %0 = vector.load %arg2[%c0, %c0_0, %c0_1, %c0_2] : memref<1x7x16x128xf32, #tpu.memory_space<vmem>>, vector<1x1x16x128xf32>
    %1 = vector.shape_cast %0 : vector<1x1x16x128xf32> to vector<16x128xf32>
    %c0_3 = arith.constant 0 : index
    %c1 = arith.constant 1 : index
    %c0_4 = arith.constant 0 : index
    %c0_5 = arith.constant 0 : index
    %2 = vector.load %arg2[%c0_3, %c1, %c0_4, %c0_5] : memref<1x7x16x128xf32, #tpu.memory_space<vmem>>, vector<1x1x16x128xf32>
    %3 = vector.shape_cast %2 : vector<1x1x16x128xf32> to vector<16x128xf32>
    %4 = arith.subf %3, %1 : vector<16x128xf32>
    %5 = math.cos %4 : vector<16x128xf32>
    %6 = math.sin %4 : vector<16x128xf32>
    %cst = arith.constant dense<0.000000e+00> : vector<16xf32>
    %7 = vector.multi_reduction <add>, %5, %cst [1] : vector<16x128xf32> to vector<16xf32>
    %8 = vector.shape_cast %7 : vector<16xf32> to vector<16x1xf32>
    %cst_6 = arith.constant 0.000000e+00 : f32
    %9 = vector.broadcast %cst_6 : f32 to vector<16x1xf32>
    %10 = arith.subf %8, %9 : vector<16x1xf32>
    %cst_7 = arith.constant dense<0.000000e+00> : vector<16xf32>
    %11 = vector.multi_reduction <add>, %6, %cst_7 [1] : vector<16x128xf32> to vector<16xf32>
    %12 = vector.shape_cast %11 : vector<16xf32> to vector<16x1xf32>
    %13 = arith.mulf %10, %10 : vector<16x1xf32>
    %14 = arith.mulf %12, %12 : vector<16x1xf32>
    %15 = arith.addf %13, %14 : vector<16x1xf32>
    %16 = math.rsqrt %15 : vector<16x1xf32>
    %cst_8 = arith.constant 0.000000e+00 : f32
    %17 = vector.broadcast %cst_8 : f32 to vector<16x1xf32>
    %18 = arith.cmpf ogt, %15, %17 : vector<16x1xf32>
    %19 = arith.mulf %10, %16 : vector<16x1xf32>
    %cst_9 = arith.constant 1.000000e+00 : f32
    %20 = vector.broadcast %cst_9 : f32 to vector<16x1xf32>
    %21 = arith.select %18, %19, %20 : vector<16x1xi1>, vector<16x1xf32>
    %cst_10 = arith.constant 0.000000e+00 : f32
    %22 = vector.broadcast %cst_10 : f32 to vector<16x1xf32>
    %23 = arith.cmpf ogt, %15, %22 : vector<16x1xf32>
    %24 = arith.mulf %12, %16 : vector<16x1xf32>
    %cst_11 = arith.constant 0.000000e+00 : f32
    %25 = vector.broadcast %cst_11 : f32 to vector<16x1xf32>
    %26 = arith.select %23, %24, %25 : vector<16x1xi1>, vector<16x1xf32>
    %27 = vector.broadcast %21 : vector<16x1xf32> to vector<16x128xf32>
    %28 = arith.mulf %5, %27 : vector<16x128xf32>
    %29 = vector.broadcast %26 : vector<16x1xf32> to vector<16x128xf32>
    %30 = arith.mulf %6, %29 : vector<16x128xf32>
    %31 = arith.addf %28, %30 : vector<16x128xf32>
    %c0_12 = arith.constant 0 : index
    %c0_13 = arith.constant 0 : index
    %c0_14 = arith.constant 0 : index
    %c0_15 = arith.constant 0 : index
    %32 = vector.load %arg3[%c0_12, %c0_13, %c0_14, %c0_15] : memref<1x6x16x128xf32, #tpu.memory_space<vmem>>, vector<1x1x16x128xf32>
    %33 = vector.shape_cast %32 : vector<1x1x16x128xf32> to vector<16x128xf32>
    %34 = vector.shape_cast %31 : vector<16x128xf32> to vector<1x1x16x128xf32>
    tpu.vector_store %arg3[%c0_12, %c0_13, %c0_14, %c0_15], %34 {strides = array<i32>} : memref<1x6x16x128xf32, #tpu.memory_space<vmem>>, vector<1x1x16x128xf32>,
    %c0_16 = arith.constant 0 : index
    %c2 = arith.constant 2 : index
    %c0_17 = arith.constant 0 : index
    %c0_18 = arith.constant 0 : index
    %35 = vector.load %arg2[%c0_16, %c2, %c0_17, %c0_18] : memref<1x7x16x128xf32, #tpu.memory_space<vmem>>, vector<1x1x16x128xf32>
    %36 = vector.shape_cast %35 : vector<1x1x16x128xf32> to vector<16x128xf32>
    %37 = arith.subf %36, %1 : vector<16x128xf32>
    %38 = math.cos %37 : vector<16x128xf32>
    %39 = math.sin %37 : vector<16x128xf32>
    %cst_19 = arith.constant dense<0.000000e+00> : vector<16xf32>
    %40 = vector.multi_reduction <add>, %38, %cst_19 [1] : vector<16x128xf32> to vector<16xf32>
    %41 = vector.shape_cast %40 : vector<16xf32> to vector<16x1xf32>
    %cst_20 = arith.constant 0.000000e+00 : f32
    %42 = vector.broadcast %cst_20 : f32 to vector<16x1xf32>
    %43 = arith.subf %41, %42 : vector<16x1xf32>
    %cst_21 = arith.constant dense<0.000000e+00> : vector<16xf32>
    %44 = vector.multi_reduction <add>, %39, %cst_21 [1] : vector<16x128xf32> to vector<16xf32>
    %45 = vector.shape_cast %44 : vector<16xf32> to vector<16x1xf32>
    %46 = arith.mulf %43, %43 : vector<16x1xf32>
    %47 = arith.mulf %45, %45 : vector<16x1xf32>
    %48 = arith.addf %46, %47 : vector<16x1xf32>
    %49 = math.rsqrt %48 : vector<16x1xf32>
    %cst_22 = arith.constant 0.000000e+00 : f32
    %50 = vector.broadcast %cst_22 : f32 to vector<16x1xf32>
    %51 = arith.cmpf ogt, %48, %50 : vector<16x1xf32>
    %52 = arith.mulf %43, %49 : vector<16x1xf32>
    %cst_23 = arith.constant 1.000000e+00 : f32
    %53 = vector.broadcast %cst_23 : f32 to vector<16x1xf32>
    %54 = arith.select %51, %52, %53 : vector<16x1xi1>, vector<16x1xf32>
    %cst_24 = arith.constant 0.000000e+00 : f32
    %55 = vector.broadcast %cst_24 : f32 to vector<16x1xf32>
    %56 = arith.cmpf ogt, %48, %55 : vector<16x1xf32>
    %57 = arith.mulf %45, %49 : vector<16x1xf32>
    %cst_25 = arith.constant 0.000000e+00 : f32
    %58 = vector.broadcast %cst_25 : f32 to vector<16x1xf32>
    %59 = arith.select %56, %57, %58 : vector<16x1xi1>, vector<16x1xf32>
    %60 = vector.broadcast %54 : vector<16x1xf32> to vector<16x128xf32>
    %61 = arith.mulf %38, %60 : vector<16x128xf32>
    %62 = vector.broadcast %59 : vector<16x1xf32> to vector<16x128xf32>
    %63 = arith.mulf %39, %62 : vector<16x128xf32>
    %64 = arith.addf %61, %63 : vector<16x128xf32>
    %c0_26 = arith.constant 0 : index
    %c1_27 = arith.constant 1 : index
    %c0_28 = arith.constant 0 : index
    %c0_29 = arith.constant 0 : index
    %65 = vector.load %arg3[%c0_26, %c1_27, %c0_28, %c0_29] : memref<1x6x16x128xf32, #tpu.memory_space<vmem>>, vector<1x1x16x128xf32>
    %66 = vector.shape_cast %65 : vector<1x1x16x128xf32> to vector<16x128xf32>
    %67 = vector.shape_cast %64 : vector<16x128xf32> to vector<1x1x16x128xf32>
    tpu.vector_store %arg3[%c0_26, %c1_27, %c0_28, %c0_29], %67 {strides = array<i32>} : memref<1x6x16x128xf32, #tpu.memory_space<vmem>>, vector<1x1x16x128xf32>,
    %c0_30 = arith.constant 0 : index
    %c3 = arith.constant 3 : index
    %c0_31 = arith.constant 0 : index
    %c0_32 = arith.constant 0 : index
    %68 = vector.load %arg2[%c0_30, %c3, %c0_31, %c0_32] : memref<1x7x16x128xf32, #tpu.memory_space<vmem>>, vector<1x1x16x128xf32>
    %69 = vector.shape_cast %68 : vector<1x1x16x128xf32> to vector<16x128xf32>
    %70 = arith.subf %69, %1 : vector<16x128xf32>
    %71 = math.cos %70 : vector<16x128xf32>
    %72 = math.sin %70 : vector<16x128xf32>
    %cst_33 = arith.constant dense<0.000000e+00> : vector<16xf32>
    %73 = vector.multi_reduction <add>, %71, %cst_33 [1] : vector<16x128xf32> to vector<16xf32>
    %74 = vector.shape_cast %73 : vector<16xf32> to vector<16x1xf32>
    %cst_34 = arith.constant 0.000000e+00 : f32
    %75 = vector.broadcast %cst_34 : f32 to vector<16x1xf32>
    %76 = arith.subf %74, %75 : vector<16x1xf32>
    %cst_35 = arith.constant dense<0.000000e+00> : vector<16xf32>
    %77 = vector.multi_reduction <add>, %72, %cst_35 [1] : vector<16x128xf32> to vector<16xf32>
    %78 = vector.shape_cast %77 : vector<16xf32> to vector<16x1xf32>
    %79 = arith.mulf %76, %76 : vector<16x1xf32>
    %80 = arith.mulf %78, %78 : vector<16x1xf32>
    %81 = arith.addf %79, %80 : vector<16x1xf32>
    %82 = math.rsqrt %81 : vector<16x1xf32>
    %cst_36 = arith.constant 0.000000e+00 : f32
    %83 = vector.broadcast %cst_36 : f32 to vector<16x1xf32>
    %84 = arith.cmpf ogt, %81, %83 : vector<16x1xf32>
    %85 = arith.mulf %76, %82 : vector<16x1xf32>
    %cst_37 = arith.constant 1.000000e+00 : f32
    %86 = vector.broadcast %cst_37 : f32 to vector<16x1xf32>
    %87 = arith.select %84, %85, %86 : vector<16x1xi1>, vector<16x1xf32>
    %cst_38 = arith.constant 0.000000e+00 : f32
    %88 = vector.broadcast %cst_38 : f32 to vector<16x1xf32>
    %89 = arith.cmpf ogt, %81, %88 : vector<16x1xf32>
    %90 = arith.mulf %78, %82 : vector<16x1xf32>
    %cst_39 = arith.constant 0.000000e+00 : f32
    %91 = vector.broadcast %cst_39 : f32 to vector<16x1xf32>
    %92 = arith.select %89, %90, %91 : vector<16x1xi1>, vector<16x1xf32>
    %93 = vector.broadcast %87 : vector<16x1xf32> to vector<16x128xf32>
    %94 = arith.mulf %71, %93 : vector<16x128xf32>
    %95 = vector.broadcast %92 : vector<16x1xf32> to vector<16x128xf32>
    %96 = arith.mulf %72, %95 : vector<16x128xf32>
    %97 = arith.addf %94, %96 : vector<16x128xf32>
    %c0_40 = arith.constant 0 : index
    %c2_41 = arith.constant 2 : index
    %c0_42 = arith.constant 0 : index
    %c0_43 = arith.constant 0 : index
    %98 = vector.load %arg3[%c0_40, %c2_41, %c0_42, %c0_43] : memref<1x6x16x128xf32, #tpu.memory_space<vmem>>, vector<1x1x16x128xf32>
    %99 = vector.shape_cast %98 : vector<1x1x16x128xf32> to vector<16x128xf32>
    %100 = vector.shape_cast %97 : vector<16x128xf32> to vector<1x1x16x128xf32>
    tpu.vector_store %arg3[%c0_40, %c2_41, %c0_42, %c0_43], %100 {strides = array<i32>} : memref<1x6x16x128xf32, #tpu.memory_space<vmem>>, vector<1x1x16x128xf32>,
    %c0_44 = arith.constant 0 : index
    %c4 = arith.constant 4 : index
    %c0_45 = arith.constant 0 : index
    %c0_46 = arith.constant 0 : index
    %101 = vector.load %arg2[%c0_44, %c4, %c0_45, %c0_46] : memref<1x7x16x128xf32, #tpu.memory_space<vmem>>, vector<1x1x16x128xf32>
    %102 = vector.shape_cast %101 : vector<1x1x16x128xf32> to vector<16x128xf32>
    %103 = arith.subf %102, %1 : vector<16x128xf32>
    %104 = math.cos %103 : vector<16x128xf32>
    %105 = math.sin %103 : vector<16x128xf32>
    %cst_47 = arith.constant dense<0.000000e+00> : vector<16xf32>
    %106 = vector.multi_reduction <add>, %104, %cst_47 [1] : vector<16x128xf32> to vector<16xf32>
    %107 = vector.shape_cast %106 : vector<16xf32> to vector<16x1xf32>
    %cst_48 = arith.constant 0.000000e+00 : f32
    %108 = vector.broadcast %cst_48 : f32 to vector<16x1xf32>
    %109 = arith.subf %107, %108 : vector<16x1xf32>
    %cst_49 = arith.constant dense<0.000000e+00> : vector<16xf32>
    %110 = vector.multi_reduction <add>, %105, %cst_49 [1] : vector<16x128xf32> to vector<16xf32>
    %111 = vector.shape_cast %110 : vector<16xf32> to vector<16x1xf32>
    %112 = arith.mulf %109, %109 : vector<16x1xf32>
    %113 = arith.mulf %111, %111 : vector<16x1xf32>
    %114 = arith.addf %112, %113 : vector<16x1xf32>
    %115 = math.rsqrt %114 : vector<16x1xf32>
    %cst_50 = arith.constant 0.000000e+00 : f32
    %116 = vector.broadcast %cst_50 : f32 to vector<16x1xf32>
    %117 = arith.cmpf ogt, %114, %116 : vector<16x1xf32>
    %118 = arith.mulf %109, %115 : vector<16x1xf32>
    %cst_51 = arith.constant 1.000000e+00 : f32
    %119 = vector.broadcast %cst_51 : f32 to vector<16x1xf32>
    %120 = arith.select %117, %118, %119 : vector<16x1xi1>, vector<16x1xf32>
    %cst_52 = arith.constant 0.000000e+00 : f32
    %121 = vector.broadcast %cst_52 : f32 to vector<16x1xf32>
    %122 = arith.cmpf ogt, %114, %121 : vector<16x1xf32>
    %123 = arith.mulf %111, %115 : vector<16x1xf32>
    %cst_53 = arith.constant 0.000000e+00 : f32
    %124 = vector.broadcast %cst_53 : f32 to vector<16x1xf32>
    %125 = arith.select %122, %123, %124 : vector<16x1xi1>, vector<16x1xf32>
    %126 = vector.broadcast %120 : vector<16x1xf32> to vector<16x128xf32>
    %127 = arith.mulf %104, %126 : vector<16x128xf32>
    %128 = vector.broadcast %125 : vector<16x1xf32> to vector<16x128xf32>
    %129 = arith.mulf %105, %128 : vector<16x128xf32>
    %130 = arith.addf %127, %129 : vector<16x128xf32>
    %c0_54 = arith.constant 0 : index
    %c3_55 = arith.constant 3 : index
    %c0_56 = arith.constant 0 : index
    %c0_57 = arith.constant 0 : index
    %131 = vector.load %arg3[%c0_54, %c3_55, %c0_56, %c0_57] : memref<1x6x16x128xf32, #tpu.memory_space<vmem>>, vector<1x1x16x128xf32>
    %132 = vector.shape_cast %131 : vector<1x1x16x128xf32> to vector<16x128xf32>
    %133 = vector.shape_cast %130 : vector<16x128xf32> to vector<1x1x16x128xf32>
    tpu.vector_store %arg3[%c0_54, %c3_55, %c0_56, %c0_57], %133 {strides = array<i32>} : memref<1x6x16x128xf32, #tpu.memory_space<vmem>>, vector<1x1x16x128xf32>,
    %c0_58 = arith.constant 0 : index
    %c5 = arith.constant 5 : index
    %c0_59 = arith.constant 0 : index
    %c0_60 = arith.constant 0 : index
    %134 = vector.load %arg2[%c0_58, %c5, %c0_59, %c0_60] : memref<1x7x16x128xf32, #tpu.memory_space<vmem>>, vector<1x1x16x128xf32>
    %135 = vector.shape_cast %134 : vector<1x1x16x128xf32> to vector<16x128xf32>
    %136 = arith.subf %135, %1 : vector<16x128xf32>
    %137 = math.cos %136 : vector<16x128xf32>
    %138 = math.sin %136 : vector<16x128xf32>
    %cst_61 = arith.constant dense<0.000000e+00> : vector<16xf32>
    %139 = vector.multi_reduction <add>, %137, %cst_61 [1] : vector<16x128xf32> to vector<16xf32>
    %140 = vector.shape_cast %139 : vector<16xf32> to vector<16x1xf32>
    %cst_62 = arith.constant 0.000000e+00 : f32
    %141 = vector.broadcast %cst_62 : f32 to vector<16x1xf32>
    %142 = arith.subf %140, %141 : vector<16x1xf32>
    %cst_63 = arith.constant dense<0.000000e+00> : vector<16xf32>
    %143 = vector.multi_reduction <add>, %138, %cst_63 [1] : vector<16x128xf32> to vector<16xf32>
    %144 = vector.shape_cast %143 : vector<16xf32> to vector<16x1xf32>
    %145 = arith.mulf %142, %142 : vector<16x1xf32>
    %146 = arith.mulf %144, %144 : vector<16x1xf32>
    %147 = arith.addf %145, %146 : vector<16x1xf32>
    %148 = math.rsqrt %147 : vector<16x1xf32>
    %cst_64 = arith.constant 0.000000e+00 : f32
    %149 = vector.broadcast %cst_64 : f32 to vector<16x1xf32>
    %150 = arith.cmpf ogt, %147, %149 : vector<16x1xf32>
    %151 = arith.mulf %142, %148 : vector<16x1xf32>
    %cst_65 = arith.constant 1.000000e+00 : f32
    %152 = vector.broadcast %cst_65 : f32 to vector<16x1xf32>
    %153 = arith.select %150, %151, %152 : vector<16x1xi1>, vector<16x1xf32>
    %cst_66 = arith.constant 0.000000e+00 : f32
    %154 = vector.broadcast %cst_66 : f32 to vector<16x1xf32>
    %155 = arith.cmpf ogt, %147, %154 : vector<16x1xf32>
    %156 = arith.mulf %144, %148 : vector<16x1xf32>
    %cst_67 = arith.constant 0.000000e+00 : f32
    %157 = vector.broadcast %cst_67 : f32 to vector<16x1xf32>
    %158 = arith.select %155, %156, %157 : vector<16x1xi1>, vector<16x1xf32>
    %159 = vector.broadcast %153 : vector<16x1xf32> to vector<16x128xf32>
    %160 = arith.mulf %137, %159 : vector<16x128xf32>
    %161 = vector.broadcast %158 : vector<16x1xf32> to vector<16x128xf32>
    %162 = arith.mulf %138, %161 : vector<16x128xf32>
    %163 = arith.addf %160, %162 : vector<16x128xf32>
    %c0_68 = arith.constant 0 : index
    %c4_69 = arith.constant 4 : index
    %c0_70 = arith.constant 0 : index
    %c0_71 = arith.constant 0 : index
    %164 = vector.load %arg3[%c0_68, %c4_69, %c0_70, %c0_71] : memref<1x6x16x128xf32, #tpu.memory_space<vmem>>, vector<1x1x16x128xf32>
    %165 = vector.shape_cast %164 : vector<1x1x16x128xf32> to vector<16x128xf32>
    %166 = vector.shape_cast %163 : vector<16x128xf32> to vector<1x1x16x128xf32>
    tpu.vector_store %arg3[%c0_68, %c4_69, %c0_70, %c0_71], %166 {strides = array<i32>} : memref<1x6x16x128xf32, #tpu.memory_space<vmem>>, vector<1x1x16x128xf32>,
    %c0_72 = arith.constant 0 : index
    %c6 = arith.constant 6 : index
    %c0_73 = arith.constant 0 : index
    %c0_74 = arith.constant 0 : index
    %167 = vector.load %arg2[%c0_72, %c6, %c0_73, %c0_74] : memref<1x7x16x128xf32, #tpu.memory_space<vmem>>, vector<1x1x16x128xf32>
    %168 = vector.shape_cast %167 : vector<1x1x16x128xf32> to vector<16x128xf32>
    %169 = arith.subf %168, %1 : vector<16x128xf32>
    %170 = math.cos %169 : vector<16x128xf32>
    %171 = math.sin %169 : vector<16x128xf32>
    %cst_75 = arith.constant dense<0.000000e+00> : vector<16xf32>
    %172 = vector.multi_reduction <add>, %170, %cst_75 [1] : vector<16x128xf32> to vector<16xf32>
    %173 = vector.shape_cast %172 : vector<16xf32> to vector<16x1xf32>
    %cst_76 = arith.constant 0.000000e+00 : f32
    %174 = vector.broadcast %cst_76 : f32 to vector<16x1xf32>
    %175 = arith.subf %173, %174 : vector<16x1xf32>
    %cst_77 = arith.constant dense<0.000000e+00> : vector<16xf32>
    %176 = vector.multi_reduction <add>, %171, %cst_77 [1] : vector<16x128xf32> to vector<16xf32>
    %177 = vector.shape_cast %176 : vector<16xf32> to vector<16x1xf32>
    %178 = arith.mulf %175, %175 : vector<16x1xf32>
    %179 = arith.mulf %177, %177 : vector<16x1xf32>
    %180 = arith.addf %178, %179 : vector<16x1xf32>
    %181 = math.rsqrt %180 : vector<16x1xf32>
    %cst_78 = arith.constant 0.000000e+00 : f32
    %182 = vector.broadcast %cst_78 : f32 to vector<16x1xf32>
    %183 = arith.cmpf ogt, %180, %182 : vector<16x1xf32>
    %184 = arith.mulf %175, %181 : vector<16x1xf32>
    %cst_79 = arith.constant 1.000000e+00 : f32
    %185 = vector.broadcast %cst_79 : f32 to vector<16x1xf32>
    %186 = arith.select %183, %184, %185 : vector<16x1xi1>, vector<16x1xf32>
    %cst_80 = arith.constant 0.000000e+00 : f32
    %187 = vector.broadcast %cst_80 : f32 to vector<16x1xf32>
    %188 = arith.cmpf ogt, %180, %187 : vector<16x1xf32>
    %189 = arith.mulf %177, %181 : vector<16x1xf32>
    %cst_81 = arith.constant 0.000000e+00 : f32
    %190 = vector.broadcast %cst_81 : f32 to vector<16x1xf32>
    %191 = arith.select %188, %189, %190 : vector<16x1xi1>, vector<16x1xf32>
    %192 = vector.broadcast %186 : vector<16x1xf32> to vector<16x128xf32>
    %193 = arith.mulf %170, %192 : vector<16x128xf32>
    %194 = vector.broadcast %191 : vector<16x1xf32> to vector<16x128xf32>
    %195 = arith.mulf %171, %194 : vector<16x128xf32>
    %196 = arith.addf %193, %195 : vector<16x128xf32>
    %c0_82 = arith.constant 0 : index
    %c5_83 = arith.constant 5 : index
    %c0_84 = arith.constant 0 : index
    %c0_85 = arith.constant 0 : index
    %197 = vector.load %arg3[%c0_82, %c5_83, %c0_84, %c0_85] : memref<1x6x16x128xf32, #tpu.memory_space<vmem>>, vector<1x1x16x128xf32>
    %198 = vector.shape_cast %197 : vector<1x1x16x128xf32> to vector<16x128xf32>
    %199 = vector.shape_cast %196 : vector<16x128xf32> to vector<1x1x16x128xf32>
    tpu.vector_store %arg3[%c0_82, %c5_83, %c0_84, %c0_85], %199 {strides = array<i32>} : memref<1x6x16x128xf32, #tpu.memory_space<vmem>>, vector<1x1x16x128xf32>,
    return
  }
  func.func @transform_0(%arg0: i32, %arg1: i32) -> (i32, i32, i32, i32) {
    %c0_i32 = arith.constant 0 : i32
    %c0_i32_0 = arith.constant 0 : i32
    %c0_i32_1 = arith.constant 0 : i32
    return %arg0, %c0_i32, %arg1, %c0_i32_0 : i32, i32, i32, i32
  }
  func.func @transform_1(%arg0: i32, %arg1: i32) -> (i32, i32, i32, i32) {
    %c0_i32 = arith.constant 0 : i32
    %c0_i32_0 = arith.constant 0 : i32
    %c0_i32_1 = arith.constant 0 : i32
    return %arg0, %c0_i32, %arg1, %c0_i32_0 : i32, i32, i32, i32
  }
}

</mosaic_0001>

<bundles_post_ra>
// kernel: tpu_custom_call.1
= control target key start
LH: loop header
LB: loop body
LE: loop exit
PB: predicated region body
PF: predicated region fallthrough
CT: control target
= control target key end

     0   :  { %6 = vsyncpa [#allocation3], 0  ;;  %s6678_s0 = inlined_call_operand.hbm [shape: f32[2,7,16,128], index: 0, kind: input, shape index: {}]   ;;  %s6679_s1 = inlined_call_operand.hbm [shape: f32[2,6,16,128], index: 1, kind: output, shape index: {}]  }
   0x1   :  { %8 = vsyncpa [#allocation3 + $0x1], 0 }
   0x2   :  { %9 = vsyncpa [#allocation4], 0 }
   0x3   :  { %11 = vsyncpa [#allocation4 + $0x1], 0  ;;  %s4663_s6 = smov 0   ;;  %s4665_s7 = smov 0  }
   0x4   :  { %s4667_s8 = smov 0   ;;  %s4669_s9 = smov 0  }
   0x5   :  { %s4671_s10 = smov 0   ;;  %s4673_s11 = smov 0  }
   0x6 LB: > { %s4319_s12 = sadd.s32 4294967295, %s4640_s11   ;;  %s4320_s13 = sadd.s32 4294967294, %s4640_s11   ;;  %s4640_s11 = sphi %s4673_s11, %s17_s11   ;;  %s4636_s10 = sphi %s4671_s10, %s6751_s10   ;;  %s4632_s9 = sphi %s4669_s9, %s6750_s9   ;;  %s4628_s8 = sphi %s4667_s8, %s6749_s8   ;;  %s4624_s7 = sphi %s4665_s7, %s6748_s7   ;;  %s4620_s6 = sphi %s4663_s6, %s6747_s6  }
   0x7   : > { %s29_s14 = sadd.s32 1, %s4636_s10  ;;  %s38_s15 = sadd.s32 1, %s4628_s8 }
   0x8   : > { %p31_p0 = scmp.ge.s32.totalorder %s29_s14, 2  ;;  %p45_p1 = scmp.ne.s32.totalorder %s4628_s8, %s4624_s7 }
   0x9   : > { %p46_p2 = scmp.eq.s32.totalorder %s4640_s11, 0  ;;  %p51_p3 = scmp.ne.s32.totalorder %s4624_s7, %s4620_s6 }
   0xa   : > { %s6753_s14 = smov (%p31_p0, %s29_s14), 0  ;;  %p52_p5 = scmp.eq.s32.totalorder %s4319_s12, 0 }
   0xb   : > { %p4704_p4 = por %p46_p2, %p45_p1  ;;  %s33_s17 = ssub.s32 %s4636_s10, %s6753_s14 }
   0xc   : > { %p77_p6 = scmp.eq.s32.totalorder %s4319_s12, 1  ;;  %p36_p7 = scmp.eq.s32.totalorder %s33_s17, 0 }
   0xd   : > { %p4710_p8 = por %p52_p5, %p51_p3  ;;  %p83_p10 = scmp.eq.s32.totalorder %s4320_s13, 1 }
   0xe   : > { %p4714_p9 = por %p77_p6, %p45_p1  ;;  %p4322_p12 = scmp.ge.s32.totalorder %s4640_s11, 2 }
   0xf   : > { %s4719_s20 = scalar_select %p36_p7, %s4628_s8, %s38_s15  }
  0x10   : > { %p4721_p11 = por %p83_p10, %p51_p3  ;;  %p4439_p13 = scmp.lt.s32.totalorder %s4640_s11, 2 }
  0x11   : > { %s103_s22 = sand.u32 1, %s4628_s8   ;;  %s4423_s24 = smul.u32 112, %s4636_s10 }
  0x12   : > { %s4422_s23 = smul.u32 112, %s103_s22  ;;  %p4432_p0 = pnand %p4439_p13, %p4704_p4 }
  0x13   : > { %s114_s27 = scalar_lea.hbm %s6678_s0, %s4423_s24  ;;  %p4324_p1 = scmp.ge.s32.totalorder %s4640_s11, 1 }
  0x14   : > { %s107_s28 = scalar_lea.vmem [#allocation2], %s4422_s23  ;;  %s115_s30 = sshll.u32 %s114_s27, 4  ;;  %s116_s30 = int_to_ptr.hbm [resolvable:$true] %s115_s30 }
  0x15   : > { %s117_s29 = sshll.u32 %s107_s28, 4  ;;  %s104_s2 = scalar_lea.sflag [#allocation3], %s103_s22  ;;  %s118_s29 = int_to_ptr.vmem [resolvable:$true] %s117_s29 }
  0x16   : > { %s4642_s3 = smov 128   ;;  %s4643_s4 = smov 8  }
  0x17   : > { %4434 = dma.hbm_to_vmem [thread:$0]  (!%p4432_p0), %s116_s30, 1792, %s118_s29, %s104_s2, %s4642_s3, %s4642_s3, %s4643_s4  }
  0x18   : > { %p125_p2 = scmp.lt.s32.totalorder %s4640_s11, 3 }
  0x1a   : > { %p126_p3 = pnand %p4324_p1, %p125_p2 }
  0x1c   : > { %129 = sbr.rel (%p126_p3) target bundleno = 703 (0x2bf), region = 24 }
  0x21   : > { %s4737_s5 = sand.u32 1, %s4624_s7  }
  0x22   : > { %s4424_s12 = smul.u32 112, %s4737_s5  ;;  %s132_s13 = scalar_lea.sflag [#allocation3], %s4737_s5 }
  0x24   : > { %s4741_s15 = scalar_lea.vmem [#allocation2], %s4424_s12 }
  0x25   : > { %4611 = dma.done.wait (%p4710_p8), %s132_s13, 1792  }
  0x26   : > { %4613 = vsyncadd (%p4710_p8), %s132_s13, 4294965504  ;;  %v4748_v0 = vld [vmem:[%s4741_s15] sm:$0xff]  ;;  %v4325_v2 = vld [vmem:[%s4741_s15 + $0x10] sm:$0xff]  ;;  %v6695_v32 = vmov 683565275   ;;  %s4425_s16 = smul.u32 96, %s4737_s5 }
  0x27   : > { %v4339_v1 = vld [vmem:[%s4741_s15 + $0x20] sm:$0xff]  ;;  %v4756_v4 = vsub.f32 %v4325_v2, %v4748_v0  ;;  %v4759_v5 = vld [vmem:[%s4741_s15 + $0x8] sm:$0xff]  ;;  %v6693_v34 = vmov 2475754826   ;;  %v6691_v36 = vmov 2131351028  }
  0x28   : > { %v4753_v3 = vsub.f32 %v4339_v1, %v4748_v0  ;;  %v4340_v6 = vld [vmem:[%s4741_s15 + $0x28] sm:$0xff]  ;;  %v6689_v38 = vmov 2102212464   ;;  %v6700_v40 = vmov 920167782   ;;  %s6548_s17 = scalar_lea.vmem [#allocation5], %s4425_s16 }
  0x29   : > { %v4763_v7 = vsub.f32 %v4340_v6, %v4759_v5  ;;  %v164_v10 = vand.u32 2147483647, %v4756_v4  ;;  %v167_v11 = vand.u32 2139095040, %v4756_v4  ;;  %v6699_v49 = vmov 1326507024   ;;  %s4426_s18 = smul.u32 96, %s4632_s9 }
  0x2a   : > { %v839_v8 = vand.u32 2147483647, %v4753_v3  ;;  %v842_v9 = vand.u32 2139095040, %v4753_v3  ;;  %s4229_s25 = sshll.u32 %s6548_s17, 4  ;;  %s4215_s9 = scalar_lea.sflag [#allocation4], %s4737_s5  ;;  %s4230_s25 = int_to_ptr.vmem [resolvable:$true] %s4229_s25 }
  0x2b   : > { %v168_v14 = vshrl.u32 %v167_v11, 23  ;;  %v996_v15 = vand.u32 2139095040, %v4763_v7  ;;  %v171_v19 = vand.u32 8388607, %v164_v10  ;;  %s4228_s24 = scalar_lea.hbm %s6679_s1, %s4426_s18  ;;  %s4578_s2 = scalar_lea.hbm %s6679_s1, 192 }
  0x2c   : > { %v843_v12 = vshrl.u32 %v842_v9, 23  ;;  %v846_v13 = vand.u32 8388607, %v839_v8  ;;  %s4231_s26 = sshll.u32 %s4228_s24, 4  ;;  %s4232_s26 = int_to_ptr.hbm [resolvable:$true] %s4231_s26 }
  0x2d   : > { %v4327_v18 = vadd.s32 4294967169, %v168_v14  ;;  %v997_v22 = vshrl.u32 %v996_v15, 23  ;;  %v172_v25 = vor.u32 8388608, %v171_v19  ;;  %s4572_s27 = sshra.s32 %s4232_s26, 4  ;;  %s4573_s27 = int_to_ptr.hbm [resolvable:$true] %s4572_s27 }
  0x2e   : > { %v4341_v16 = vadd.s32 4294967169, %v843_v12  ;;  %v847_v17 = vor.u32 8388608, %v846_v13  ;;  %s4574_s28 = scalar_lea.hbm %s4573_s27, 96  ;;  %p4579_p7 = scmp.lt.s32.totalorder %s4573_s27, %s6679_s1 }
  0x2f   : > { %v174_v21 = vadd.s32 1, %v4327_v18  ;;  %v4780_v30 = vadd.s32 4294967169, %v997_v22  ;;  %v4788_v43 = vshll.u32 %v172_v25, 8  ;;  %p4575_p4 = scmp.ne.s32.totalorder %s4573_s27, %s4574_s28  ;;  %p4580_p8 = scmp.lt.s32.totalorder %s4578_s2, %s4574_s28 }
  0x30   : > { %v849_v20 = vadd.s32 1, %v4341_v16  ;;  %v4774_v24 = vshll.u32 %v847_v17, 8 }
  0x31   : > { %vm175_vm1 = vcmp.gt.s32.totalorder %v174_v21, 0  ;;  %p4576_p5 = pnand %p4575_p4, %p4714_p9  ;;  %p4581_p10 = por %p4580_p8, %p4579_p7 }
  0x32   : > { %vm850_vm0 = vcmp.gt.s32.totalorder %v849_v20, 0  ;;  %v176_v27 = vsel %vm175_vm1, %v174_v21, 0  ;;  %v888_v42 = vand.u32 65535, %v4774_v24  ;;  %v889_v47 = vshrl.u32 %v4774_v24, 16 }
  0x33   : > { %v851_v23 = vsel %vm850_vm0, %v849_v20, 0  ;;  %v4778_v29 = vand.u32 31, %v176_v27  ;;  %v4808_v60 = vshrl.u32 %v176_v27, 5  ;;  %p4577_p6 = pneg %p4576_p5 }
  0x34   : > { %v853_v26 = vand.u32 31, %v851_v23  ;;  %v4776_v28 = vshrl.u32 %v851_v23, 5 }
  0x35   : > { %v4799_v54 = vsub.s32 32, %v4778_v29  ;;  %v181_v63 = vshll.u32 %v6695_v32, %v4778_v29  ;;  %v184_v1 = vshll.u32 %v6693_v34, %v4778_v29  ;;  %v187_v23 = vshll.u32 %v6691_v36, %v4778_v29  ;;  %p4582_p13 = pnand %p4581_p10, %p4577_p6 }
  0x36   : > { %v854_v31 = vsub.s32 32, %v853_v26  ;;  %v856_v33 = vshll.u32 %v6695_v32, %v853_v26  ;;  %v859_v35 = vshll.u32 %v6693_v34, %v853_v26  ;;  %v862_v37 = vshll.u32 %v6691_v36, %v853_v26 }
  0x37   : > { %v865_v39 = vshll.u32 %v6689_v38, %v853_v26  ;;  %v868_v41 = vshll.u32 %v6700_v40, %v853_v26  ;;  %vm871_vm2 = vcmp.lt.s32.totalorder %v4776_v28, 1  ;;  %vm874_vm3 = vcmp.lt.s32.totalorder %v4776_v28, 4 }
  0x38   : > { %v857_v44 = vshrl.u32 %v6693_v34, %v854_v31  ;;  %v860_v45 = vshrl.u32 %v6691_v36, %v854_v31  ;;  %v863_v46 = vshrl.u32 %v6689_v38, %v854_v31  ;;  %v866_v48 = vshrl.u32 %v6700_v40, %v854_v31 }
  0x39   : > { %v869_v50 = vshrl.u32 %v6699_v49, %v854_v31  ;;  %v855_v55 = vshrl.u32 %v6695_v32, %v854_v31  ;;  %vm873_vm4 = vcmp.lt.s32.totalorder %v4776_v28, 3  ;;  %vm872_vm5 = vcmp.lt.s32.totalorder %v4776_v28, 2 }
  0x3a   : > { %v858_v51 = vor.u32 %v857_v44, %v856_v33  ;;  %v861_v52 = vor.u32 %v860_v45, %v859_v35  ;;  %v864_v53 = vor.u32 %v863_v46, %v862_v37  ;;  %v867_v56 = vor.u32 %v866_v48, %v865_v39 }
  0x3b   : > { %v870_v57 = vor.u32 %v869_v50, %v868_v41  ;;  %v182_v11 = vshrl.u32 %v6693_v34, %v4799_v54  ;;  %v185_v15 = vshrl.u32 %v6691_v36, %v4799_v54  ;;  %v188_v31 = vshrl.u32 %v6689_v38, %v4799_v54 }
  0x3c   : > { %v879_v58 = vsel %vm871_vm2, %v858_v51, %v861_v52  ;;  %v883_v59 = vsel %vm871_vm2, %v861_v52, %v864_v53  ;;  %v880_v61 = vsel %vm874_vm3, %v867_v56, 920167782  ;;  %v876_v2 = vsel %vm874_vm3, %v864_v53, 2102212464 }
  0x3d   : > { %v884_v62 = vsel %vm874_vm3, %v870_v57, 1326507024  ;;  %v881_v6 = vsel %vm873_vm4, %v864_v53, %v880_v61  ;;  %v875_v12 = vsel %vm871_vm2, %v855_v55, %v858_v51  ;;  %v877_v20 = vsel %vm873_vm4, %v861_v52, %v876_v2 }
  0x3e   : > { %v885_v9 = vsel %vm873_vm4, %v867_v56, %v884_v62  ;;  %v882_v13 = vsel %vm872_vm5, %v879_v58, %v881_v6  ;;  %v4836_v21 = vor.u32 %v182_v11, %v181_v63  ;;  %v4838_v22 = vor.u32 %v185_v15, %v184_v1 }
  0x3f   : > { %v886_v14 = vsel %vm872_vm5, %v883_v59, %v885_v9  ;;  %v912_v18 = vand.u32 65535, %v882_v13  ;;  %v913_v19 = vshrl.u32 %v882_v13, 16  ;;  %v190_v56 = vshll.u32 %v6689_v38, %v4778_v29 }
  0x40   : > { %v890_v16 = vand.u32 65535, %v886_v14  ;;  %v891_v17 = vshrl.u32 %v886_v14, 16  ;;  %v6685_v57 = vmov 0   ;;  %v191_v59 = vshrl.u32 %v6700_v40, %v4799_v54 }
  0x41   : > { %v914_v35 = vmul.u32 %v912_v18, %v888_v42  ;;  %v915_v37 = vmul.u32 %v913_v19, %v888_v42  ;;  %v916_v39 = vmul.u32 %v912_v18, %v889_v47  ;;  %v917_v46 = vmul.u32 %v913_v19, %v889_v47 }
  0x42   : > { %v892_v25 = vmul.u32 %v890_v16, %v888_v42  ;;  %v893_v26 = vmul.u32 %v891_v17, %v888_v42  ;;  %v894_v27 = vmul.u32 %v890_v16, %v889_v47  ;;  %v895_v33 = vmul.u32 %v891_v17, %v889_v47 }
  0x43   : > { %v918_v50 = vshll.u32 %v915_v37, 16  ;;  %v919_v51 = vshrl.u32 %v915_v37, 16  ;;  %v920_v52 = vshll.u32 %v916_v39, 16  ;;  %v921_v55 = vshrl.u32 %v916_v39, 16 }
  0x44   : > { %v896_v41 = vshll.u32 %v893_v26, 16  ;;  %v897_v44 = vshrl.u32 %v893_v26, 16  ;;  %v898_v45 = vshll.u32 %v894_v27, 16  ;;  %v899_v48 = vshrl.u32 %v894_v27, 16 }
  0x45   : > { %vm922_vm7 = vc.u32 %v914_v35, %v918_v50  ;;  %v924_v42 = vadd.s32 %v918_v50, %v914_v35  ;;  %v193_v62 = vshll.u32 %v6700_v40, %v4778_v29  ;;  %v189_v2 = vor.u32 %v188_v31, %v187_v23 }
  0x46   : > { %vm900_vm6 = vc.u32 %v892_v25, %v896_v41  ;;  %v902_v53 = vadd.s32 %v896_v41, %v892_v25  ;;  %v923_v47 = vsel %vm922_vm7, 1, %v6685_v57  ;;  %v192_v11 = vor.u32 %v191_v59, %v190_v56 }
  0x47   : > { %v901_v58 = vsel %vm900_vm6, 1, %v6685_v57  ;;  %v925_v1 = vadd.s32 %v923_v47, %v917_v46  ;;  %vm926_vm9 = vc.u32 %v924_v42, %v920_v52  ;;  %v194_v13 = vshrl.u32 %v6699_v49, %v4799_v54 }
  0x48   : > { %v903_v61 = vadd.s32 %v901_v58, %v895_v33  ;;  %vm904_vm8 = vc.u32 %v902_v53, %v898_v45  ;;  %v927_v9 = vsel %vm926_vm9, 1, %v6685_v57  ;;  %v4856_v14 = vadd.s32 %v924_v42, %v920_v52 }
  0x49   : > { %v905_v63 = vsel %vm904_vm8, 1, %v6685_v57  ;;  %v929_v15 = vadd.s32 %v927_v9, %v925_v1  ;;  %vm196_vm10 = vcmp.lt.s32.totalorder %v4808_v60, 1  ;;  %vm198_vm11 = vcmp.lt.s32.totalorder %v4808_v60, 3 }
  0x4a   : > { %v907_v6 = vadd.s32 %v905_v63, %v903_v61  ;;  %v195_v16 = vor.u32 %v194_v13, %v193_v62  ;;  %vm197_vm12 = vcmp.lt.s32.totalorder %v4808_v60, 2  ;;  %vm199_vm13 = vcmp.lt.s32.totalorder %v4808_v60, 4 }
  0x4b   : > { %v878_v17 = vsel %vm872_vm5, %v875_v12, %v877_v20  ;;  %v930_v18 = vadd.s32 %v929_v15, %v919_v51  ;;  %v204_v19 = vsel %vm196_vm10, %v4836_v21, %v4838_v22  ;;  %v205_v23 = vsel %vm199_vm13, %v192_v11, 920167782 }
  0x4c   : > { %v908_v29 = vadd.s32 %v907_v6, %v897_v44  ;;  %v206_v26 = vsel %vm198_vm11, %v189_v2, %v205_v23  ;;  %v208_v27 = vsel %vm196_vm10, %v4838_v22, %v189_v2  ;;  %v213_v28 = vand.u32 65535, %v4788_v43 }
  0x4d   : > { %v931_v12 = vadd.s32 %v930_v18, %v921_v55  ;;  %v207_v20 = vsel %vm197_vm12, %v204_v19, %v206_v26  ;;  %v209_v31 = vsel %vm199_vm13, %v195_v16, 1326507024  ;;  %v214_v33 = vshrl.u32 %v4788_v43, 16 }
  0x4e   : > { %v4870_v25 = vadd.s32 %v908_v29, %v899_v48  ;;  %v932_v35 = vmul.u32 %v4774_v24, %v878_v17  ;;  %v210_v37 = vsel %vm198_vm11, %v192_v11, %v209_v31  ;;  %v237_v39 = vand.u32 65535, %v207_v20 }
  0x4f   : > { %v935_v41 = vadd.s32 1, %v931_v12  ;;  %v211_v44 = vsel %vm197_vm12, %v208_v27, %v210_v37  ;;  %v238_v45 = vshrl.u32 %v207_v20, 16  ;;  %v1003_v46 = vadd.s32 1, %v4780_v30 }
  0x50   : > { %vm934_vm14 = vc.u32 %v4870_v25, %v4856_v14  ;;  %v215_v48 = vand.u32 65535, %v211_v44  ;;  %v216_v50 = vshrl.u32 %v211_v44, 16  ;;  %v180_v24 = vshrl.u32 %v6695_v32, %v4799_v54 }
  0x51   : > { %v936_v51 = vsel %vm934_vm14, %v935_v41, %v931_v12  ;;  %v240_v52 = vmul.u32 %v238_v45, %v213_v28  ;;  %v241_v53 = vmul.u32 %v237_v39, %v214_v33  ;;  %v239_v42 = vmul.u32 %v237_v39, %v213_v28 }
  0x52   : > { %v937_v55 = vadd.s32 %v936_v51, %v932_v35  ;;  %v217_v56 = vmul.u32 %v215_v48, %v213_v28  ;;  %v218_v58 = vmul.u32 %v216_v50, %v213_v28  ;;  %v219_v59 = vmul.u32 %v215_v48, %v214_v33 }
  0x53   : > { %v243_v61 = vshll.u32 %v240_v52, 16  ;;  %v993_v47 = vand.u32 2147483647, %v4763_v7  ;;  %vm1004_vm15 = vcmp.gt.s32.totalorder %v1003_v46, 0  ;;  %v201_v30 = vsel %vm199_vm13, %v189_v2, 2102212464 }
  0x54   : > { %v938_v62 = vadd.s32 536870912, %v937_v55  ;;  %v220_v63 = vmul.u32 %v216_v50, %v214_v33  ;;  %v221_v1 = vshll.u32 %v218_v58, 16  ;;  %v200_v54 = vsel %vm196_vm10, %v180_v24, %v4836_v21 }
  0x55   : > { %v223_v6 = vshll.u32 %v219_v59, 16  ;;  %v242_v9 = vmul.u32 %v238_v45, %v214_v33  ;;  %v245_v11 = vshll.u32 %v241_v53, 16  ;;  %vm247_vm1 = vc.u32 %v239_v42, %v243_v61 }
  0x56   : > { %v4899_v13 = vshrl.u32 %v938_v62, 30  ;;  %vm225_vm0 = vc.u32 %v217_v56, %v221_v1  ;;  %v227_v15 = vadd.s32 %v221_v1, %v217_v56  ;;  %v202_v29 = vsel %vm198_vm11, %v4838_v22, %v201_v30 }
  0x57   : > { %v226_v2 = vsel %vm225_vm0, 1, %v6685_v57  ;;  %v248_v16 = vsel %vm247_vm1, 1, %v6685_v57  ;;  %v249_v17 = vadd.s32 %v243_v61, %v239_v42  ;;  %v222_v21 = vshrl.u32 %v218_v58, 16 }
  0x58   : > { %v940_v18 = vshll.u32 %v4899_v13, 30  ;;  %v228_v19 = vadd.s32 %v226_v2, %v220_v63  ;;  %vm229_vm2 = vc.u32 %v227_v15, %v223_v6  ;;  %v244_v26 = vshrl.u32 %v240_v52, 16 }
  0x59   : > { %v230_v23 = vsel %vm229_vm2, 1, %v6685_v57  ;;  %v250_v27 = vadd.s32 %v248_v16, %v242_v9  ;;  %vm251_vm3 = vc.u32 %v249_v17, %v245_v11  ;;  %v224_v12 = vshrl.u32 %v219_v59, 16 }
  0x5a   : > { %v941_v28 = vsub.s32 %v937_v55, %v940_v18  ;;  %v232_v20 = vadd.s32 %v230_v23, %v228_v19  ;;  %v252_v22 = vsel %vm251_vm3, 1, %v6685_v57  ;;  %v246_v31 = vshrl.u32 %v241_v53, 16 }
  0x5b   : > { %v254_v33 = vadd.s32 %v252_v22, %v250_v27  ;;  %v1005_v35 = vsel %vm1004_vm15, %v1003_v46, 0  ;;  %v4910_v41 = vadd.s32 %v249_v17, %v245_v11  ;;  %v203_v44 = vsel %vm197_vm12, %v200_v54, %v202_v29 }
  0x5c   : > { %vm942_vm4 = vcmp.lt.s32.totalorder %v941_v28, 0  ;;  %v943_v37 = vsub.s32 0, %v941_v28  ;;  %v233_v39 = vadd.s32 %v232_v20, %v222_v21  ;;  %v1007_v48 = vand.u32 31, %v1005_v35 }
  0x5d   : > { %v255_v45 = vadd.s32 %v254_v33, %v244_v26  ;;  %v1000_v24 = vand.u32 8388607, %v993_v47  ;;  %v257_v46 = vmul.u32 %v4788_v43, %v203_v44  ;;  %v933_v60 = vadd.s32 %v4856_v14, %v4870_v25 }
  0x5e   : > { %v944_v50 = vsel %vm942_vm4, %v943_v37, %v941_v28  ;;  %v4914_v51 = vadd.s32 %v233_v39, %v224_v12  ;;  %v1008_v58 = vsub.s32 32, %v1007_v48  ;;  %vm841_vm6 = vcmp.lt.s32.totalorder %v4753_v3, 0 }
  0x5f   : > { %v945_v52 = vclz %v944_v50  ;;  %v256_v53 = vadd.s32 %v255_v45, %v246_v31  ;;  %v1001_v42 = vor.u32 8388608, %v1000_v24  ;;  %v963_v59 = vsub.s32 4, %v4899_v13 }
  0x60   : > { %vm259_vm5 = vc.u32 %v4914_v51, %v4910_v41  ;;  %v4925_v62 = vshrl.u32 %v1005_v35, 5  ;;  %v1013_v63 = vshll.u32 %v6693_v34, %v1007_v48  ;;  %v1019_v1 = vshll.u32 %v6689_v38, %v1007_v48 }
  0x61   : > { %v4342_v55 = vadd.s32 4294967294, %v945_v52  ;;  %v260_v56 = vadd.s32 1, %v256_v53  ;;  %v1020_v14 = vshrl.u32 %v6700_v40, %v1008_v58  ;;  %v1014_v11 = vshrl.u32 %v6691_v36, %v1008_v58 }
  0x62   : > { %v1016_v15 = vshll.u32 %v6691_v36, %v1007_v48  ;;  %v1017_v29 = vshrl.u32 %v6689_v38, %v1008_v58  ;;  %v1022_v17 = vshll.u32 %v6700_v40, %v1007_v48  ;;  %v4934_v18 = vshll.u32 %v1001_v42, 8 }
  0x63   : > { %vm4343_vm7 = vcmp.lt.s32.totalorder %v4342_v55, 0  ;;  %v261_v61 = vsel %vm259_vm5, %v260_v56, %v256_v53  ;;  %v1010_v19 = vshll.u32 %v6695_v32, %v1007_v48  ;;  %v1011_v23 = vshrl.u32 %v6693_v34, %v1008_v58 }
  0x64   : > { %v948_v30 = vsel %vm4343_vm7, 0, %v4342_v55  ;;  %v262_v43 = vadd.s32 %v261_v61, %v257_v46  ;;  %v1023_v26 = vshrl.u32 %v6699_v49, %v1008_v58  ;;  %vm4941_vm8 = vcmp.le.f32.partialorder %v839_v8, 0.7853982 }
  0x65   : > { %v949_v54 = vsub.s32 32, %v948_v30  ;;  %v950_v6 = vshll.u32 %v941_v28, %v948_v30  ;;  %v953_v9 = vsub.s32 4294967266, %v948_v30  ;;  %v1021_v20 = vor.u32 %v1020_v14, %v1019_v1 }
  0x66   : > { %v263_v25 = vadd.s32 536870912, %v262_v43  ;;  %vm166_vm9 = vcmp.lt.s32.totalorder %v4756_v4, 0  ;;  %v1015_v31 = vor.u32 %v1014_v11, %v1013_v63  ;;  %v1018_v33 = vor.u32 %v1017_v29, %v1016_v15 }
  0x67   : > { %v951_v2 = vshrl.u32 %v933_v60, %v949_v54  ;;  %v954_v16 = vadd.s32 127, %v953_v9  ;;  %vm1028_vm10 = vcmp.lt.s32.totalorder %v4925_v62, 4  ;;  %v1024_v39 = vor.u32 %v1023_v26, %v1022_v17 }
  0x68   : > { %v264_v21 = vshrl.u32 %v263_v25, 30  ;;  %vm1025_vm11 = vcmp.lt.s32.totalorder %v4925_v62, 1  ;;  %v964_v8 = vsel %vm841_vm6, %v963_v59, %v4899_v13  ;;  %v1012_v45 = vor.u32 %v1011_v23, %v1010_v19 }
  0x69   : > { %v952_v28 = vor.u32 %v951_v2, %v950_v6  ;;  %v955_v12 = vshll.u32 %v954_v16, 23  ;;  %v1042_v48 = vand.u32 65535, %v4934_v18  ;;  %vm4956_vm12 = vcmp.le.f32.partialorder %v164_v10, 0.7853982 }
  0x6a   : > { %v265_v22 = vshll.u32 %v264_v21, 30  ;;  %vm1026_vm13 = vcmp.lt.s32.totalorder %v4925_v62, 2  ;;  %vm1027_vm14 = vcmp.lt.s32.totalorder %v4925_v62, 3  ;;  %v1034_v52 = vsel %vm1028_vm10, %v1021_v20, 920167782 }
  0x6b   : > { %v956_v35 = vor.u32 4788187, %v955_v12  ;;  %v959_v37 = vcvt.s32.f32 %v952_v28  ;;  %v1009_v53 = vshrl.u32 %v6695_v32, %v1008_v58  ;;  %v1037_v46 = vsel %vm1025_vm11, %v1015_v31, %v1018_v33  ;;  %v4326_v12 = vld [vmem:[%s4741_s15 + $0x18] sm:$0xff] }
  0x6c   : > { %v4951_v44 = vsub.s32 %v262_v43, %v265_v22  ;;  %v288_v55 = vsub.s32 4, %v264_v21  ;;  %v1030_v56 = vsel %vm1028_vm10, %v1018_v33, 2102212464  ;;  %v1038_v60 = vsel %vm1028_vm10, %v1024_v39, 1326507024 }
  0x6d   : > { %v957_v50 = vand.u32 2147483647, %v956_v35  ;;  %v1033_v59 = vsel %vm1025_vm11, %v1012_v45, %v1015_v31  ;;  %v1035_v61 = vsel %vm1027_vm14, %v1018_v33, %v1034_v52  ;;  %v1039_v58 = vsel %vm1027_vm14, %v1021_v20, %v1038_v60 }
  0x6e   : > { %vm267_vm15 = vcmp.lt.s32.totalorder %v4951_v44, 0  ;;  %v268_v13 = vsub.s32 0, %v4951_v44  ;;  %v4982_v43 = vsel %vm4941_vm8, 0, %v964_v8  ;;  %v1040_v1 = vsel %vm1026_vm13, %v1037_v46, %v1039_v58 }
  0x6f   : > { %v960_v10 = vmul.f32 %v959_v37, %v957_v50  ;;  %v1029_v54 = vsel %vm1025_vm11, %v1009_v53, %v1012_v45  ;;  %v1031_v6 = vsel %vm1027_vm14, %v1015_v31, %v1030_v56  ;;  %v1043_v9 = vshrl.u32 %v4934_v18, 16 }
  0x70   : > { %v269_v42 = vsel %vm267_vm15, %v268_v13, %v4951_v44  ;;  %v1045_v14 = vshrl.u32 %v1040_v1, 16  ;;  %v289_v15 = vsel %vm166_vm9, %v288_v55, %v264_v21  ;;  %v1036_v29 = vsel %vm1026_vm13, %v1033_v59, %v1035_v61 }
  0x71   : > { %v961_v30 = vxor.u32 2147483648, %v960_v10  ;;  %v270_v63 = vclz %v269_v42  ;;  %v258_v16 = vadd.s32 %v4910_v41, %v4914_v51  ;;  %v1044_v17 = vand.u32 65535, %v1040_v1 }
  0x72   : > { %v5004_v19 = vmul.u32 %v1045_v14, %v1042_v48  ;;  %v5009_v26 = vand.u32 3, %v4982_v43  ;;  %v5013_v21 = vsel %vm1026_vm13, %v1029_v54, %v1031_v6  ;;  %v5017_v28 = vsel %vm4956_vm12, 0, %v289_v15 }
  0x73   : > { %v962_v25 = vsel %vm841_vm6, %v961_v30, %v960_v10  ;;  %v4328_v11 = vadd.s32 4294967294, %v270_v63  ;;  %v1066_v41 = vand.u32 65535, %v1036_v29  ;;  %v1067_v51 = vshrl.u32 %v1036_v29, 16 }
  0x74   : > { %v5000_v2 = vsel %vm4941_vm8, %v4753_v3, %v962_v25  ;;  %v1046_v37 = vmul.u32 %v1044_v17, %v1042_v48  ;;  %v5021_v39 = vmul.u32 %v1044_v17, %v1043_v9  ;;  %v1050_v62 = vshll.u32 %v5004_v19, 16 }
  0x75   : > { %v967_v23 = vmul.f32 %v5000_v2, %v5000_v2  ;;  %vm4329_vm0 = vcmp.lt.s32.totalorder %v4328_v11, 0  ;;  %v5025_v52 = vsub.f32 %v4326_v12, %v4759_v5  ;;  %vm988_vm1 = vcmp.eq.s32.totalorder %v5009_v26, 2 }
  0x76   : > { %v273_v27 = vsel %vm4329_vm0, 0, %v4328_v11  ;;  %v1049_v53 = vmul.u32 %v1045_v14, %v1043_v9  ;;  %v1068_v46 = vmul.u32 %v1066_v41, %v1042_v48  ;;  %v1069_v10 = vmul.u32 %v1067_v51, %v1042_v48 }
  0x77   : > { %v968_v20 = vmul.f32 -0.001358992, %v967_v23  ;;  %v975_v22 = vmul.f32 -0.00019511016, %v967_v23  ;;  %v274_v31 = vsub.s32 32, %v273_v27  ;;  %v275_v33 = vshll.u32 %v4951_v44, %v273_v27 }
  0x78   : > { %v278_v35 = vsub.s32 4294967266, %v273_v27  ;;  %v1070_v60 = vmul.u32 %v1066_v41, %v1043_v9  ;;  %vm985_vm2 = vcmp.eq.s32.totalorder %v5009_v26, 0  ;;  %v1052_v59 = vshll.u32 %v5021_v39, 16 }
  0x79   : > { %v969_v8 = vadd.f32 0.041655596, %v968_v20  ;;  %v976_v45 = vadd.f32 0.008332121, %v975_v22  ;;  %v276_v50 = vshrl.u32 %v258_v16, %v274_v31  ;;  %vm1054_vm3 = vc.u32 %v1046_v37, %v1050_v62 }
  0x7a   : > { %v279_v13 = vadd.s32 127, %v278_v35  ;;  %v1071_v61 = vmul.u32 %v1067_v51, %v1043_v9  ;;  %vm984_vm4 = vcmp.lt.s32.totalorder %v5009_v26, 2  ;;  %v1055_v63 = vsel %vm1054_vm3, 1, %v6685_v57 }
  0x7b   : > { %v970_v55 = vmul.f32 %v969_v8, %v967_v23  ;;  %v977_v44 = vmul.f32 %v976_v45, %v967_v23  ;;  %v277_v56 = vor.u32 %v276_v50, %v275_v33  ;;  %vm982_vm5 = vweird.f32 %v4753_v3 }
  0x7c   : > { %v280_v42 = vshll.u32 %v279_v13, 23  ;;  %v1056_v1 = vadd.s32 %v1050_v62, %v1046_v37  ;;  %v1057_v54 = vadd.s32 %v1055_v63, %v1049_v53  ;;  %v1072_v6 = vshll.u32 %v1069_v10, 16 }
  0x7d   : > { %v971_v58 = vadd.f32 -0.4999988, %v970_v55  ;;  %v978_v5 = vadd.f32 -0.16666654, %v977_v44  ;;  %v284_v30 = vcvt.s32.f32 %v277_v56  ;;  %v616_v11 = vadd.s32 3, %v5017_v28 }
  0x7e   : > { %v281_v48 = vor.u32 4788187, %v280_v42  ;;  %v1051_v15 = vshrl.u32 %v5004_v19, 16  ;;  %vm1058_vm6 = vc.u32 %v1056_v1, %v1052_v59  ;;  %v1074_v29 = vshll.u32 %v1070_v60, 16 }
  0x7f   : > { %v972_v14 = vmul.f32 %v971_v58, %v967_v23  ;;  %v979_v25 = vmul.f32 %v978_v5, %v967_v23  ;;  %vm1076_vm7 = vc.u32 %v1068_v46, %v1072_v6  ;;  %v1059_v27 = vsel %vm1058_vm6, 1, %v6685_v57 }
  0x80   : > { %v282_v9 = vand.u32 2147483647, %v281_v48  ;;  %v1077_v41 = vsel %vm1076_vm7, 1, %v6685_v57  ;;  %v1061_v12 = vadd.s32 %v1059_v27, %v1057_v54  ;;  %v1078_v20 = vadd.s32 %v1072_v6, %v1068_v46 }
  0x81   : > { %v5035_v16 = vadd.f32 1.0, %v972_v14  ;;  %v980_v17 = vadd.f32 1.0, %v979_v25  ;;  %v1079_v22 = vadd.s32 %v1077_v41, %v1071_v61  ;;  %v1053_v31 = vshrl.u32 %v5021_v39, 16 }
  0x82   : > { %v285_v51 = vmul.f32 %v284_v30, %v282_v9  ;;  %v321_v33 = vand.u32 2139095040, %v5025_v52  ;;  %v1062_v37 = vadd.s32 %v1061_v12, %v1051_v15  ;;  %v1073_v62 = vshrl.u32 %v1069_v10, 16 }
  0x83   : > { %v5040_v23 = vmul.f32 %v980_v17, %v5000_v2  ;;  %v6680_v19 = vxor.u32 2147483648, %v5035_v16  ;;  %vm1080_vm8 = vc.u32 %v1078_v20, %v1074_v29  ;;  %v1075_v13 = vshrl.u32 %v1070_v60, 16 }
  0x84   : > { %v286_v35 = vxor.u32 2147483648, %v285_v51  ;;  %v1081_v2 = vsel %vm1080_vm8, 1, %v6685_v57  ;;  %v322_v50 = vshrl.u32 %v321_v33, 23  ;;  %v5054_v53 = vadd.s32 %v1078_v20, %v1074_v29 }
  0x85   : > { %v986_v8 = vxor.u32 2147483648, %v5040_v23  ;;  %v990_v45 = vsel %vm988_vm1, %v6680_v19, %v5040_v23  ;;  %v1083_v46 = vadd.s32 %v1081_v2, %v1079_v22  ;;  %v5064_v44 = vadd.s32 %v1062_v37, %v1053_v31 }
  0x86   : > { %v287_v39 = vsel %vm166_vm9, %v286_v35, %v285_v51  ;;  %v4330_v56 = vadd.s32 4294967169, %v322_v50  ;;  %v318_v58 = vand.u32 2147483647, %v5025_v52  ;;  %v1086_v48 = vmul.u32 %v4934_v18, %v5013_v21  ;;  %v4355_v21 = vld [vmem:[%s4741_s15 + $0x30] sm:$0xff] }
  0x87   : > { %v987_v10 = vsel %vm985_vm2, %v5035_v16, %v986_v8  ;;  %v290_v55 = vsel %vm4956_vm12, %v4756_v4, %v287_v39  ;;  %v1084_v59 = vadd.s32 %v1083_v46, %v1073_v62  ;;  %v5076_v26 = vand.u32 3, %v616_v11 }
  0x88   : > { %v991_v42 = vsel %vm984_vm4, %v987_v10, %v990_v45  ;;  %v292_v60 = vmul.f32 %v290_v55, %v290_v55  ;;  %v328_v5 = vadd.s32 1, %v4330_v56  ;;  %v5079_v1 = vand.u32 3, %v5017_v28 }
  0x89   : > { %v5070_v61 = vsel %vm982_vm5, nan, %v991_v42  ;;  %v1085_v63 = vadd.s32 %v1084_v59, %v1075_v13  ;;  %vm1088_vm9 = vc.u32 %v5064_v44, %v5054_v53  ;;  %v325_v15 = vand.u32 8388607, %v318_v58 }
  0x8a   : > { %1457 = vadd.xlane.f32.xlu2 %v5070_v61  ;;  %v293_v30 = vmul.f32 -0.001358992, %v292_v60  ;;  %v300_v24 = vmul.f32 -0.00019511016, %v292_v60  ;;  %vm329_vm10 = vcmp.gt.s32.totalorder %v328_v5, 0  ;;  %vm619_vm11 = vcmp.eq.s32.totalorder %v5076_v26, 0 }
  0x8b   : > { %v1089_v14 = vadd.s32 1, %v1085_v63  ;;  %v330_v25 = vsel %vm329_vm10, %v328_v5, 0  ;;  %vm622_vm12 = vcmp.eq.s32.totalorder %v5076_v26, 2  ;;  %vm618_vm13 = vcmp.lt.s32.totalorder %v5076_v26, 2 }
  0x8c   : > { %v294_v54 = vadd.f32 0.041655596, %v293_v30  ;;  %v301_v6 = vadd.f32 0.008332121, %v300_v24  ;;  %v332_v9 = vand.u32 31, %v330_v25  ;;  %vm309_vm14 = vcmp.lt.s32.totalorder %v5079_v1, 2 }
  0x8d   : > { %v1090_v18 = vsel %vm1088_vm9, %v1089_v14, %v1085_v63  ;;  %vm310_vm15 = vcmp.eq.s32.totalorder %v5079_v1, 0  ;;  %vm307_vm0 = vweird.f32 %v4756_v4  ;;  %vm313_vm1 = vcmp.eq.s32.totalorder %v5079_v1, 2 }
  0x8e   : > { %v295_v29 = vmul.f32 %v294_v54, %v292_v60  ;;  %v302_v17 = vmul.f32 %v301_v6, %v292_v60  ;;  %v1091_v28 = vadd.s32 %v1090_v18, %v1086_v48  ;;  %v5088_v11 = vsub.s32 32, %v332_v9 }
  0x8f   : > { %v326_v12 = vor.u32 8388608, %v325_v15  ;;  %v5096_v20 = vsub.f32 %v4355_v21, %v4748_v0  ;;  %v335_v33 = vshll.u32 %v6695_v32, %v332_v9  ;;  %v338_v35 = vshll.u32 %v6693_v34, %v332_v9 }
  0x90   : > { %v296_v27 = vadd.f32 -0.4999988, %v295_v29  ;;  %v303_v41 = vadd.f32 -0.16666654, %v302_v17  ;;  %v1092_v51 = vadd.s32 536870912, %v1091_v28  ;;  %v336_v62 = vshrl.u32 %v6693_v34, %v5088_v11 }
  0x91   : > { %v339_v45 = vshrl.u32 %v6691_v36, %v5088_v11  ;;  %v341_v2 = vshll.u32 %v6691_v36, %v332_v9  ;;  %v342_v0 = vshrl.u32 %v6689_v38, %v5088_v11  ;;  %v344_v13 = vshll.u32 %v6689_v38, %v332_v9 }
  0x92   : > { %v297_v22 = vmul.f32 %v296_v27, %v292_v60  ;;  %v304_v31 = vmul.f32 %v303_v41, %v292_v60  ;;  %v5100_v37 = vshrl.u32 %v1092_v51, 30  ;;  %v345_v10 = vshrl.u32 %v6700_v40, %v5088_v11 }
  0x93   : > { %v347_v56 = vshll.u32 %v6700_v40, %v332_v9  ;;  %v348_v42 = vshrl.u32 %v6699_v49, %v5088_v11  ;;  %v5116_v5 = vshrl.u32 %v330_v25, 5  ;;  %v5118_v30 = vshll.u32 %v326_v12, 8 }
  0x94   : > { %v298_v50 = vadd.f32 1.0, %v297_v22  ;;  %v305_v39 = vadd.f32 1.0, %v304_v31  ;;  %v1094_v46 = vshll.u32 %v5100_v37, 30  ;;  %v337_v63 = vor.u32 %v336_v62, %v335_v33 }
  0x95   : > { %v340_v48 = vor.u32 %v339_v45, %v338_v35  ;;  %v1518_v54 = vand.u32 2139095040, %v5096_v20  ;;  %v343_v9 = vor.u32 %v342_v0, %v341_v2  ;;  %v346_v25 = vor.u32 %v345_v10, %v344_v13 }
  0x96   : > { %v306_v60 = vmul.f32 %v305_v39, %v290_v55  ;;  %v314_v59 = vxor.u32 2147483648, %v298_v50  ;;  %v5120_v24 = vsub.s32 %v1091_v28, %v1094_v46  ;;  %v349_v29 = vor.u32 %v348_v42, %v347_v56 }
  0x97   : > { %vm350_vm3 = vcmp.lt.s32.totalorder %v5116_v5, 1  ;;  %vm353_vm4 = vcmp.lt.s32.totalorder %v5116_v5, 4  ;;  %vm352_vm6 = vcmp.lt.s32.totalorder %v5116_v5, 3  ;;  %vm351_vm7 = vcmp.lt.s32.totalorder %v5116_v5, 2 }
  0x98   : > { %v311_v6 = vxor.u32 2147483648, %v306_v60  ;;  %v624_v14 = vsel %vm622_vm12, %v314_v59, %v306_v60  ;;  %v315_v15 = vsel %vm313_vm1, %v314_v59, %v306_v60  ;;  %vm1096_vm2 = vcmp.lt.s32.totalorder %v5120_v24, 0 }
  0x99   : > { %v1097_v55 = vsub.s32 0, %v5120_v24  ;;  %v358_v26 = vsel %vm350_vm3, %v337_v63, %v340_v48  ;;  %v359_v1 = vsel %vm353_vm4, %v346_v25, 920167782  ;;  %v362_v22 = vsel %vm350_vm3, %v340_v48, %v343_v9 }
  0x9a   : > { %v621_v17 = vsel %vm619_vm11, %v298_v50, %v311_v6  ;;  %v312_v18 = vsel %vm310_vm15, %v298_v50, %v311_v6  ;;  %v363_v4 = vsel %vm353_vm4, %v349_v29, 1326507024  ;;  %v1087_v31 = vadd.s32 %v5054_v53, %v5064_v44 }
  0x9b   : > { %v625_v21 = vsel %vm618_vm13, %v621_v17, %v624_v14  ;;  %v316_v28 = vsel %vm309_vm14, %v312_v18, %v315_v15  ;;  %v1098_v27 = vsel %vm1096_vm2, %v1097_v55, %v5120_v24  ;;  %v360_v35 = vsel %vm352_vm6, %v343_v9, %v359_v1 }
  0x9c   : > { %v5143_v41 = vsel %vm307_vm0, nan, %v625_v21  ;;  %v5147_v51 = vsel %vm307_vm0, nan, %v316_v28  ;;  %v1099_v12 = vclz %v1098_v27  ;;  %v364_v62 = vsel %vm352_vm6, %v346_v25, %v363_v4 }
  0x9d   : > { %786 = vadd.xlane.f32.xlu1 %v5143_v41  ;;  %782 = vadd.xlane.f32.xlu0 %v5147_v51  ;;  %v334_v45 = vshrl.u32 %v6695_v32, %v5088_v11  ;;  %v361_v2 = vsel %vm351_vm7, %v358_v26, %v360_v35  ;;  %v365_v50 = vsel %vm351_vm7, %v362_v22, %v364_v62  ;;  %v367_v39 = vand.u32 65535, %v5118_v30 }
  0x9e   : > { %v4345_v33 = vadd.s32 4294967294, %v1099_v12  ;;  %v368_v53 = vshrl.u32 %v5118_v30, 16  ;;  %v369_v44 = vand.u32 65535, %v365_v50  ;;  %v1519_v0 = vshrl.u32 %v1518_v54, 23 }
  0x9f   : > { %v355_v46 = vsel %vm353_vm4, %v343_v9, 2102212464  ;;  %v370_v10 = vshrl.u32 %v365_v50, 16  ;;  %v392_v56 = vshrl.u32 %v361_v2, 16  ;;  %v391_v59 = vand.u32 65535, %v361_v2 }
  0xa0   : > { %vm4346_vm8 = vcmp.lt.s32.totalorder %v4345_v33, 0  ;;  %v354_v6 = vsel %vm350_vm3, %v334_v45, %v337_v63  ;;  %v371_v14 = vmul.u32 %v369_v44, %v367_v39  ;;  %v1515_v55 = vand.u32 2147483647, %v5096_v20  ;;  %v4356_v63 = vld [vmem:[%s4741_s15 + $0x38] sm:$0xff] }
  0xa1   : > { %v1102_v13 = vsel %vm4346_vm8, 0, %v4345_v33  ;;  %v372_v15 = vmul.u32 %v370_v10, %v367_v39  ;;  %v356_v29 = vsel %vm352_vm6, %v340_v48, %v355_v46  ;;  %v373_v9 = vmul.u32 %v369_v44, %v368_v53 }
  0xa2   : > { %v1103_v11 = vsub.s32 32, %v1102_v13  ;;  %v1104_v42 = vshll.u32 %v5120_v24, %v1102_v13  ;;  %v1107_v60 = vsub.s32 4294967266, %v1102_v13  ;;  %vm995_vm9 = vcmp.lt.s32.totalorder %v4763_v7, 0 }
  0xa3   : > { %v374_v17 = vmul.u32 %v370_v10, %v368_v53  ;;  %v375_v18 = vshll.u32 %v372_v15, 16  ;;  %v394_v24 = vmul.u32 %v392_v56, %v367_v39  ;;  %v4357_v21 = vadd.s32 4294967169, %v1519_v0 }
  0xa4   : > { %v1105_v25 = vshrl.u32 %v1087_v31, %v1103_v11  ;;  %v1108_v54 = vadd.s32 127, %v1107_v60  ;;  %vm5185_vm10 = vcmp.le.f32.partialorder %v993_v47, 0.7853982  ;;  %v377_v12 = vshll.u32 %v373_v9, 16 }
  0xa5   : > { %v393_v26 = vmul.u32 %v391_v59, %v367_v39  ;;  %vm379_vm11 = vc.u32 %v371_v14, %v375_v18  ;;  %v381_v1 = vadd.s32 %v375_v18, %v371_v14  ;;  %v395_v48 = vmul.u32 %v391_v59, %v368_v53 }
  0xa6   : > { %v1106_v28 = vor.u32 %v1105_v25, %v1104_v42  ;;  %v1109_v27 = vshll.u32 %v1108_v54, 23  ;;  %v396_v22 = vmul.u32 %v392_v56, %v368_v53  ;;  %v380_v33 = vsel %vm379_vm11, 1, %v6685_v57 }
  0xa7   : > { %v397_v35 = vshll.u32 %v394_v24, 16  ;;  %v376_v62 = vshrl.u32 %v372_v15, 16  ;;  %v382_v45 = vadd.s32 %v380_v33, %v374_v17  ;;  %vm383_vm12 = vc.u32 %v381_v1, %v377_v12 }
  0xa8   : > { %v1110_v4 = vor.u32 4788187, %v1109_v27  ;;  %v1113_v31 = vcvt.s32.f32 %v1106_v28  ;;  %v399_v47 = vshll.u32 %v395_v48, 16  ;;  %v378_v50 = vshrl.u32 %v373_v9, 16 }
  0xa9   : > { %v384_v44 = vsel %vm383_vm12, 1, %v6685_v57  ;;  %vm401_vm13 = vc.u32 %v393_v26, %v397_v35  ;;  %v403_v13 = vadd.s32 %v397_v35, %v393_v26  ;;  %v1525_v46 = vadd.s32 1, %v4357_v21 }
  0xaa   : > { %v1111_v2 = vand.u32 2147483647, %v1110_v4  ;;  %v386_v0 = vadd.s32 %v384_v44, %v382_v45  ;;  %v402_v39 = vsel %vm401_vm13, 1, %v6685_v57  ;;  %v1117_v10 = vsub.s32 4, %v5100_v37 }
  0xab   : > { %v357_v56 = vsel %vm351_vm7, %v354_v6, %v356_v29  ;;  %v404_v11 = vadd.s32 %v402_v39, %v396_v22  ;;  %v398_v60 = vshrl.u32 %v394_v24, 16  ;;  %vm405_vm14 = vc.u32 %v403_v13, %v399_v47 }
  0xac   : > { %v1114_v53 = vmul.f32 %v1113_v31, %v1111_v2  ;;  %v387_v42 = vadd.s32 %v386_v0, %v376_v62  ;;  %vm1526_vm15 = vcmp.gt.s32.totalorder %v1525_v46, 0  ;;  %v406_v14 = vsel %vm405_vm14, 1, %v6685_v57 }
  0xad   : > { %v5196_v15 = vadd.s32 %v403_v13, %v399_v47  ;;  %v1527_v25 = vsel %vm1526_vm15, %v1525_v46, 0  ;;  %v400_v9 = vshrl.u32 %v395_v48, 16  ;;  %v408_v17 = vadd.s32 %v406_v14, %v404_v11 }
  0xae   : > { %v1115_v59 = vxor.u32 2147483648, %v1114_v53  ;;  %v5198_v54 = vadd.s32 %v387_v42, %v378_v50  ;;  %v1529_v18 = vand.u32 31, %v1527_v25  ;;  %v1118_v6 = vsel %vm995_vm9, %v1117_v10, %v5100_v37 }
  0xaf   : > { %v1522_v29 = vand.u32 8388607, %v1515_v55  ;;  %v409_v21 = vadd.s32 %v408_v17, %v398_v60  ;;  %v411_v28 = vmul.u32 %v5118_v30, %v357_v56  ;;  %v5213_v27 = vshrl.u32 %v1527_v25, 5 }
  0xb0   : > { %v1116_v5 = vsel %vm995_vm9, %v1115_v59, %v1114_v53  ;;  %vm413_vm0 = vc.u32 %v5198_v54, %v5196_v15  ;;  %v5219_v37 = vsub.s32 32, %v1529_v18  ;;  %v1532_v26 = vshll.u32 %v6695_v32, %v1529_v18 }
  0xb1   : > { %v5210_v24 = vsel %vm5185_vm10, %v4763_v7, %v1116_v5  ;;  %v410_v1 = vadd.s32 %v409_v21, %v400_v9  ;;  %v1535_v48 = vshll.u32 %v6693_v34, %v1529_v18  ;;  %v1538_v22 = vshll.u32 %v6691_v36, %v1529_v18 }
  0xb2   : > { %v1121_v12 = vmul.f32 %v5210_v24, %v5210_v24  ;;  %v1541_v4 = vshll.u32 %v6689_v38, %v1529_v18  ;;  %v1533_v33 = vshrl.u32 %v6693_v34, %v5219_v37  ;;  %v1544_v35 = vshll.u32 %v6700_v40, %v1529_v18 }
  0xb3   : > { %v414_v62 = vadd.s32 1, %v410_v1  ;;  %v1536_v45 = vshrl.u32 %v6691_v36, %v5219_v37  ;;  %v1539_v47 = vshrl.u32 %v6689_v38, %v5219_v37  ;;  %v1542_v2 = vshrl.u32 %v6700_v40, %v5219_v37 }
  0xb4   : > { %v1122_v30 = vmul.f32 -0.001358992, %v1121_v12  ;;  %v1129_v31 = vmul.f32 -0.00019511016, %v1121_v12  ;;  %v1545_v0 = vshrl.u32 %v6699_v49, %v5219_v37  ;;  %v5238_v39 = vsel %vm5185_vm10, 0, %v1118_v6 }
  0xb5   : > { %v415_v13 = vsel %vm413_vm0, %v414_v62, %v410_v1  ;;  %v1523_v46 = vor.u32 8388608, %v1522_v29  ;;  %v1543_v53 = vor.u32 %v1542_v2, %v1541_v4  ;;  %v5243_v42 = vor.u32 %v1533_v33, %v1532_v26  ;;  %v5260_v26 = vld [vmem:[%s4741_s15 + $0x8] sm:$0xff] }
  0xb6   : > { %v1123_v50 = vadd.f32 0.041655596, %v1122_v30  ;;  %v1130_v44 = vadd.f32 0.008332121, %v1129_v31  ;;  %v416_v11 = vadd.s32 %v415_v13, %v411_v28  ;;  %v5245_v60 = vor.u32 %v1536_v45, %v1535_v48 }
  0xb7   : > { %v1540_v59 = vor.u32 %v1539_v47, %v1538_v22  ;;  %v1546_v14 = vor.u32 %v1545_v0, %v1544_v35  ;;  %vm1550_vm1 = vcmp.lt.s32.totalorder %v5213_v27, 4  ;;  %vm1547_vm2 = vcmp.lt.s32.totalorder %v5213_v27, 1 }
  0xb8   : > { %v1124_v10 = vmul.f32 %v1123_v50, %v1121_v12  ;;  %v1131_v56 = vmul.f32 %v1130_v44, %v1121_v12  ;;  %v417_v17 = vadd.s32 536870912, %v416_v11  ;;  %vm1136_vm3 = vweird.f32 %v4763_v7 }
  0xb9   : > { %v1137_v18 = vand.u32 3, %v5238_v39  ;;  %vm1549_vm4 = vcmp.lt.s32.totalorder %v5213_v27, 3  ;;  %v1556_v5 = vsel %vm1550_vm1, %v1543_v53, 920167782  ;;  %v5255_v6 = vshll.u32 %v1523_v46, 8 }
  0xba   : > { %v1125_v25 = vadd.f32 -0.4999988, %v1124_v10  ;;  %v1132_v9 = vadd.f32 -0.16666654, %v1131_v56  ;;  %v5257_v28 = vshrl.u32 %v417_v17, 30  ;;  %v5263_v1 = vsub.f32 %v4356_v63, %v5260_v26 }
  0xbb   : > { %vm1548_vm6 = vcmp.lt.s32.totalorder %v5213_v27, 2  ;;  %v1555_v48 = vsel %vm1547_vm2, %v5243_v42, %v5245_v60  ;;  %v1559_v22 = vsel %vm1547_vm2, %v5245_v60, %v1540_v59  ;;  %v1557_v33 = vsel %vm1549_vm4, %v1540_v59, %v1556_v5 }
  0xbc   : > { %v1126_v29 = vmul.f32 %v1125_v25, %v1121_v12  ;;  %v1133_v21 = vmul.f32 %v1132_v9, %v1121_v12  ;;  %v1560_v12 = vsel %vm1550_vm1, %v1546_v14, 1326507024  ;;  %v419_v31 = vshll.u32 %v5257_v28, 30 }
  0xbd   : > { %vm1138_vm7 = vcmp.lt.s32.totalorder %v1137_v18, 2  ;;  %vm1139_vm8 = vcmp.eq.s32.totalorder %v1137_v18, 0  ;;  %vm1142_vm9 = vcmp.eq.s32.totalorder %v1137_v18, 2  ;;  %v1561_v35 = vsel %vm1549_vm4, %v1543_v53, %v1560_v12 }
  0xbe   : > { %v5275_v4 = vadd.f32 1.0, %v1126_v29  ;;  %v1134_v30 = vadd.f32 1.0, %v1133_v21  ;;  %v420_v47 = vsub.s32 %v416_v11, %v419_v31  ;;  %v1672_v2 = vand.u32 2139095040, %v5263_v1 }
  0xbf   : > { %v1558_v50 = vsel %vm1548_vm6, %v1555_v48, %v1557_v33  ;;  %v1562_v44 = vsel %vm1548_vm6, %v1559_v22, %v1561_v35  ;;  %v1564_v0 = vand.u32 65535, %v5255_v6  ;;  %v1565_v13 = vshrl.u32 %v5255_v6, 16 }
  0xc0   : > { %v5283_v62 = vmul.f32 %v1134_v30, %v5210_v24  ;;  %v1143_v45 = vxor.u32 2147483648, %v5275_v4  ;;  %vm421_vm10 = vcmp.lt.s32.totalorder %v420_v47, 0  ;;  %v422_v53 = vsub.s32 0, %v420_v47 }
  0xc1   : > { %v1531_v10 = vshrl.u32 %v6695_v32, %v5219_v37  ;;  %v1552_v56 = vsel %vm1550_vm1, %v1540_v59, 2102212464  ;;  %v1566_v11 = vand.u32 65535, %v1562_v44  ;;  %v1567_v14 = vshrl.u32 %v1562_v44, 16 }
  0xc2   : > { %v1140_v46 = vxor.u32 2147483648, %v5283_v62  ;;  %v1144_v24 = vsel %vm1142_vm9, %v1143_v45, %v5283_v62  ;;  %v423_v25 = vsel %vm421_vm10, %v422_v53, %v420_v47  ;;  %v1589_v9 = vshrl.u32 %v1558_v50, 16 }
  0xc3   : > { %v1673_v17 = vshrl.u32 %v1672_v2, 23  ;;  %v424_v29 = vclz %v423_v25  ;;  %v1568_v21 = vmul.u32 %v1566_v11, %v1564_v0  ;;  %v1569_v48 = vmul.u32 %v1567_v14, %v1564_v0 }
  0xc4   : > { %v1141_v63 = vsel %vm1139_vm8, %v5275_v4, %v1140_v46  ;;  %vm320_vm11 = vcmp.lt.s32.totalorder %v5025_v52, 0  ;;  %v1570_v59 = vmul.u32 %v1566_v11, %v1565_v13  ;;  %v412_v22 = vadd.s32 %v5196_v15, %v5198_v54 }
  0xc5   : > { %v1145_v5 = vsel %vm1138_vm7, %v1141_v63, %v1144_v24  ;;  %v4331_v12 = vadd.s32 4294967294, %v424_v29  ;;  %v1572_v30 = vshll.u32 %v1569_v48, 16  ;;  %v1588_v31 = vand.u32 65535, %v1558_v50 }
  0xc6   : > { %v5308_v37 = vsel %vm1136_vm3, nan, %v1145_v5  ;;  %vm5316_vm12 = vcmp.le.f32.partialorder %v318_v58, 0.7853982  ;;  %v442_v33 = vsub.s32 4, %v5257_v28  ;;  %v1551_v35 = vsel %vm1547_vm2, %v1531_v10, %v5243_v42 }
  0xc7   : > { %1459 = vadd.xlane.f32.xlu2 %v5308_v37  ;;  %v1553_v2 = vsel %vm1549_vm4, %v5245_v60, %v1552_v56  ;;  %v1571_v15 = vmul.u32 %v1567_v14, %v1565_v13  ;;  %vm4332_vm13 = vcmp.lt.s32.totalorder %v4331_v12, 0  ;;  %vm1576_vm14 = vc.u32 %v1568_v21, %v1572_v30 }
  0xc8   : > { %v1591_v54 = vmul.u32 %v1589_v9, %v1564_v0  ;;  %v4360_v50 = vadd.s32 4294967169, %v1673_v17  ;;  %v427_v44 = vsel %vm4332_vm13, 0, %v4331_v12  ;;  %v1574_v58 = vshll.u32 %v1570_v59, 16 }
  0xc9   : > { %v1577_v24 = vsel %vm1576_vm14, 1, %v6685_v57  ;;  %v1578_v53 = vadd.s32 %v1572_v30, %v1568_v21  ;;  %v428_v11 = vsub.s32 32, %v427_v44  ;;  %v429_v63 = vshll.u32 %v420_v47, %v427_v44 }
  0xca   : > { %v432_v25 = vsub.s32 4294967266, %v427_v44  ;;  %v1592_v5 = vmul.u32 %v1588_v31, %v1565_v13  ;;  %v5330_v42 = vsel %vm1548_vm6, %v1551_v35, %v1553_v2  ;;  %v1579_v10 = vadd.s32 %v1577_v24, %v1571_v15 }
  0xcb   : > { %v1590_v60 = vmul.u32 %v1588_v31, %v1564_v0  ;;  %v1669_v56 = vand.u32 2147483647, %v5263_v1  ;;  %v430_v14 = vshrl.u32 %v412_v22, %v428_v11  ;;  %v443_v17 = vsel %vm320_vm11, %v442_v33, %v5257_v28 }
  0xcc   : > { %v433_v29 = vadd.s32 127, %v432_v25  ;;  %v1679_v12 = vadd.s32 1, %v4360_v50  ;;  %v1573_v21 = vshrl.u32 %v1569_v48, 16  ;;  %vm1580_vm15 = vc.u32 %v1578_v53, %v1574_v58 }
  0xcd   : > { %v1593_v47 = vmul.u32 %v1589_v9, %v1565_v13  ;;  %v1594_v30 = vshll.u32 %v1591_v54, 16  ;;  %v431_v44 = vor.u32 %v430_v14, %v429_v63  ;;  %v1581_v27 = vsel %vm1580_vm15, 1, %v6685_v57 }
  0xce   : > { %v434_v19 = vshll.u32 %v433_v29, 23  ;;  %v1596_v35 = vshll.u32 %v1592_v5, 16  ;;  %v1575_v2 = vshrl.u32 %v1570_v59, 16  ;;  %v1583_v0 = vadd.s32 %v1581_v27, %v1579_v10 }
  0xcf   : > { %vm1598_vm0 = vc.u32 %v1590_v60, %v1594_v30  ;;  %v1600_v31 = vadd.s32 %v1594_v30, %v1590_v60  ;;  %v438_v15 = vcvt.s32.f32 %v431_v44  ;;  %v445_v24 = vsel %vm5316_vm12, 0, %v443_v17 }
  0xd0   : > { %v435_v22 = vor.u32 4788187, %v434_v19  ;;  %v1599_v28 = vsel %vm1598_vm0, 1, %v6685_v57  ;;  %v1584_v48 = vadd.s32 %v1583_v0, %v1573_v21  ;;  %v1595_v33 = vshrl.u32 %v1591_v54, 16 }
  0xd1   : > { %v1601_v13 = vadd.s32 %v1599_v28, %v1593_v47  ;;  %vm1602_vm1 = vc.u32 %v1600_v31, %v1596_v35  ;;  %v1597_v50 = vshrl.u32 %v1592_v5, 16  ;;  %vm1680_vm2 = vcmp.gt.s32.totalorder %v1679_v12, 0 }
  0xd2   : > { %v436_v9 = vand.u32 2147483647, %v435_v22  ;;  %v1603_v58 = vsel %vm1602_vm1, 1, %v6685_v57  ;;  %v5341_v59 = vadd.s32 %v1584_v48, %v1575_v2  ;;  %v5343_v53 = vadd.s32 %v1600_v31, %v1596_v35 }
  0xd3   : > { %v1605_v19 = vadd.s32 %v1603_v58, %v1601_v13  ;;  %v1681_v11 = vsel %vm1680_vm2, %v1679_v12, 0  ;;  %v1608_v60 = vmul.u32 %v5255_v6, %v5330_v42  ;;  %v1676_v54 = vand.u32 8388607, %v1669_v56 }
  0xd4   : > { %v439_v63 = vmul.f32 %v438_v15, %v436_v9  ;;  %v1683_v25 = vand.u32 31, %v1681_v11  ;;  %v771_v5 = vadd.s32 3, %v445_v24  ;;  %v5349_v29 = vshrl.u32 %v1681_v11, 5 }
  0xd5   : > { %v1606_v10 = vadd.s32 %v1605_v19, %v1595_v33  ;;  %vm1610_vm4 = vc.u32 %v5341_v59, %v5343_v53  ;;  %v5371_v15 = vand.u32 3, %v445_v24  ;;  %vm461_vm15 = vweird.f32 %v5025_v52 }
  0xd6   : > { %v440_v14 = vxor.u32 2147483648, %v439_v63  ;;  %v1684_v17 = vsub.s32 32, %v1683_v25  ;;  %v1689_v12 = vshll.u32 %v6693_v34, %v1683_v25  ;;  %v1692_v47 = vshll.u32 %v6691_v36, %v1683_v25 }
  0xd7   : > { %v1607_v21 = vadd.s32 %v1606_v10, %v1597_v50  ;;  %v1695_v42 = vshll.u32 %v6689_v38, %v1683_v25  ;;  %v1698_v44 = vshll.u32 %v6700_v40, %v1683_v25  ;;  %v5369_v22 = vand.u32 3, %v771_v5 }
  0xd8   : > { %v441_v30 = vsel %vm320_vm11, %v440_v14, %v439_v63  ;;  %v1690_v6 = vshrl.u32 %v6691_v36, %v1684_v17  ;;  %v1693_v2 = vshrl.u32 %v6689_v38, %v1684_v17  ;;  %v1696_v0 = vshrl.u32 %v6700_v40, %v1684_v17 }
  0xd9   : > { %v5363_v27 = vsel %vm5316_vm12, %v5025_v52, %v441_v30  ;;  %v1611_v35 = vadd.s32 1, %v1607_v21  ;;  %v1699_v28 = vshrl.u32 %v6699_v49, %v1684_v17  ;;  %v1686_v33 = vshll.u32 %v6695_v32, %v1683_v25  ;;  %v4371_v30 = vld [vmem:[%s4741_s15 + $0x40] sm:$0xff] }
  0xda   : > { %v446_v31 = vmul.f32 %v5363_v27, %v5363_v27  ;;  %v1687_v18 = vshrl.u32 %v6693_v34, %v1684_v17  ;;  %v5376_v13 = vor.u32 %v1690_v6, %v1689_v12  ;;  %v1694_v11 = vor.u32 %v1693_v2, %v1692_v47 }
  0xdb   : > { %v1612_v48 = vsel %vm1610_vm4, %v1611_v35, %v1607_v21  ;;  %v1700_v19 = vor.u32 %v1699_v28, %v1698_v44  ;;  %v1697_v63 = vor.u32 %v1696_v0, %v1695_v42  ;;  %vm1701_vm6 = vcmp.lt.s32.totalorder %v5349_v29, 1 }
  0xdc   : > { %v447_v9 = vmul.f32 -0.001358992, %v446_v31  ;;  %v454_v50 = vmul.f32 -0.00019511016, %v446_v31  ;;  %v1613_v58 = vadd.s32 %v1612_v48, %v1608_v60  ;;  %vm1704_vm7 = vcmp.lt.s32.totalorder %v5349_v29, 4  ;;  %v5406_v48 = vld [vmem:[%s4741_s15] sm:$0xff] }
  0xdd   : > { %vm1703_vm8 = vcmp.lt.s32.totalorder %v5349_v29, 3  ;;  %vm777_vm9 = vcmp.eq.s32.totalorder %v5369_v22, 2  ;;  %v1677_v25 = vor.u32 8388608, %v1676_v54  ;;  %v1714_v5 = vsel %vm1704_vm7, %v1700_v19, 1326507024 }
  0xde   : > { %v448_v24 = vadd.f32 0.041655596, %v447_v9  ;;  %v455_v10 = vadd.f32 0.008332121, %v454_v50  ;;  %v1614_v14 = vadd.s32 536870912, %v1613_v58  ;;  %v1688_v47 = vor.u32 %v1687_v18, %v1686_v33 }
  0xdf   : > { %vm774_vm10 = vcmp.eq.s32.totalorder %v5369_v22, 0  ;;  %vm464_vm11 = vcmp.eq.s32.totalorder %v5371_v15, 0  ;;  %vm1702_vm12 = vcmp.lt.s32.totalorder %v5349_v29, 2  ;;  %v1710_v6 = vsel %vm1704_vm7, %v1697_v63, 920167782 }
  0xe0   : > { %v449_v60 = vmul.f32 %v448_v24, %v446_v31  ;;  %v456_v21 = vmul.f32 %v455_v10, %v446_v31  ;;  %v5384_v12 = vshrl.u32 %v1614_v14, 30  ;;  %v1713_v54 = vsel %vm1701_vm6, %v5376_v13, %v1694_v11 }
  0xe1   : > { %v1715_v42 = vsel %vm1703_vm8, %v1697_v63, %v1714_v5  ;;  %vm773_vm13 = vcmp.lt.s32.totalorder %v5369_v22, 2  ;;  %vm463_vm14 = vcmp.lt.s32.totalorder %v5371_v15, 2  ;;  %vm467_vm0 = vcmp.eq.s32.totalorder %v5371_v15, 2 }
  0xe2   : > { %v450_v44 = vadd.f32 -0.4999988, %v449_v60  ;;  %v457_v35 = vadd.f32 -0.16666654, %v456_v21  ;;  %v1616_v2 = vshll.u32 %v5384_v12, 30  ;;  %v1685_v0 = vshrl.u32 %v6695_v32, %v1684_v17 }
  0xe3   : > { %v5403_v28 = vshll.u32 %v1677_v25, 8  ;;  %v5409_v33 = vsub.f32 %v4371_v30, %v5406_v48  ;;  %v1716_v19 = vsel %vm1702_vm12, %v1713_v54, %v1715_v42  ;;  %v1709_v63 = vsel %vm1701_vm6, %v1688_v47, %v5376_v13 }
  0xe4   : > { %v451_v18 = vmul.f32 %v450_v44, %v446_v31  ;;  %v458_v9 = vmul.f32 %v457_v35, %v446_v31  ;;  %v5411_v50 = vsub.s32 %v1613_v58, %v1616_v2  ;;  %v1711_v17 = vsel %vm1703_vm8, %v1694_v11, %v1710_v6 }
  0xe5   : > { %v5421_v24 = vshrl.u32 %v5403_v28, 16  ;;  %v1720_v10 = vand.u32 65535, %v1716_v19  ;;  %v1609_v58 = vadd.s32 %v5343_v53, %v5341_v59  ;;  %v5429_v5 = vsel %vm1701_vm6, %v1685_v0, %v1688_v47 }
  0xe6   : > { %v452_v14 = vadd.f32 1.0, %v451_v18  ;;  %v459_v25 = vadd.f32 1.0, %v458_v9  ;;  %vm1618_vm1 = vcmp.lt.s32.totalorder %v5411_v50, 0  ;;  %v1619_v31 = vsub.s32 0, %v5411_v50 }
  0xe7   : > { %v5432_v60 = vand.u32 65535, %v5403_v28  ;;  %v1721_v21 = vshrl.u32 %v1716_v19, 16  ;;  %v5438_v42 = vsel %vm1702_vm12, %v1709_v63, %v1711_v17  ;;  %v5442_v59 = vsel %vm1704_vm7, %v1694_v11, 2102212464 }
  0xe8   : > { %v460_v30 = vmul.f32 %v459_v25, %v5363_v27  ;;  %v468_v6 = vxor.u32 2147483648, %v452_v14  ;;  %v1620_v54 = vsel %vm1618_vm1, %v1619_v31, %v5411_v50  ;;  %v2194_v47 = vand.u32 2139095040, %v5409_v33 }
  0xe9   : > { %v1621_v44 = vclz %v1620_v54  ;;  %v1722_v53 = vmul.u32 %v1720_v10, %v5432_v60  ;;  %v5451_v0 = vmul.u32 %v1720_v10, %v5421_v24  ;;  %v5454_v9 = vmul.u32 %v1721_v21, %v5432_v60 }
  0xea   : > { %v465_v35 = vxor.u32 2147483648, %v460_v30  ;;  %v779_v27 = vsel %vm777_vm9, %v468_v6, %v460_v30  ;;  %v469_v2 = vsel %vm467_vm0, %v468_v6, %v460_v30  ;;  %v1742_v11 = vand.u32 65535, %v5438_v42 }
  0xeb   : > { %v4358_v18 = vadd.s32 4294967294, %v1621_v44  ;;  %v1743_v19 = vshrl.u32 %v5438_v42, 16  ;;  %v1446_v25 = vadd.s32 3, %v5238_v39  ;;  %v1291_v31 = vadd.s32 3, %v4982_v43 }
  0xec   : > { %v776_v63 = vsel %vm774_vm10, %v452_v14, %v465_v35  ;;  %v466_v17 = vsel %vm464_vm11, %v452_v14, %v465_v35  ;;  %v1725_v6 = vmul.u32 %v1721_v21, %v5421_v24  ;;  %v1728_v43 = vshll.u32 %v5451_v0, 16 }
  0xed   : > { %v780_v10 = vsel %vm773_vm13, %v776_v63, %v779_v27  ;;  %v470_v30 = vsel %vm463_vm14, %v466_v17, %v469_v2  ;;  %vm4359_vm2 = vcmp.lt.s32.totalorder %v4358_v18, 0  ;;  %v1447_v21 = vand.u32 3, %v1446_v25 }
  0xee   : > { %v5471_v54 = vsel %vm461_vm15, nan, %v780_v10  ;;  %v5475_v14 = vsel %vm461_vm15, nan, %v470_v30  ;;  %v1624_v39 = vsel %vm4359_vm2, 0, %v4358_v18  ;;  %v1292_v44 = vand.u32 3, %v1291_v31 }
  0xef   : > { %788 = vadd.xlane.f32.xlu1 %v5471_v54  ;;  %784 = vadd.xlane.f32.xlu0 %v5475_v14  ;;  %v1625_v22 = vsub.s32 32, %v1624_v39  ;;  %v1626_v15 = vshll.u32 %v5411_v50, %v1624_v39  ;;  %v1629_v42 = vsub.s32 4294967266, %v1624_v39  ;;  %v1726_v35 = vshll.u32 %v5454_v9, 16 }
  0xf0   : > { %v1727_v27 = vshrl.u32 %v5454_v9, 16  ;;  %v1744_v52 = vmul.u32 %v1742_v11, %v5432_v60  ;;  %vm1448_vm4 = vcmp.lt.s32.totalorder %v1447_v21, 2  ;;  %vm1449_vm6 = vcmp.eq.s32.totalorder %v1447_v21, 0 }
  0xf1   : > { %v1627_v2 = vshrl.u32 %v1609_v58, %v1625_v22  ;;  %v1630_v18 = vadd.s32 127, %v1629_v42  ;;  %vm1517_vm7 = vcmp.lt.s32.totalorder %v5096_v20, 0  ;;  %v1451_v63 = vsel %vm1449_vm6, %v5275_v4, %v1140_v46 }
  0xf2   : > { %vm1452_vm9 = vcmp.eq.s32.totalorder %v1447_v21, 2  ;;  %vm1293_vm10 = vcmp.lt.s32.totalorder %v1292_v44, 2  ;;  %vm1294_vm11 = vcmp.eq.s32.totalorder %v1292_v44, 0  ;;  %vm5490_vm13 = vcmp.le.f32.partialorder %v1515_v55, 0.7853982 }
  0xf3   : > { %v1628_v9 = vor.u32 %v1627_v2, %v1626_v15  ;;  %v1631_v58 = vshll.u32 %v1630_v18, 23  ;;  %v1454_v17 = vsel %vm1452_vm9, %v1143_v45, %v5283_v62  ;;  %v1296_v25 = vsel %vm1294_vm11, %v5035_v16, %v986_v8 }
  0xf4   : > { %v1455_v46 = vsel %vm1448_vm4, %v1451_v63, %v1454_v17  ;;  %vm1297_vm14 = vcmp.eq.s32.totalorder %v1292_v44, 2  ;;  %vm1730_vm15 = vc.u32 %v1722_v53, %v1726_v35  ;;  %v1732_v31 = vadd.s32 %v1726_v35, %v1722_v53 }
  0xf5   : > { %v1632_v10 = vor.u32 4788187, %v1631_v58  ;;  %v1635_v30 = vcvt.s32.f32 %v1628_v9  ;;  %v5502_v55 = vsel %vm1136_vm3, nan, %v1455_v46  ;;  %v6717_v39 = vxor.u32 2147483648, %v5035_v16 }
  0xf6   : > { %v1731_v62 = vsel %vm1730_vm15, 1, %v6685_v57  ;;  %vm1734_vm0 = vc.u32 %v1732_v31, %v1728_v43  ;;  %v1745_v8 = vmul.u32 %v1743_v19, %v5432_v60  ;;  %v1707_v16 = vsel %vm1703_vm8, %v5376_v13, %v5442_v59 }
  0xf7   : > { %v1299_v22 = vsel %vm1297_vm14, %v6717_v39, %v5040_v23  ;;  %v1633_v45 = vand.u32 2147483647, %v1632_v10  ;;  %1463 = vadd.xlane.f32.xlu1 %v5502_v55  ;;  %v1733_v7 = vadd.s32 %v1731_v62, %v1725_v6  ;;  %v1735_v15 = vsel %vm1734_vm0, 1, %v6685_v57 }
  0xf8   : > { %v1300_v4 = vsel %vm1293_vm10, %v1296_v25, %v1299_v22  ;;  %v1746_v23 = vmul.u32 %v1742_v11, %v5421_v24  ;;  %v1747_v60 = vmul.u32 %v1743_v19, %v5421_v24  ;;  %v1748_v43 = vshll.u32 %v1745_v8, 16 }
  0xf9   : > { %v5512_v53 = vsel %vm982_vm5, nan, %v1300_v4  ;;  %v1636_v42 = vmul.f32 %v1635_v30, %v1633_v45  ;;  %v1639_v3 = vsub.s32 4, %v5384_v12  ;;  %v1737_v21 = vadd.s32 %v1735_v15, %v1733_v7 }
  0xfa   : > { %1461 = vadd.xlane.f32.xlu0 %v5512_v53  ;;  %v2195_v6 = vshrl.u32 %v2194_v47, 23  ;;  %v1729_v44 = vshrl.u32 %v5451_v0, 16  ;;  %v1750_v35 = vshll.u32 %v1746_v23, 16  ;;  %vm1752_vm5 = vc.u32 %v1744_v52, %v1748_v43 }
  0xfb   : > { %v1754_v2 = vadd.s32 %v1748_v43, %v1744_v52  ;;  %v1637_v18 = vxor.u32 2147483648, %v1636_v42  ;;  %v1738_v63 = vadd.s32 %v1737_v21, %v1727_v27  ;;  %v1753_v13 = vsel %vm1752_vm5, 1, %v6685_v57 }
  0xfc   : > { %v4373_v59 = vadd.s32 4294967169, %v2195_v6  ;;  %v1749_v11 = vshrl.u32 %v1745_v8, 16  ;;  %v1755_v24 = vadd.s32 %v1753_v13, %v1747_v60  ;;  %v1708_v47 = vsel %vm1702_vm12, %v5429_v5, %v1707_v16 }
  0xfd   : > { %vm1756_vm3 = vc.u32 %v1754_v2, %v1750_v35  ;;  %v1638_v19 = vsel %vm1517_vm7, %v1637_v18, %v1636_v42  ;;  %v1640_v27 = vsel %vm1517_vm7, %v1639_v3, %v5384_v12  ;;  %v1751_v58 = vshrl.u32 %v1746_v23, 16 }
  0xfe   : > { %v1757_v0 = vsel %vm1756_vm3, 1, %v6685_v57  ;;  %v2201_v9 = vadd.s32 1, %v4373_v59  ;;  %v1641_v52 = vsel %vm5490_vm13, %v5096_v20, %v1638_v19  ;;  %v5539_v46 = vadd.s32 %v1738_v63, %v1729_v44 }
  0xff   : > { %v1759_v17 = vadd.s32 %v1757_v0, %v1755_v24  ;;  %v1643_v25 = vmul.f32 %v1641_v52, %v1641_v52  ;;  %v5541_v31 = vadd.s32 %v1754_v2, %v1750_v35  ;;  %v2191_v5 = vand.u32 2147483647, %v5409_v33 }
 0x100   : > { %vm2202_vm8 = vcmp.gt.s32.totalorder %v2201_v9, 0  ;;  %v5546_v30 = vsel %vm5490_vm13, 0, %v1640_v27  ;;  %v1762_v62 = vmul.u32 %v5403_v28, %v1708_v47  ;;  %vm1658_vm7 = vweird.f32 %v5096_v20 }
 0x101   : > { %v1760_v29 = vadd.s32 %v1759_v17, %v1749_v11  ;;  %v2203_v10 = vsel %vm2202_vm8, %v2201_v9, 0  ;;  %v1644_v12 = vmul.f32 -0.001358992, %v1643_v25  ;;  %v1651_v39 = vmul.f32 -0.00019511016, %v1643_v25 }
 0x102   : > { %v2205_v22 = vand.u32 31, %v2203_v10  ;;  %vm1764_vm12 = vc.u32 %v5539_v46, %v5541_v31  ;;  %v1659_v15 = vand.u32 3, %v5546_v30  ;;  %v2198_v50 = vand.u32 8388607, %v2191_v5 }
 0x103   : > { %v1761_v4 = vadd.s32 %v1760_v29, %v1751_v58  ;;  %v1645_v8 = vadd.f32 0.041655596, %v1644_v12  ;;  %v1652_v45 = vadd.f32 0.008332121, %v1651_v39  ;;  %v5557_v42 = vshrl.u32 %v2203_v10, 5 }
 0x104   : > { %v5551_v7 = vsub.s32 32, %v2205_v22  ;;  %v2217_v23 = vshll.u32 %v6689_v38, %v2205_v22  ;;  %v2208_v28 = vshll.u32 %v6695_v32, %v2205_v22  ;;  %v2211_v6 = vshll.u32 %v6693_v34, %v2205_v22 }
 0x105   : > { %v1765_v16 = vadd.s32 1, %v1761_v4  ;;  %v1646_v60 = vmul.f32 %v1645_v8, %v1643_v25  ;;  %v1653_v43 = vmul.f32 %v1652_v45, %v1643_v25  ;;  %v2214_v63 = vshll.u32 %v6691_v36, %v2205_v22 }
 0x106   : > { %v2209_v21 = vshrl.u32 %v6693_v34, %v5551_v7  ;;  %v2218_v44 = vshrl.u32 %v6700_v40, %v5551_v7  ;;  %v2212_v13 = vshrl.u32 %v6691_v36, %v5551_v7  ;;  %v2215_v59 = vshrl.u32 %v6689_v38, %v5551_v7 }
 0x107   : > { %v1766_v3 = vsel %vm1764_vm12, %v1765_v16, %v1761_v4  ;;  %v1647_v35 = vadd.f32 -0.4999988, %v1646_v60  ;;  %v1654_v2 = vadd.f32 -0.16666654, %v1653_v43  ;;  %v2220_v24 = vshll.u32 %v6700_v40, %v2205_v22  ;;  %v4372_v60 = vld [vmem:[%s4741_s15 + $0x48] sm:$0xff] }
 0x108   : > { %v1767_v18 = vadd.s32 %v1766_v3, %v1762_v62  ;;  %v2219_v11 = vor.u32 %v2218_v44, %v2217_v23  ;;  %v2221_v9 = vshrl.u32 %v6699_v49, %v5551_v7  ;;  %vm1664_vm1 = vcmp.eq.s32.totalorder %v1659_v15, 2 }
 0x109   : > { %v1648_v19 = vmul.f32 %v1647_v35, %v1643_v25  ;;  %v1655_v47 = vmul.f32 %v1654_v2, %v1643_v25  ;;  %v2199_v27 = vor.u32 8388608, %v2198_v50  ;;  %v2210_v58 = vor.u32 %v2209_v21, %v2208_v28 }
 0x10a   : > { %v1768_v0 = vadd.s32 536870912, %v1767_v18  ;;  %vm2226_vm2 = vcmp.lt.s32.totalorder %v5557_v42, 4  ;;  %v2222_v12 = vor.u32 %v2221_v9, %v2220_v24  ;;  %v5576_v39 = vor.u32 %v2212_v13, %v2211_v6 }
 0x10b   : > { %v5574_v17 = vadd.f32 1.0, %v1648_v19  ;;  %v1656_v29 = vadd.f32 1.0, %v1655_v47  ;;  %v2216_v22 = vor.u32 %v2215_v59, %v2214_v63  ;;  %vm2223_vm4 = vcmp.lt.s32.totalorder %v5557_v42, 1 }
 0x10c   : > { %v1769_v10 = vshrl.u32 %v1768_v0, 30  ;;  %vm2225_vm6 = vcmp.lt.s32.totalorder %v5557_v42, 3  ;;  %v2232_v8 = vsel %vm2226_vm2, %v2219_v11, 920167782  ;;  %vm1660_vm9 = vcmp.lt.s32.totalorder %v1659_v15, 2 }
 0x10d   : > { %v5580_v25 = vmul.f32 %v1656_v29, %v1641_v52  ;;  %v1665_v4 = vxor.u32 2147483648, %v5574_v17  ;;  %vm1661_vm10 = vcmp.eq.s32.totalorder %v1659_v15, 0  ;;  %v5586_v45 = vshll.u32 %v2199_v27, 8 }
 0x10e   : > { %v1770_v62 = vshll.u32 %v1769_v10, 30  ;;  %v2236_v23 = vsel %vm2226_vm2, %v2222_v12, 1326507024  ;;  %vm2224_vm11 = vcmp.lt.s32.totalorder %v5557_v42, 2  ;;  %v2231_v43 = vsel %vm2223_vm4, %v2210_v58, %v5576_v39 }
 0x10f   : > { %v1662_v16 = vxor.u32 2147483648, %v5580_v25  ;;  %v1666_v52 = vsel %vm1664_vm1, %v1665_v4, %v5580_v25  ;;  %v2233_v28 = vsel %vm2225_vm6, %v2216_v22, %v2232_v8  ;;  %v2235_v3 = vsel %vm2223_vm4, %v5576_v39, %v2216_v22 }
 0x110   : > { %v1771_v50 = vsub.s32 %v1767_v18, %v1770_v62  ;;  %v1793_v44 = vsub.s32 4, %v1769_v10  ;;  %v2237_v2 = vsel %vm2225_vm6, %v2219_v11, %v2236_v23  ;;  %v2240_v18 = vand.u32 65535, %v5586_v45 }
 0x111   : > { %v1663_v21 = vsel %vm1661_vm10, %v5574_v17, %v1662_v16  ;;  %v5611_v63 = vsub.f32 %v4372_v60, %v5260_v26  ;;  %v2234_v24 = vsel %vm2224_vm11, %v2231_v43, %v2233_v28  ;;  %v2238_v15 = vsel %vm2224_vm11, %v2235_v3, %v2237_v2 }
 0x112   : > { %vm1772_vm13 = vcmp.lt.s32.totalorder %v1771_v50, 0  ;;  %v1773_v6 = vsub.s32 0, %v1771_v50  ;;  %v1667_v35 = vsel %vm1660_vm9, %v1663_v21, %v1666_v52  ;;  %vm1671_vm14 = vcmp.lt.s32.totalorder %v5263_v1, 0 }
 0x113   : > { %v5615_v13 = vsel %vm1658_vm7, nan, %v1667_v35  ;;  %v2207_v26 = vshrl.u32 %v6695_v32, %v5551_v7  ;;  %v2243_v19 = vshrl.u32 %v2238_v15, 16  ;;  %v1794_v47 = vsel %vm1671_vm14, %v1793_v44, %v1769_v10 }
 0x114   : > { %v1774_v59 = vsel %vm1772_vm13, %v1773_v6, %v1771_v50  ;;  %2133 = vadd.xlane.f32.xlu2 %v5615_v13  ;;  %v2241_v0 = vshrl.u32 %v5586_v45, 16  ;;  %v2242_v9 = vand.u32 65535, %v2238_v15  ;;  %v2264_v27 = vand.u32 65535, %v2234_v24 }
 0x115   : > { %v1775_v11 = vclz %v1774_v59  ;;  %vm5630_vm15 = vcmp.le.f32.partialorder %v1669_v56, 0.7853982  ;;  %v1763_v12 = vadd.s32 %v5541_v31, %v5539_v46  ;;  %v2265_v8 = vshrl.u32 %v2234_v24, 16 }
 0x116   : > { %v1967_v7 = vadd.s32 3, %v5546_v30  ;;  %v2245_v52 = vmul.u32 %v2243_v19, %v2240_v18  ;;  %v2345_v10 = vand.u32 2147483647, %v5611_v63  ;;  %v2348_v23 = vand.u32 2139095040, %v5611_v63 }
 0x117   : > { %v4361_v62 = vadd.s32 4294967294, %v1775_v11  ;;  %v5641_v60 = vsel %vm5630_vm15, 0, %v1794_v47  ;;  %v5645_v56 = vsel %vm2223_vm4, %v2207_v26, %v2210_v58  ;;  %v2228_v46 = vsel %vm2226_vm2, %v2216_v22, 2102212464 }
 0x118   : > { %v1968_v43 = vand.u32 3, %v1967_v7  ;;  %v2246_v30 = vmul.u32 %v2242_v9, %v2241_v0  ;;  %v2266_v28 = vmul.u32 %v2264_v27, %v2240_v18  ;;  %v2267_v44 = vmul.u32 %v2265_v8, %v2240_v18 }
 0x119   : > { %vm4362_vm0 = vcmp.lt.s32.totalorder %v4361_v62, 0  ;;  %v2244_v35 = vmul.u32 %v2242_v9, %v2240_v18  ;;  %v2248_v2 = vshll.u32 %v2245_v52, 16  ;;  %v2268_v59 = vmul.u32 %v2264_v27, %v2241_v0 }
 0x11a   : > { %v1778_v31 = vsel %vm4362_vm0, 0, %v4361_v62  ;;  %vm1970_vm5 = vcmp.eq.s32.totalorder %v1968_v43, 0  ;;  %vm1969_vm3 = vcmp.lt.s32.totalorder %v1968_v43, 2  ;;  %vm1973_vm8 = vcmp.eq.s32.totalorder %v1968_v43, 2 }
 0x11b   : > { %v1779_v3 = vsub.s32 32, %v1778_v31  ;;  %v1780_v21 = vshll.u32 %v1771_v50, %v1778_v31  ;;  %v1783_v6 = vsub.s32 4294967266, %v1778_v31  ;;  %v1972_v58 = vsel %vm1970_vm5, %v5574_v17, %v1662_v16 }
 0x11c   : > { %v2247_v11 = vmul.u32 %v2243_v19, %v2241_v0  ;;  %v2250_v22 = vshll.u32 %v2246_v30, 16  ;;  %v2269_v26 = vmul.u32 %v2265_v8, %v2241_v0  ;;  %v1975_v50 = vsel %vm1973_vm8, %v1665_v4, %v5580_v25 }
 0x11d   : > { %v1781_v24 = vshrl.u32 %v1763_v12, %v1779_v3  ;;  %v1784_v15 = vadd.s32 127, %v1783_v6  ;;  %v2270_v7 = vshll.u32 %v2267_v44, 16  ;;  %v1976_v31 = vsel %vm1969_vm3, %v1972_v58, %v1975_v50 }
 0x11e   : > { %vm2252_vm12 = vc.u32 %v2244_v35, %v2248_v2  ;;  %v2254_v18 = vadd.s32 %v2248_v2, %v2244_v35  ;;  %v2349_v9 = vshrl.u32 %v2348_v23, 23  ;;  %v5655_v16 = vsel %vm1658_vm7, nan, %v1976_v31 }
 0x11f   : > { %v1782_v47 = vor.u32 %v1781_v24, %v1780_v21  ;;  %v1785_v62 = vshll.u32 %v1784_v15, 23  ;;  %v2253_v19 = vsel %vm2252_vm12, 1, %v6685_v57  ;;  %2137 = vadd.xlane.f32.xlu1 %v5655_v16  ;;  %v2249_v0 = vshrl.u32 %v2245_v52, 16 }
 0x120   : > { %v2255_v8 = vadd.s32 %v2253_v19, %v2247_v11  ;;  %vm2256_vm1 = vc.u32 %v2254_v18, %v2250_v22  ;;  %v2272_v17 = vshll.u32 %v2268_v59, 16  ;;  %vm2274_vm2 = vc.u32 %v2266_v28, %v2270_v7 }
 0x121   : > { %v1786_v27 = vor.u32 4788187, %v1785_v62  ;;  %v1789_v12 = vcvt.s32.f32 %v1782_v47  ;;  %v2257_v4 = vsel %vm2256_vm1, 1, %v6685_v57  ;;  %v2276_v43 = vadd.s32 %v2270_v7, %v2266_v28 }
 0x122   : > { %v2251_v23 = vshrl.u32 %v2246_v30, 16  ;;  %v2259_v3 = vadd.s32 %v2257_v4, %v2255_v8  ;;  %v2275_v21 = vsel %vm2274_vm2, 1, %v6685_v57  ;;  %v4376_v20 = vadd.s32 4294967169, %v2349_v9 }
 0x123   : > { %v1787_v25 = vand.u32 2147483647, %v1786_v27  ;;  %v2271_v35 = vshrl.u32 %v2267_v44, 16  ;;  %v2277_v2 = vadd.s32 %v2275_v21, %v2269_v26  ;;  %vm2278_vm4 = vc.u32 %v2276_v43, %v2272_v17 }
 0x124   : > { %v2229_v52 = vsel %vm2225_vm6, %v5576_v39, %v2228_v46  ;;  %v2260_v24 = vadd.s32 %v2259_v3, %v2249_v0  ;;  %v2279_v15 = vsel %vm2278_vm4, 1, %v6685_v57  ;;  %v2355_v58 = vadd.s32 1, %v4376_v20 }
 0x125   : > { %v1790_v6 = vmul.f32 %v1789_v12, %v1787_v25  ;;  %v2273_v22 = vshrl.u32 %v2268_v59, 16  ;;  %v2281_v28 = vadd.s32 %v2279_v15, %v2277_v2  ;;  %v2122_v30 = vadd.s32 3, %v5641_v60 }
 0x126   : > { %v5666_v47 = vadd.s32 %v2260_v24, %v2251_v23  ;;  %v5668_v62 = vadd.s32 %v2276_v43, %v2272_v17  ;;  %vm2356_vm7 = vcmp.gt.s32.totalorder %v2355_v58, 0  ;;  %v2230_v39 = vsel %vm2224_vm11, %v5645_v56, %v2229_v52 }
 0x127   : > { %v1791_v11 = vxor.u32 2147483648, %v1790_v6  ;;  %v2282_v46 = vadd.s32 %v2281_v28, %v2271_v35  ;;  %v2357_v26 = vsel %vm2356_vm7, %v2355_v58, 0  ;;  %v2352_v50 = vand.u32 8388607, %v2345_v10 }
 0x128   : > { %v2359_v18 = vand.u32 31, %v2357_v26  ;;  %v5680_v9 = vand.u32 3, %v2122_v30  ;;  %v2284_v27 = vmul.u32 %v5586_v45, %v2230_v39  ;;  %vm2286_vm6 = vc.u32 %v5666_v47, %v5668_v62 }
 0x129   : > { %v1792_v44 = vsel %vm1671_vm14, %v1791_v11, %v1790_v6  ;;  %v2283_v31 = vadd.s32 %v2282_v46, %v2273_v22  ;;  %v5685_v42 = vshrl.u32 %v2357_v26, 5  ;;  %v5690_v0 = vand.u32 3, %v5641_v60 }
 0x12a   : > { %v1795_v59 = vsel %vm5630_vm15, %v5263_v1, %v1792_v44  ;;  %v5687_v29 = vsub.s32 32, %v2359_v18  ;;  %v2353_v8 = vor.u32 8388608, %v2352_v50  ;;  %v2362_v17 = vshll.u32 %v6695_v32, %v2359_v18 }
 0x12b   : > { %v1797_v7 = vmul.f32 %v1795_v59, %v1795_v59  ;;  %v2287_v19 = vadd.s32 1, %v2283_v31  ;;  %v2365_v25 = vshll.u32 %v6693_v34, %v2359_v18  ;;  %v2368_v23 = vshll.u32 %v6691_v36, %v2359_v18 }
 0x12c   : > { %v2363_v21 = vshrl.u32 %v6693_v34, %v5687_v29  ;;  %v2366_v20 = vshrl.u32 %v6691_v36, %v5687_v29  ;;  %v2371_v60 = vshll.u32 %v6689_v38, %v2359_v18  ;;  %v2369_v2 = vshrl.u32 %v6689_v38, %v5687_v29 }
 0x12d   : > { %v1798_v56 = vmul.f32 -0.001358992, %v1797_v7  ;;  %v1805_v12 = vmul.f32 -0.00019511016, %v1797_v7  ;;  %v2288_v43 = vsel %vm2286_vm6, %v2287_v19, %v2283_v31  ;;  %vm2377_vm9 = vcmp.lt.s32.totalorder %v5685_v42, 1 }
 0x12e   : > { %v2289_v3 = vadd.s32 %v2288_v43, %v2284_v27  ;;  %vm2125_vm10 = vcmp.eq.s32.totalorder %v5680_v9, 0  ;;  %v5704_v24 = vor.u32 %v2363_v21, %v2362_v17  ;;  %v2372_v15 = vshrl.u32 %v6700_v40, %v5687_v29 }
 0x12f   : > { %v1799_v4 = vadd.f32 0.041655596, %v1798_v56  ;;  %v1806_v45 = vadd.f32 0.008332121, %v1805_v12  ;;  %vm2380_vm11 = vcmp.lt.s32.totalorder %v5685_v42, 4  ;;  %vm2124_vm13 = vcmp.lt.s32.totalorder %v5680_v9, 2 }
 0x130   : > { %v2290_v52 = vadd.s32 536870912, %v2289_v3  ;;  %v5710_v22 = vor.u32 %v2366_v20, %v2365_v25  ;;  %v2374_v28 = vshll.u32 %v6700_v40, %v2359_v18  ;;  %vm1812_vm14 = vweird.f32 %v5263_v1 }
 0x131   : > { %v1800_v6 = vmul.f32 %v1799_v4, %v1797_v7  ;;  %v1807_v35 = vmul.f32 %v1806_v45, %v1797_v7  ;;  %v5716_v44 = vor.u32 %v2369_v2, %v2368_v23  ;;  %v2373_v39 = vor.u32 %v2372_v15, %v2371_v60 }
 0x132   : > { %v5714_v30 = vshrl.u32 %v2290_v52, 30  ;;  %v2375_v46 = vshrl.u32 %v6699_v49, %v5687_v29  ;;  %vm2128_vm15 = vcmp.eq.s32.totalorder %v5680_v9, 2  ;;  %vm2379_vm0 = vcmp.lt.s32.totalorder %v5685_v42, 3 }
 0x133   : > { %v1801_v58 = vadd.f32 -0.4999988, %v1800_v6  ;;  %v1808_v11 = vadd.f32 -0.16666654, %v1807_v35  ;;  %vm1814_vm5 = vcmp.lt.s32.totalorder %v5690_v0, 2  ;;  %vm2378_vm3 = vcmp.lt.s32.totalorder %v5685_v42, 2 }
 0x134   : > { %v2292_v31 = vshll.u32 %v5714_v30, 30  ;;  %v2376_v18 = vor.u32 %v2375_v46, %v2374_v28  ;;  %v2385_v12 = vsel %vm2377_vm9, %v5704_v24, %v5710_v22  ;;  %vm1818_vm8 = vcmp.eq.s32.totalorder %v5690_v0, 2 }
 0x135   : > { %v1802_v26 = vmul.f32 %v1801_v58, %v1797_v7  ;;  %v1809_v50 = vmul.f32 %v1808_v11, %v1797_v7  ;;  %v2386_v7 = vsel %vm2380_vm11, %v2373_v39, 920167782  ;;  %v5737_v25 = vshll.u32 %v2353_v8, 8 }
 0x136   : > { %v5732_v19 = vsub.s32 %v2289_v3, %v2292_v31  ;;  %v2387_v17 = vsel %vm2379_vm0, %v5716_v44, %v2386_v7  ;;  %vm1815_vm12 = vcmp.eq.s32.totalorder %v5690_v0, 0  ;;  %v2389_v43 = vsel %vm2377_vm9, %v5710_v22, %v5716_v44  ;;  %v4388_v31 = vld [vmem:[%s4741_s15 + $0x58] sm:$0xff] }
 0x137   : > { %v1803_v27 = vadd.f32 1.0, %v1802_v26  ;;  %v1810_v56 = vadd.f32 1.0, %v1809_v50  ;;  %v2388_v3 = vsel %vm2378_vm3, %v2385_v12, %v2387_v17  ;;  %v2390_v8 = vsel %vm2380_vm11, %v2376_v18, 1326507024 }
 0x138   : > { %vm2294_vm1 = vcmp.lt.s32.totalorder %v5732_v19, 0  ;;  %v2295_v23 = vsub.s32 0, %v5732_v19  ;;  %v2391_v60 = vsel %vm2379_vm0, %v2373_v39, %v2390_v8  ;;  %v2394_v2 = vand.u32 65535, %v5737_v25 }
 0x139   : > { %v1811_v4 = vmul.f32 %v1810_v56, %v1795_v59  ;;  %v1819_v45 = vxor.u32 2147483648, %v1803_v27  ;;  %v2392_v35 = vsel %vm2378_vm3, %v2389_v43, %v2391_v60  ;;  %v2395_v52 = vshrl.u32 %v5737_v25, 16 }
 0x13a   : > { %v2296_v6 = vsel %vm2294_vm1, %v2295_v23, %v5732_v19  ;;  %v2396_v28 = vand.u32 65535, %v2392_v35  ;;  %v2397_v26 = vshrl.u32 %v2392_v35, 16  ;;  %v2419_v50 = vshrl.u32 %v2388_v3, 16 }
 0x13b   : > { %v1816_v21 = vxor.u32 2147483648, %v1811_v4  ;;  %v2130_v59 = vsel %vm2128_vm15, %v1819_v45, %v1811_v4  ;;  %v1820_v20 = vsel %vm1818_vm8, %v1819_v45, %v1811_v4  ;;  %v2297_v11 = vclz %v2296_v6  ;;  %v5780_v4 = vld [vmem:[%s4741_s15 + $0x8] sm:$0xff] }
 0x13c   : > { %vm2193_vm2 = vcmp.lt.s32.totalorder %v5409_v33, 0  ;;  %v2399_v9 = vmul.u32 %v2397_v26, %v2394_v2  ;;  %v2400_v0 = vmul.u32 %v2396_v28, %v2395_v52  ;;  %v2418_v12 = vand.u32 65535, %v2388_v3 }
 0x13d   : > { %v2127_v15 = vsel %vm2125_vm10, %v1803_v27, %v1816_v21  ;;  %v1817_v58 = vsel %vm1815_vm12, %v1803_v27, %v1816_v21  ;;  %v4374_v27 = vadd.s32 4294967294, %v2297_v11  ;;  %v2285_v7 = vadd.s32 %v5668_v62, %v5666_v47 }
 0x13e   : > { %v2131_v46 = vsel %vm2124_vm13, %v2127_v15, %v2130_v59  ;;  %v1821_v39 = vsel %vm1814_vm5, %v1817_v58, %v1820_v20  ;;  %v2398_v17 = vmul.u32 %v2396_v28, %v2394_v2  ;;  %v5783_v1 = vsub.f32 %v4388_v31, %v5780_v4 }
 0x13f   : > { %v5768_v18 = vsel %vm1812_vm14, nan, %v2131_v46  ;;  %v5772_v56 = vsel %vm1812_vm14, nan, %v1821_v39  ;;  %vm4375_vm4 = vcmp.lt.s32.totalorder %v4374_v27, 0  ;;  %vm5787_vm7 = vcmp.le.f32.partialorder %v2191_v5, 0.7853982 }
 0x140   : > { %2139 = vadd.xlane.f32.xlu2 %v5768_v18  ;;  %2135 = vadd.xlane.f32.xlu0 %v5772_v56  ;;  %v2300_v43 = vsel %vm4375_vm4, 0, %v4374_v27  ;;  %v2401_v23 = vmul.u32 %v2397_v26, %v2395_v52  ;;  %v2402_v8 = vshll.u32 %v2399_v9, 16  ;;  %v2421_v3 = vmul.u32 %v2419_v50, %v2394_v2 }
 0x141   : > { %v2301_v21 = vsub.s32 32, %v2300_v43  ;;  %v2302_v47 = vshll.u32 %v5732_v19, %v2300_v43  ;;  %v2305_v62 = vsub.s32 4294967266, %v2300_v43  ;;  %v2404_v59 = vshll.u32 %v2400_v0, 16 }
 0x142   : > { %v2315_v20 = vsub.s32 4, %v5714_v30  ;;  %v2361_v60 = vshrl.u32 %v6695_v32, %v5687_v29  ;;  %v2420_v6 = vmul.u32 %v2418_v12, %v2394_v2  ;;  %v2422_v35 = vmul.u32 %v2418_v12, %v2395_v52 }
 0x143   : > { %v2303_v5 = vshrl.u32 %v2285_v7, %v2301_v21  ;;  %v2306_v15 = vadd.s32 127, %v2305_v62  ;;  %vm2406_vm6 = vc.u32 %v2398_v17, %v2402_v8  ;;  %v2408_v58 = vadd.s32 %v2402_v8, %v2398_v17 }
 0x144   : > { %v2403_v11 = vshrl.u32 %v2399_v9, 16  ;;  %v2407_v28 = vsel %vm2406_vm6, 1, %v6685_v57  ;;  %v2423_v46 = vmul.u32 %v2419_v50, %v2395_v52  ;;  %v2424_v39 = vshll.u32 %v2421_v3, 16 }
 0x145   : > { %v2304_v26 = vor.u32 %v2303_v5, %v2302_v47  ;;  %v2307_v19 = vshll.u32 %v2306_v15, 23  ;;  %v2409_v31 = vadd.s32 %v2407_v28, %v2401_v23  ;;  %vm2410_vm10 = vc.u32 %v2408_v58, %v2404_v59 }
 0x146   : > { %v2316_v27 = vsel %vm2193_vm2, %v2315_v20, %v5714_v30  ;;  %v2411_v29 = vsel %vm2410_vm10, 1, %v6685_v57  ;;  %v2426_v2 = vshll.u32 %v2422_v35, 16  ;;  %vm2428_vm13 = vc.u32 %v2420_v6, %v2424_v39 }
 0x147   : > { %v2308_v12 = vor.u32 4788187, %v2307_v19  ;;  %v2311_v7 = vcvt.s32.f32 %v2304_v26  ;;  %v2413_v17 = vadd.s32 %v2411_v29, %v2409_v31  ;;  %v2429_v9 = vsel %vm2428_vm13, 1, %v6685_v57  ;;  %v4387_v31 = vld [vmem:[%s4741_s15 + $0x50] sm:$0xff] }
 0x148   : > { %v2382_v52 = vsel %vm2380_vm11, %v5716_v44, 2102212464  ;;  %v2430_v50 = vadd.s32 %v2424_v39, %v2420_v6  ;;  %v2431_v43 = vadd.s32 %v2429_v9, %v2423_v46  ;;  %v3024_v23 = vand.u32 2139095040, %v5783_v1 }
 0x149   : > { %v2309_v8 = vand.u32 2147483647, %v2308_v12  ;;  %v5807_v30 = vsel %vm5787_vm7, 0, %v2316_v27  ;;  %v2405_v21 = vshrl.u32 %v2400_v0, 16  ;;  %v2414_v47 = vadd.s32 %v2413_v17, %v2403_v11 }
 0x14a   : > { %v2425_v62 = vshrl.u32 %v2421_v3, 16  ;;  %vm2432_vm14 = vc.u32 %v2430_v50, %v2426_v2  ;;  %v6682_v59 = vand.u32 2147483647, %v5783_v1  ;;  %v3025_v20 = vshrl.u32 %v3024_v23, 23 }
 0x14b   : > { %v2312_v5 = vmul.f32 %v2311_v7, %v2309_v8  ;;  %v2381_v44 = vsel %vm2377_vm9, %v2361_v60, %v5704_v24  ;;  %v2383_v6 = vsel %vm2379_vm0, %v5710_v22, %v2382_v52  ;;  %v2433_v15 = vsel %vm2432_vm14, 1, %v6685_v57 }
 0x14c   : > { %v2643_v0 = vadd.s32 3, %v5807_v30  ;;  %v2427_v58 = vshrl.u32 %v2422_v35, 16  ;;  %v2435_v3 = vadd.s32 %v2433_v15, %v2431_v43  ;;  %v4392_v11 = vadd.s32 4294967169, %v3025_v20 }
 0x14d   : > { %v2313_v28 = vxor.u32 2147483648, %v2312_v5  ;;  %v2415_v46 = vadd.s32 %v2414_v47, %v2405_v21  ;;  %v2434_v39 = vadd.s32 %v2430_v50, %v2426_v2  ;;  %v2384_v26 = vsel %vm2378_vm3, %v2381_v44, %v2383_v6 }
 0x14e   : > { %v2436_v19 = vadd.s32 %v2435_v3, %v2425_v62  ;;  %v3028_v24 = vand.u32 8388607, %v6682_v59  ;;  %v3031_v60 = vadd.s32 1, %v4392_v11  ;;  %v5828_v27 = vand.u32 3, %v2643_v0 }
 0x14f   : > { %v2314_v22 = vsel %vm2193_vm2, %v2313_v28, %v2312_v5  ;;  %v2438_v42 = vmul.u32 %v5737_v25, %v2384_v26  ;;  %vm2440_vm11 = vc.u32 %v2415_v46, %v2434_v39  ;;  %v5832_v52 = vsub.f32 %v4387_v31, %v5406_v48 }
 0x150   : > { %v2317_v35 = vsel %vm5787_vm7, %v5409_v33, %v2314_v22  ;;  %v2437_v29 = vadd.s32 %v2436_v19, %v2427_v58  ;;  %vm3032_vm9 = vcmp.gt.s32.totalorder %v3031_v60, 0  ;;  %v3029_v17 = vor.u32 8388608, %v3028_v24 }
 0x151   : > { %v2319_v2 = vmul.f32 %v2317_v35, %v2317_v35  ;;  %v3033_v12 = vsel %vm3032_vm9, %v3031_v60, 0  ;;  %v6681_v62 = vand.u32 2147483647, %v5832_v52  ;;  %vm2649_vm15 = vcmp.eq.s32.totalorder %v5828_v27, 2 }
 0x152   : > { %v2441_v7 = vadd.s32 1, %v2437_v29  ;;  %v3035_v9 = vand.u32 31, %v3033_v12  ;;  %v5836_v25 = vadd.s32 %v2434_v39, %v2415_v46  ;;  %v5839_v5 = vshll.u32 %v3029_v17, 8 }
 0x153   : > { %v2320_v50 = vmul.f32 -0.001358992, %v2319_v2  ;;  %v2327_v43 = vmul.f32 -0.00019511016, %v2319_v2  ;;  %v2870_v48 = vand.u32 2139095040, %v5832_v52  ;;  %vm2646_vm0 = vcmp.eq.s32.totalorder %v5828_v27, 0 }
 0x154   : > { %v2442_v23 = vsel %vm2440_vm11, %v2441_v7, %v2437_v29  ;;  %v3036_v45 = vsub.s32 32, %v3035_v9  ;;  %v3041_v20 = vshll.u32 %v6693_v34, %v3035_v9  ;;  %v3044_v0 = vshll.u32 %v6691_v36, %v3035_v9 }
 0x155   : > { %v2321_v8 = vadd.f32 0.041655596, %v2320_v50  ;;  %v2328_v21 = vadd.f32 0.008332121, %v2327_v43  ;;  %v2443_v47 = vadd.s32 %v2442_v23, %v2438_v42  ;;  %v3047_v11 = vshll.u32 %v6689_v38, %v3035_v9 }
 0x156   : > { %v3042_v58 = vshrl.u32 %v6691_v36, %v3036_v45  ;;  %v3045_v3 = vshrl.u32 %v6689_v38, %v3036_v45  ;;  %v3048_v28 = vshrl.u32 %v6700_v40, %v3036_v45  ;;  %vm2645_vm5 = vcmp.lt.s32.totalorder %v5828_v27, 2 }
 0x157   : > { %v2322_v44 = vmul.f32 %v2321_v8, %v2319_v2  ;;  %v2329_v6 = vmul.f32 %v2328_v21, %v2319_v2  ;;  %v2444_v15 = vadd.s32 536870912, %v2443_v47  ;;  %v5849_v19 = vshrl.u32 %v3033_v12, 5 }
 0x158   : > { %vm2334_vm3 = vweird.f32 %v5409_v33  ;;  %v3038_v24 = vshll.u32 %v6695_v32, %v3035_v9  ;;  %v3039_v60 = vshrl.u32 %v6693_v34, %v3036_v45  ;;  %v3050_v22 = vshll.u32 %v6700_v40, %v3035_v9 }
 0x159   : > { %v2323_v46 = vadd.f32 -0.4999988, %v2322_v44  ;;  %v2330_v39 = vadd.f32 -0.16666654, %v2329_v6  ;;  %v2445_v26 = vshrl.u32 %v2444_v15, 30  ;;  %v3051_v31 = vshrl.u32 %v6699_v49, %v3036_v45 }
 0x15a   : > { %v2871_v17 = vshrl.u32 %v2870_v48, 23  ;;  %v5856_v50 = vor.u32 %v3042_v58, %v3041_v20  ;;  %v3046_v43 = vor.u32 %v3045_v3, %v3044_v0  ;;  %v3049_v23 = vor.u32 %v3048_v28, %v3047_v11 }
 0x15b   : > { %v2324_v29 = vmul.f32 %v2323_v46, %v2319_v2  ;;  %v2331_v42 = vmul.f32 %v2330_v39, %v2319_v2  ;;  %v2446_v7 = vshll.u32 %v2445_v26, 30  ;;  %v5860_v12 = vand.u32 8388607, %v6681_v62 }
 0x15c   : > { %vm2347_vm8 = vcmp.lt.s32.totalorder %v5611_v63, 0  ;;  %vm3056_vm12 = vcmp.lt.s32.totalorder %v5849_v19, 4  ;;  %v3040_v9 = vor.u32 %v3039_v60, %v3038_v24  ;;  %v3052_v6 = vor.u32 %v3051_v31, %v3050_v22 }
 0x15d   : > { %v2325_v8 = vadd.f32 1.0, %v2324_v29  ;;  %v2332_v21 = vadd.f32 1.0, %v2331_v42  ;;  %v2447_v44 = vsub.s32 %v2443_v47, %v2446_v7  ;;  %vm3053_vm1 = vcmp.lt.s32.totalorder %v5849_v19, 1 }
 0x15e   : > { %v5866_v2 = vand.u32 65535, %v5839_v5  ;;  %vm3054_vm4 = vcmp.lt.s32.totalorder %v5849_v19, 2  ;;  %vm3055_vm7 = vcmp.lt.s32.totalorder %v5849_v19, 3  ;;  %v3062_v47 = vsel %vm3056_vm12, %v3049_v23, 920167782 }
 0x15f   : > { %v2333_v20 = vmul.f32 %v2332_v21, %v2317_v35  ;;  %v2341_v48 = vxor.u32 2147483648, %v2325_v8  ;;  %vm2448_vm2 = vcmp.lt.s32.totalorder %v2447_v44, 0  ;;  %v2449_v15 = vsub.s32 0, %v2447_v44 }
 0x160   : > { %v4389_v0 = vadd.s32 4294967169, %v2871_v17  ;;  %v3065_v35 = vsel %vm3053_vm1, %v5856_v50, %v3046_v43  ;;  %v2469_v46 = vsub.s32 4, %v2445_v26  ;;  %v3037_v39 = vshrl.u32 %v6695_v32, %v3036_v45 }
 0x161   : > { %v2338_v58 = vxor.u32 2147483648, %v2333_v20  ;;  %v2651_v3 = vsel %vm2649_vm15, %v2341_v48, %v2333_v20  ;;  %v2450_v11 = vsel %vm2448_vm2, %v2449_v15, %v2447_v44  ;;  %v3066_v24 = vsel %vm3056_vm12, %v3052_v6, 1326507024 }
 0x162   : > { %v2451_v28 = vclz %v2450_v11  ;;  %v3061_v22 = vsel %vm3053_vm1, %v3040_v9, %v5856_v50  ;;  %v3063_v31 = vsel %vm3055_vm7, %v3046_v43, %v3062_v47  ;;  %v3067_v29 = vsel %vm3055_vm7, %v3049_v23, %v3066_v24 }
 0x163   : > { %v2648_v60 = vsel %vm2646_vm0, %v2325_v8, %v2338_v58  ;;  %v3068_v7 = vsel %vm3054_vm4, %v3065_v35, %v3067_v29  ;;  %v3071_v17 = vshrl.u32 %v5839_v5, 16  ;;  %v2877_v11 = vadd.s32 1, %v4389_v0 }
 0x164   : > { %v2652_v42 = vsel %vm2645_vm5, %v2648_v60, %v2651_v3  ;;  %v4377_v45 = vadd.s32 4294967294, %v2451_v28  ;;  %v3072_v6 = vand.u32 65535, %v3068_v7  ;;  %v3073_v15 = vshrl.u32 %v3068_v7, 16 }
 0x165   : > { %v5896_v21 = vsel %vm2334_vm3, nan, %v2652_v42  ;;  %v2470_v27 = vsel %vm2347_vm8, %v2469_v46, %v2445_v26  ;;  %v3057_v23 = vsel %vm3053_vm1, %v3037_v39, %v3040_v9  ;;  %v3064_v47 = vsel %vm3054_vm4, %v3061_v22, %v3063_v31 }
 0x166   : > { %2813 = vadd.xlane.f32.xlu2 %v5896_v21  ;;  %vm4378_vm6 = vcmp.lt.s32.totalorder %v4377_v45, 0  ;;  %v2335_v35 = vand.u32 3, %v5807_v30  ;;  %v3058_v28 = vsel %vm3056_vm12, %v3046_v43, 2102212464  ;;  %v3075_v0 = vmul.u32 %v3073_v15, %v5866_v2 }
 0x167   : > { %v2454_v3 = vsel %vm4378_vm6, 0, %v4377_v45  ;;  %v3094_v42 = vand.u32 65535, %v3064_v47  ;;  %vm5911_vm10 = vcmp.le.f32.partialorder %v2345_v10, 0.7853982  ;;  %v3074_v9 = vmul.u32 %v3072_v6, %v5866_v2 }
 0x168   : > { %v2455_v24 = vsub.s32 32, %v2454_v3  ;;  %v2456_v60 = vshll.u32 %v2447_v44, %v2454_v3  ;;  %v2459_v29 = vsub.s32 4294967266, %v2454_v3  ;;  %vm2337_vm13 = vcmp.eq.s32.totalorder %v2335_v35, 0 }
 0x169   : > { %vm2340_vm14 = vcmp.eq.s32.totalorder %v2335_v35, 2  ;;  %v3095_v30 = vshrl.u32 %v3064_v47, 16  ;;  %vm2336_vm9 = vcmp.lt.s32.totalorder %v2335_v35, 2  ;;  %v2339_v39 = vsel %vm2337_vm13, %v2325_v8, %v2338_v58 }
 0x16a   : > { %v2457_v46 = vshrl.u32 %v5836_v25, %v2455_v24  ;;  %v2460_v43 = vadd.s32 127, %v2459_v29  ;;  %v2342_v22 = vsel %vm2340_vm14, %v2341_v48, %v2333_v20  ;;  %v3076_v44 = vmul.u32 %v3072_v6, %v3071_v17 }
 0x16b   : > { %v3077_v31 = vmul.u32 %v3073_v15, %v3071_v17  ;;  %v3078_v45 = vshll.u32 %v3075_v0, 16  ;;  %v2343_v10 = vsel %vm2336_vm9, %v2339_v39, %v2342_v22  ;;  %v3059_v62 = vsel %vm3055_vm7, %v5856_v50, %v3058_v28 }
 0x16c   : > { %v2458_v7 = vor.u32 %v2457_v46, %v2456_v60  ;;  %v2461_v3 = vshll.u32 %v2460_v43, 23  ;;  %v5922_v59 = vsel %vm2334_vm3, nan, %v2343_v10  ;;  %v3080_v47 = vshll.u32 %v3076_v44, 16 }
 0x16d   : > { %vm3082_vm11 = vc.u32 %v3074_v9, %v3078_v45  ;;  %vm2878_vm15 = vcmp.gt.s32.totalorder %v2877_v11, 0  ;;  %2809 = vadd.xlane.f32.xlu0 %v5922_v59  ;;  %v3084_v48 = vadd.s32 %v3078_v45, %v3074_v9  ;;  %v3096_v6 = vmul.u32 %v3094_v42, %v5866_v2 }
 0x16e   : > { %v2462_v25 = vor.u32 4788187, %v2461_v3  ;;  %v2465_v8 = vcvt.s32.f32 %v2458_v7  ;;  %v3083_v20 = vsel %vm3082_vm11, 1, %v6685_v57  ;;  %v3097_v15 = vmul.u32 %v3095_v30, %v5866_v2 }
 0x16f   : > { %v3085_v58 = vadd.s32 %v3083_v20, %v3077_v31  ;;  %v3098_v50 = vmul.u32 %v3094_v42, %v3071_v17  ;;  %v3079_v33 = vshrl.u32 %v3075_v0, 16  ;;  %vm3086_vm0 = vc.u32 %v3084_v48, %v3080_v47 }
 0x170   : > { %v2463_v35 = vand.u32 2147483647, %v2462_v25  ;;  %v2879_v28 = vsel %vm2878_vm15, %v2877_v11, 0  ;;  %v3087_v24 = vsel %vm3086_vm0, 1, %v6685_v57  ;;  %v3099_v60 = vmul.u32 %v3095_v30, %v3071_v17 }
 0x171   : > { %v3100_v29 = vshll.u32 %v3097_v15, 16  ;;  %v3102_v46 = vshll.u32 %v3098_v50, 16  ;;  %v5931_v39 = vsel %vm5911_vm10, 0, %v2470_v27  ;;  %v3089_v9 = vadd.s32 %v3087_v24, %v3085_v58 }
 0x172   : > { %v2466_v43 = vmul.f32 %v2465_v8, %v2463_v35  ;;  %v2875_v22 = vor.u32 8388608, %v5860_v12  ;;  %v3060_v2 = vsel %vm3054_vm4, %v3057_v23, %v3059_v62  ;;  %v2881_v42 = vand.u32 31, %v2879_v28 }
 0x173   : > { %vm3104_vm5 = vc.u32 %v3096_v6, %v3100_v29  ;;  %v3106_v0 = vadd.s32 %v3100_v29, %v3096_v6  ;;  %v3081_v31 = vshrl.u32 %v3076_v44, 16  ;;  %v3090_v45 = vadd.s32 %v3089_v9, %v3079_v33 }
 0x174   : > { %v2467_v11 = vxor.u32 2147483648, %v2466_v43  ;;  %v3105_v17 = vsel %vm3104_vm5, 1, %v6685_v57  ;;  %v3101_v30 = vshrl.u32 %v3097_v15, 16  ;;  %v5937_v3 = vsub.s32 32, %v2881_v42 }
 0x175   : > { %v3107_v7 = vadd.s32 %v3105_v17, %v3099_v60  ;;  %vm3108_vm3 = vc.u32 %v3106_v0, %v3102_v46  ;;  %v5942_v12 = vand.u32 3, %v5931_v39  ;;  %v3114_v19 = vmul.u32 %v5839_v5, %v3060_v2 }
 0x176   : > { %v2468_v27 = vsel %vm2347_vm8, %v2467_v11, %v2466_v43  ;;  %v3109_v62 = vsel %vm3108_vm3, 1, %v6685_v57  ;;  %v3103_v44 = vshrl.u32 %v3098_v50, 16  ;;  %v5949_v47 = vshrl.u32 %v2879_v28, 5 }
 0x177   : > { %v2471_v23 = vsel %vm5911_vm10, %v5611_v63, %v2468_v27  ;;  %v3111_v10 = vadd.s32 %v3109_v62, %v3107_v7  ;;  %v5951_v8 = vadd.s32 %v3090_v45, %v3081_v31  ;;  %v5953_v20 = vadd.s32 %v3106_v0, %v3102_v46 }
 0x178   : > { %v2473_v25 = vmul.f32 %v2471_v23, %v2471_v23  ;;  %v2884_v48 = vshll.u32 %v6695_v32, %v2881_v42  ;;  %v2885_v6 = vshrl.u32 %v6693_v34, %v5937_v3  ;;  %v2887_v5 = vshll.u32 %v6693_v34, %v2881_v42 }
 0x179   : > { %v3112_v58 = vadd.s32 %v3111_v10, %v3101_v30  ;;  %v2888_v26 = vshrl.u32 %v6691_v36, %v5937_v3  ;;  %v2890_v35 = vshll.u32 %v6691_v36, %v2881_v42  ;;  %v2893_v33 = vshll.u32 %v6689_v38, %v2881_v42 }
 0x17a   : > { %v2474_v15 = vmul.f32 -0.001358992, %v2473_v25  ;;  %v2481_v50 = vmul.f32 -0.00019511016, %v2473_v25  ;;  %v2891_v24 = vshrl.u32 %v6689_v38, %v5937_v3  ;;  %v2894_v60 = vshrl.u32 %v6700_v40, %v5937_v3 }
 0x17b   : > { %v3113_v28 = vadd.s32 %v3112_v58, %v3103_v44  ;;  %v2896_v29 = vshll.u32 %v6700_v40, %v2881_v42  ;;  %vm3116_vm8 = vc.u32 %v5951_v8, %v5953_v20  ;;  %v2897_v9 = vshrl.u32 %v6699_v49, %v5937_v3 }
 0x17c   : > { %v2475_v46 = vadd.f32 0.041655596, %v2474_v15  ;;  %v2482_v43 = vadd.f32 0.008332121, %v2481_v50  ;;  %v5972_v0 = vor.u32 %v2885_v6, %v2884_v48  ;;  %v5974_v11 = vor.u32 %v2888_v26, %v2887_v5 }
 0x17d   : > { %v3117_v2 = vadd.s32 1, %v3113_v28  ;;  %v2895_v31 = vor.u32 %v2894_v60, %v2893_v33  ;;  %vm2899_vm12 = vcmp.lt.s32.totalorder %v5949_v47, 1  ;;  %vm2902_vm1 = vcmp.lt.s32.totalorder %v5949_v47, 4 }
 0x17e   : > { %v2476_v45 = vmul.f32 %v2475_v46, %v2473_v25  ;;  %v2483_v17 = vmul.f32 %v2482_v43, %v2473_v25  ;;  %v2892_v30 = vor.u32 %v2891_v24, %v2890_v35  ;;  %v2898_v7 = vor.u32 %v2897_v9, %v2896_v29 }
 0x17f   : > { %v3118_v42 = vsel %vm3116_vm8, %v3117_v2, %v3113_v28  ;;  %v5978_v27 = vshll.u32 %v2875_v22, 8  ;;  %vm2901_vm2 = vcmp.lt.s32.totalorder %v5949_v47, 3  ;;  %vm2900_vm4 = vcmp.lt.s32.totalorder %v5949_v47, 2 }
 0x180   : > { %v2477_v62 = vadd.f32 -0.4999988, %v2476_v45  ;;  %v2484_v44 = vadd.f32 -0.16666654, %v2483_v17  ;;  %v3119_v10 = vadd.s32 %v3118_v42, %v3114_v19  ;;  %v2907_v48 = vsel %vm2899_vm12, %v5972_v0, %v5974_v11 }
 0x181   : > { %v2908_v58 = vsel %vm2902_vm1, %v2895_v31, 920167782  ;;  %vm2494_vm7 = vcmp.eq.s32.totalorder %v5942_v12, 2  ;;  %v2911_v26 = vsel %vm2899_vm12, %v5974_v11, %v2892_v30  ;;  %v2912_v15 = vsel %vm2902_vm1, %v2898_v7, 1326507024 }
 0x182   : > { %v2478_v6 = vmul.f32 %v2477_v62, %v2473_v25  ;;  %v2485_v5 = vmul.f32 %v2484_v44, %v2473_v25  ;;  %v3120_v22 = vadd.s32 536870912, %v3119_v10  ;;  %v2909_v19 = vsel %vm2901_vm2, %v2892_v30, %v2908_v58 }
 0x183   : > { %v2916_v50 = vand.u32 65535, %v5978_v27  ;;  %v2910_v25 = vsel %vm2900_vm4, %v2907_v48, %v2909_v19  ;;  %v2913_v24 = vsel %vm2901_vm2, %v2895_v31, %v2912_v15  ;;  %v2917_v60 = vshrl.u32 %v5978_v27, 16 }
 0x184   : > { %v5997_v35 = vadd.f32 1.0, %v2478_v6  ;;  %v2486_v33 = vadd.f32 1.0, %v2485_v5  ;;  %v5999_v28 = vshrl.u32 %v3120_v22, 30  ;;  %v2940_v29 = vand.u32 65535, %v2910_v25 }
 0x185   : > { %v2941_v46 = vshrl.u32 %v2910_v25, 16  ;;  %vm2488_vm6 = vweird.f32 %v5611_v63  ;;  %vm2490_vm10 = vcmp.lt.s32.totalorder %v5942_v12, 2  ;;  %vm2491_vm13 = vcmp.eq.s32.totalorder %v5942_v12, 0 }
 0x186   : > { %v6006_v43 = vmul.f32 %v2486_v33, %v2471_v23  ;;  %v6683_v9 = vxor.u32 2147483648, %v5997_v35  ;;  %v3122_v2 = vshll.u32 %v5999_v28, 30  ;;  %v2914_v45 = vsel %vm2900_vm4, %v2911_v26, %v2913_v24 }
 0x187   : > { %v6015_v31 = vmul.u32 %v2941_v46, %v2916_v50  ;;  %v2883_v7 = vshrl.u32 %v6695_v32, %v5937_v3  ;;  %v2918_v62 = vand.u32 65535, %v2914_v45  ;;  %v2919_v44 = vshrl.u32 %v2914_v45, 16  ;;  %v4403_v45 = vld [vmem:[%s4741_s15 + $0x60] sm:$0xff] }
 0x188   : > { %v6684_v17 = vxor.u32 2147483648, %v6006_v43  ;;  %v2496_v23 = vsel %vm2494_vm7, %v6683_v9, %v6006_v43  ;;  %v6023_v42 = vsub.s32 %v3119_v10, %v3122_v2  ;;  %v2942_v48 = vmul.u32 %v2940_v29, %v2916_v50 }
 0x189   : > { %v6027_v58 = vmul.u32 %v2940_v29, %v2917_v60  ;;  %v2946_v10 = vshll.u32 %v6015_v31, 16  ;;  %v2920_v3 = vmul.u32 %v2918_v62, %v2916_v50  ;;  %v2921_v19 = vmul.u32 %v2919_v44, %v2916_v50 }
 0x18a   : > { %v2493_v6 = vsel %vm2491_vm13, %v5997_v35, %v6684_v17  ;;  %vm3124_vm14 = vcmp.lt.s32.totalorder %v6023_v42, 0  ;;  %v3125_v5 = vsub.s32 0, %v6023_v42  ;;  %v2922_v26 = vmul.u32 %v2918_v62, %v2917_v60  ;;  %v4404_v17 = vld [vmem:[%s4741_s15 + $0x68] sm:$0xff] }
 0x18b   : > { %v2497_v22 = vsel %vm2490_vm10, %v2493_v6, %v2496_v23  ;;  %v3115_v33 = vadd.s32 %v5953_v20, %v5951_v8  ;;  %v2904_v24 = vsel %vm2902_vm1, %v2892_v30, 2102212464  ;;  %v2923_v12 = vmul.u32 %v2919_v44, %v2917_v60 }
 0x18c   : > { %v6039_v15 = vsel %vm2488_vm6, nan, %v2497_v22  ;;  %v3126_v25 = vsel %vm3124_vm14, %v3125_v5, %v6023_v42  ;;  %v2924_v2 = vshll.u32 %v2921_v19, 16  ;;  %v2945_v50 = vmul.u32 %v2941_v46, %v2917_v60  ;;  %v4527_v5 = vld [vmem:[%s4741_s15] sm:$0xff] }
 0x18d   : > { %2811 = vadd.xlane.f32.xlu1 %v6039_v15  ;;  %v3127_v29 = vclz %v3126_v25  ;;  %v2903_v23 = vsel %vm2899_vm12, %v2883_v7, %v5972_v0  ;;  %v2926_v62 = vshll.u32 %v2922_v26, 16  ;;  %v2948_v8 = vshll.u32 %v6027_v58, 16 }
 0x18e   : > { %vm2950_vm9 = vc.u32 %v2942_v48, %v2946_v10  ;;  %vm2928_vm11 = vc.u32 %v2920_v3, %v2924_v2  ;;  %v2930_v6 = vadd.s32 %v2924_v2, %v2920_v3  ;;  %v2905_v44 = vsel %vm2901_vm2, %v5974_v11, %v2904_v24 }
 0x18f   : > { %v4393_v20 = vadd.s32 4294967294, %v3127_v29  ;;  %v2951_v30 = vsel %vm2950_vm9, 1, %v6685_v57  ;;  %v2929_v60 = vsel %vm2928_vm11, 1, %v6685_v57  ;;  %v2952_v46 = vadd.s32 %v2946_v10, %v2942_v48 }
 0x190   : > { %v6058_v22 = vsub.f32 %v4403_v45, %v4527_v5  ;;  %v2931_v0 = vadd.s32 %v2929_v60, %v2923_v12  ;;  %v2947_v7 = vshrl.u32 %v6015_v31, 16  ;;  %v2953_v25 = vadd.s32 %v2951_v30, %v2945_v50 }
 0x191   : > { %vm4394_vm15 = vcmp.lt.s32.totalorder %v4393_v20, 0  ;;  %v2925_v3 = vshrl.u32 %v2921_v19, 16  ;;  %vm2932_vm0 = vc.u32 %v2930_v6, %v2926_v62  ;;  %vm2954_vm5 = vc.u32 %v2952_v46, %v2948_v8 }
 0x192   : > { %v3130_v29 = vsel %vm4394_vm15, 0, %v4393_v20  ;;  %v2927_v24 = vshrl.u32 %v2922_v26, 16  ;;  %v2933_v48 = vsel %vm2932_vm0, 1, %v6685_v57  ;;  %v2949_v10 = vshrl.u32 %v6027_v58, 16 }
 0x193   : > { %v3131_v2 = vsub.s32 32, %v3130_v29  ;;  %v3132_v9 = vshll.u32 %v6023_v42, %v3130_v29  ;;  %v3135_v11 = vsub.s32 4294967266, %v3130_v29  ;;  %v2955_v45 = vsel %vm2954_vm5, 1, %v6685_v57 }
 0x194   : > { %v6688_v12 = vand.u32 2147483647, %v6058_v22  ;;  %v2935_v20 = vadd.s32 %v2933_v48, %v2931_v0  ;;  %v2957_v19 = vadd.s32 %v2955_v45, %v2953_v25  ;;  %v2906_v62 = vsel %vm2900_vm4, %v2903_v23, %v2905_v44 }
 0x195   : > { %v3133_v31 = vshrl.u32 %v3115_v33, %v3131_v2  ;;  %v3136_v50 = vadd.s32 127, %v3135_v11  ;;  %v2956_v6 = vadd.s32 %v2952_v46, %v2948_v8  ;;  %v3546_v42 = vand.u32 2139095040, %v6058_v22 }
 0x196   : > { %v6071_v26 = vsub.f32 %v4404_v17, %v5780_v4  ;;  %v2936_v58 = vadd.s32 %v2935_v20, %v2925_v3  ;;  %v2958_v5 = vadd.s32 %v2957_v19, %v2947_v7  ;;  %v3145_v29 = vsub.s32 4, %v5999_v28 }
 0x197   : > { %v3134_v30 = vor.u32 %v3133_v31, %v3132_v9  ;;  %v3137_v60 = vshll.u32 %v3136_v50, 23  ;;  %v3547_v57 = vshrl.u32 %v3546_v42, 23  ;;  %v3550_v33 = vand.u32 8388607, %v6688_v12 }
 0x198   : > { %v3700_v0 = vand.u32 2139095040, %v6071_v26  ;;  %v2937_v8 = vadd.s32 %v2936_v58, %v2927_v24  ;;  %v2959_v44 = vadd.s32 %v2958_v5, %v2949_v10  ;;  %v2960_v46 = vmul.u32 %v5978_v27, %v2906_v62 }
 0x199   : > { %v3138_v47 = vor.u32 4788187, %v3137_v60  ;;  %v3141_v23 = vcvt.s32.f32 %v3134_v30  ;;  %v4405_v4 = vadd.s32 4294967169, %v3547_v57  ;;  %vm3023_vm3 = vcmp.lt.s32.totalorder %v5783_v1, 0 }
 0x19a   : > { %v3701_v17 = vshrl.u32 %v3700_v0, 23  ;;  %vm2962_vm8 = vc.u32 %v2937_v8, %v2956_v6  ;;  %v2963_v7 = vadd.s32 1, %v2959_v44  ;;  %v3146_v25 = vsel %vm3023_vm3, %v3145_v29, %v5999_v28 }
 0x19b   : > { %v3139_v9 = vand.u32 2147483647, %v3138_v47  ;;  %v3551_v3 = vor.u32 8388608, %v3550_v33  ;;  %v3553_v2 = vadd.s32 1, %v4405_v4  ;;  %v6724_v24 = vand.u32 2147483647, %v5783_v1 }
 0x19c   : > { %v4408_v11 = vadd.s32 4294967169, %v3701_v17  ;;  %v2964_v45 = vsel %vm2962_vm8, %v2963_v7, %v2959_v44  ;;  %v6687_v28 = vand.u32 2147483647, %v6071_v26  ;;  %vm2869_vm2 = vcmp.lt.s32.totalorder %v5832_v52, 0 }
 0x19d   : > { %v3142_v48 = vmul.f32 %v3141_v23, %v3139_v9  ;;  %vm3022_vm12 = vcmp.le.f32.partialorder %v6724_v24, 0.7853982  ;;  %v2965_v27 = vadd.s32 %v2964_v45, %v2960_v46  ;;  %vm3554_vm1 = vcmp.gt.s32.totalorder %v3553_v2, 0 }
 0x19e   : > { %v3707_v57 = vadd.s32 1, %v4408_v11  ;;  %v6084_v31 = vsel %vm3022_vm12, 0, %v3146_v25  ;;  %v3555_v50 = vsel %vm3554_vm1, %v3553_v2, 0  ;;  %v6086_v62 = vshll.u32 %v3551_v3, 8 }
 0x19f   : > { %v3143_v10 = vxor.u32 2147483648, %v3142_v48  ;;  %v2966_v20 = vadd.s32 536870912, %v2965_v27  ;;  %v3557_v19 = vand.u32 31, %v3555_v50  ;;  %v6098_v5 = vand.u32 3, %v6084_v31 }
 0x1a0   : > { %vm3708_vm4 = vcmp.gt.s32.totalorder %v3707_v57, 0  ;;  %v6100_v29 = vadd.s32 %v2956_v6, %v2937_v8  ;;  %v6103_v47 = vand.u32 65535, %v6086_v62  ;;  %v6106_v23 = vshrl.u32 %v6086_v62, 16 }
 0x1a1   : > { %v3144_v42 = vsel %vm3023_vm3, %v3143_v10, %v3142_v48  ;;  %v2967_v60 = vshrl.u32 %v2966_v20, 30  ;;  %v3558_v33 = vsub.s32 32, %v3557_v19  ;;  %v6110_v44 = vand.u32 8388607, %v6687_v28 }
 0x1a2   : > { %v6092_v30 = vsel %vm3022_vm12, %v5783_v1, %v3144_v42  ;;  %v6112_v17 = vshrl.u32 %v3555_v50, 5  ;;  %v6114_v9 = vsel %vm3708_vm4, %v3707_v57, 0  ;;  %v3560_v8 = vshll.u32 %v6695_v32, %v3557_v19 }
 0x1a3   : > { %v3149_v58 = vmul.f32 %v6092_v30, %v6092_v30  ;;  %v2968_v0 = vshll.u32 %v2967_v60, 30  ;;  %v3563_v7 = vshll.u32 %v6693_v34, %v3557_v19  ;;  %v3566_v25 = vshll.u32 %v6691_v36, %v3557_v19 }
 0x1a4   : > { %v2991_v11 = vsub.s32 4, %v2967_v60  ;;  %v3561_v48 = vshrl.u32 %v6693_v34, %v3558_v33  ;;  %vm3170_vm7 = vcmp.eq.s32.totalorder %v6098_v5, 2  ;;  %v3564_v24 = vshrl.u32 %v6691_v36, %v3558_v33 }
 0x1a5   : > { %v3150_v46 = vmul.f32 -0.001358992, %v3149_v58  ;;  %v3157_v4 = vmul.f32 -0.00019511016, %v3149_v58  ;;  %v6116_v6 = vsub.s32 %v2965_v27, %v2968_v0  ;;  %v3567_v27 = vshrl.u32 %v6689_v38, %v3558_v33 }
 0x1a6   : > { %v3559_v50 = vshrl.u32 %v6695_v32, %v3558_v33  ;;  %v3569_v20 = vshll.u32 %v6689_v38, %v3557_v19  ;;  %vm3167_vm13 = vcmp.eq.s32.totalorder %v6098_v5, 0  ;;  %v3570_v0 = vshrl.u32 %v6700_v40, %v3558_v33 }
 0x1a7   : > { %v3151_v3 = vadd.f32 0.041655596, %v3150_v46  ;;  %v3158_v2 = vadd.f32 0.008332121, %v3157_v4  ;;  %vm2970_vm10 = vcmp.lt.s32.totalorder %v6116_v6, 0  ;;  %v2971_v45 = vsub.s32 0, %v6116_v6 }
 0x1a8   : > { %v3572_v46 = vshll.u32 %v6700_v40, %v3557_v19  ;;  %v3573_v4 = vshrl.u32 %v6699_v49, %v3558_v33  ;;  %vm3166_vm14 = vcmp.lt.s32.totalorder %v6098_v5, 2  ;;  %vm3164_vm9 = vweird.f32 %v5783_v1 }
 0x1a9   : > { %v3152_v57 = vmul.f32 %v3151_v3, %v3149_v58  ;;  %v3159_v10 = vmul.f32 %v3158_v2, %v3149_v58  ;;  %v2972_v42 = vsel %vm2970_vm10, %v2971_v45, %v6116_v6  ;;  %v2992_v2 = vsel %vm2869_vm2, %v2991_v11, %v2967_v60 }
 0x1aa   : > { %v2973_v3 = vclz %v2972_v42  ;;  %v3562_v38 = vor.u32 %v3561_v48, %v3560_v8  ;;  %v3565_v36 = vor.u32 %v3564_v24, %v3563_v7  ;;  %v3568_v34 = vor.u32 %v3567_v27, %v3566_v25 }
 0x1ab   : > { %v3153_v28 = vadd.f32 -0.4999988, %v3152_v57  ;;  %v3160_v12 = vadd.f32 -0.16666654, %v3159_v10  ;;  %vm3575_vm11 = vcmp.lt.s32.totalorder %v6112_v17, 1  ;;  %vm3578_vm15 = vcmp.lt.s32.totalorder %v6112_v17, 4 }
 0x1ac   : > { %v4390_v19 = vadd.s32 4294967294, %v2973_v3  ;;  %v6725_v33 = vand.u32 2147483647, %v5832_v52  ;;  %v3571_v10 = vor.u32 %v3570_v0, %v3569_v20  ;;  %v3574_v60 = vor.u32 %v3573_v4, %v3572_v46 }
 0x1ad   : > { %v3154_v45 = vmul.f32 %v3153_v28, %v3149_v58  ;;  %v3161_v32 = vmul.f32 %v3160_v12, %v3149_v58  ;;  %vm3576_vm5 = vcmp.lt.s32.totalorder %v6112_v17, 2  ;;  %v3580_v8 = vsel %vm3578_vm15, %v3568_v34, 2102212464 }
 0x1ae   : > { %vm6142_vm0 = vcmp.le.f32.partialorder %v6725_v33, 0.7853982  ;;  %vm4391_vm3 = vcmp.lt.s32.totalorder %v4390_v19, 0  ;;  %v2798_v12 = vadd.s32 3, %v5931_v39  ;;  %vm3577_vm8 = vcmp.lt.s32.totalorder %v6112_v17, 3 }
 0x1af   : > { %v6149_v7 = vadd.f32 1.0, %v3154_v45  ;;  %v3162_v28 = vadd.f32 1.0, %v3161_v32  ;;  %v2976_v58 = vsel %vm4391_vm3, 0, %v4390_v19  ;;  %v3579_v25 = vsel %vm3575_vm11, %v3559_v50, %v3562_v38 }
 0x1b0   : > { %v3583_v11 = vsel %vm3575_vm11, %v3562_v38, %v3565_v36  ;;  %v2977_v27 = vsub.s32 32, %v2976_v58  ;;  %v2978_v32 = vshll.u32 %v6116_v6, %v2976_v58  ;;  %v2981_v20 = vsub.s32 4294967266, %v2976_v58 }
 0x1b1   : > { %v6158_v48 = vmul.f32 %v3162_v28, %v6092_v30  ;;  %v6697_v24 = vxor.u32 2147483648, %v6149_v7  ;;  %v2799_v42 = vand.u32 3, %v2798_v12  ;;  %v3581_v39 = vsel %vm3577_vm8, %v3565_v36, %v3580_v8 }
 0x1b2   : > { %v3584_v0 = vsel %vm3578_vm15, %v3571_v10, 920167782  ;;  %v2979_v30 = vshrl.u32 %v6100_v29, %v2977_v27  ;;  %v3588_v6 = vsel %vm3578_vm15, %v3574_v60, 1326507024  ;;  %v2982_v46 = vadd.s32 127, %v2981_v20 }
 0x1b3   : > { %v6698_v50 = vxor.u32 2147483648, %v6158_v48  ;;  %v3172_v38 = vsel %vm3170_vm7, %v6697_v24, %v6158_v48  ;;  %vm2800_vm12 = vcmp.lt.s32.totalorder %v2799_v42, 2  ;;  %vm2801_vm1 = vcmp.eq.s32.totalorder %v2799_v42, 0 }
 0x1b4   : > { %vm2804_vm4 = vcmp.eq.s32.totalorder %v2799_v42, 2  ;;  %v2980_v3 = vor.u32 %v2979_v30, %v2978_v32  ;;  %v6728_v45 = vxor.u32 2147483648, %v6006_v43  ;;  %v6729_v29 = vxor.u32 2147483648, %v5997_v35 }
 0x1b5   : > { %v3169_v4 = vsel %vm3167_vm13, %v6149_v7, %v6698_v50  ;;  %v2983_v8 = vshll.u32 %v2982_v46, 23  ;;  %v3587_v12 = vsel %vm3575_vm11, %v3565_v36, %v3568_v34  ;;  %v6196_v32 = vsel %vm6142_vm0, 0, %v2992_v2 }
 0x1b6   : > { %v2803_v19 = vsel %vm2801_vm1, %v5997_v35, %v6728_v45  ;;  %v2806_v33 = vsel %vm2804_vm4, %v6729_v29, %v6006_v43  ;;  %v3173_v60 = vsel %vm3166_vm14, %v3169_v4, %v3172_v38  ;;  %v2987_v27 = vcvt.s32.f32 %v2980_v3 }
 0x1b7   : > { %v2807_v28 = vsel %vm2800_vm12, %v2803_v19, %v2806_v33  ;;  %v6192_v58 = vsel %vm3164_vm9, nan, %v3173_v60  ;;  %v2984_v43 = vor.u32 4788187, %v2983_v8  ;;  %v6206_v36 = vsel %vm3576_vm5, %v3579_v25, %v3581_v39 }
 0x1b8   : > { %6730 = vst [vmem:[#allocation8_spill] sm:$0xff] %v6192_v58  ;;  %v6200_v35 = vsel %vm2488_vm6, nan, %v2807_v28  ;;  %3487 = vadd.xlane.f32.xlu2 %v6192_v58  ;;  %v3585_v5 = vsel %vm3577_vm8, %v3568_v34, %v3584_v0  ;;  %v3589_v2 = vsel %vm3577_vm8, %v3571_v10, %v3588_v6  ;;  %v6218_v38 = vand.u32 31, %v6114_v9 }
 0x1b9   : > { %2815 = vadd.xlane.f32.xlu0 %v6200_v35  ;;  %v3586_v63 = vsel %vm3576_vm5, %v3583_v11, %v3585_v5  ;;  %v3590_v20 = vsel %vm3576_vm5, %v3587_v12, %v3589_v2  ;;  %v2985_v30 = vand.u32 2147483647, %v2984_v43  ;;  %v6221_v34 = vand.u32 3, %v6196_v32 }
 0x1ba   : > { %v3594_v25 = vand.u32 65535, %v3590_v20  ;;  %v3595_v39 = vshrl.u32 %v3590_v20, 16  ;;  %v3616_v46 = vand.u32 65535, %v3586_v63  ;;  %v3617_v0 = vshrl.u32 %v3586_v63, 16 }
 0x1bb   : > { %v6226_v11 = vshrl.u32 %v6114_v9, 5  ;;  %v2988_v17 = vmul.f32 %v2987_v27, %v2985_v30  ;;  %v6235_v33 = vsub.s32 32, %v6218_v38  ;;  %v6731_v43 = vmov 683565275  }
 0x1bc   : > { %v3596_v6 = vmul.u32 %v3594_v25, %v6103_v47  ;;  %v3597_v4 = vmul.u32 %v3595_v39, %v6103_v47  ;;  %v3598_v3 = vmul.u32 %v3594_v25, %v6106_v23  ;;  %v3618_v45 = vmul.u32 %v3616_v46, %v6103_v47 }
 0x1bd   : > { %v3619_v19 = vmul.u32 %v3617_v0, %v6103_v47  ;;  %v3620_v29 = vmul.u32 %v3616_v46, %v6106_v23  ;;  %v2989_v60 = vxor.u32 2147483648, %v2988_v17  ;;  %v3599_v9 = vmul.u32 %v3595_v39, %v6106_v23 }
 0x1be   : > { %v3600_v8 = vshll.u32 %v3597_v4, 16  ;;  %v3602_v28 = vshll.u32 %v3598_v3, 16  ;;  %v3621_v12 = vmul.u32 %v3617_v0, %v6106_v23  ;;  %v3714_v5 = vshll.u32 %v6731_v43, %v6218_v38 }
 0x1bf   : > { %v3622_v27 = vshll.u32 %v3619_v19, 16  ;;  %v6732_v2 = vmov 2475754826   ;;  %v2990_v47 = vsel %vm2869_vm2, %v2989_v60, %v2988_v17  ;;  %v3601_v20 = vshrl.u32 %v3597_v4, 16 }
 0x1c0   : > { %v3717_v63 = vshll.u32 %v6732_v2, %v6218_v38  ;;  %vm3604_vm6 = vc.u32 %v3596_v6, %v3600_v8  ;;  %v3606_v30 = vadd.s32 %v3600_v8, %v3596_v6  ;;  %v2993_v25 = vsel %vm6142_vm0, %v5832_v52, %v2990_v47 }
 0x1c1   : > { %v6733_v39 = vmov 0   ;;  %v3624_v23 = vshll.u32 %v3620_v29, 16  ;;  %vm3626_vm7 = vc.u32 %v3618_v45, %v3622_v27  ;;  %v2995_v0 = vmul.f32 %v2993_v25, %v2993_v25 }
 0x1c2   : > { %v3605_v46 = vsel %vm3604_vm6, 1, %v6733_v39  ;;  %vm3608_vm10 = vc.u32 %v3606_v30, %v3602_v28  ;;  %v3627_v50 = vsel %vm3626_vm7, 1, %v6733_v39  ;;  %v3603_v42 = vshrl.u32 %v3598_v3, 16 }
 0x1c3   : > { %v3607_v24 = vadd.s32 %v3605_v46, %v3599_v9  ;;  %v3609_v10 = vsel %vm3608_vm10, 1, %v6733_v39  ;;  %v3628_v17 = vadd.s32 %v3622_v27, %v3618_v45  ;;  %v3629_v4 = vadd.s32 %v3627_v50, %v3621_v12 }
 0x1c4   : > { %v2996_v60 = vmul.f32 -0.001358992, %v2995_v0  ;;  %v3003_v6 = vmul.f32 -0.00019511016, %v2995_v0  ;;  %v3623_v49 = vshrl.u32 %v3619_v19, 16  ;;  %v3625_v57 = vshrl.u32 %v3620_v29, 16 }
 0x1c5   : > { %v3611_v8 = vadd.s32 %v3609_v10, %v3607_v24  ;;  %vm3630_vm2 = vc.u32 %v3628_v17, %v3624_v23  ;;  %v3715_v47 = vshrl.u32 %v6732_v2, %v6235_v33  ;;  %v6734_v40 = vmov 2131351028  }
 0x1c6   : > { %v3718_v9 = vshrl.u32 %v6734_v40, %v6235_v33  ;;  %v2997_v28 = vadd.f32 0.041655596, %v2996_v60  ;;  %v3004_v30 = vadd.f32 0.008332121, %v3003_v6  ;;  %v3631_v3 = vsel %vm3630_vm2, 1, %v6733_v39 }
 0x1c7   : > { %v3612_v46 = vadd.s32 %v3611_v8, %v3601_v20  ;;  %v6256_v58 = vadd.s32 %v3628_v17, %v3624_v23  ;;  %v3633_v50 = vadd.s32 %v3631_v3, %v3629_v4  ;;  %v3720_v24 = vshll.u32 %v6734_v40, %v6218_v38 }
 0x1c8   : > { %v6735_v10 = vmov 2102212464   ;;  %v2998_v19 = vmul.f32 %v2997_v28, %v2995_v0  ;;  %v3005_v29 = vmul.f32 %v3004_v30, %v2995_v0  ;;  %v6736_v20 = vmov 920167782  }
 0x1c9   : > { %v3721_v45 = vshrl.u32 %v6735_v10, %v6235_v33  ;;  %v6262_v12 = vadd.s32 %v3612_v46, %v3603_v42  ;;  %v3723_v27 = vshll.u32 %v6735_v10, %v6218_v38  ;;  %v3634_v2 = vadd.s32 %v3633_v50, %v3623_v49 }
 0x1ca   : > { %v3724_v60 = vshrl.u32 %v6736_v20, %v6235_v33  ;;  %v3726_v23 = vshll.u32 %v6736_v20, %v6218_v38  ;;  %vm3729_vm13 = vcmp.lt.s32.totalorder %v6226_v11, 1  ;;  %v2999_v40 = vadd.f32 -0.4999988, %v2998_v19 }
 0x1cb   : > { %v3006_v17 = vadd.f32 -0.16666654, %v3005_v29  ;;  %v6271_v4 = vor.u32 %v3715_v47, %v3714_v5  ;;  %v6273_v6 = vor.u32 %v3718_v9, %v3717_v63  ;;  %vm3010_vm14 = vweird.f32 %v5832_v52 }
 0x1cc   : > { %v3635_v42 = vadd.s32 %v3634_v2, %v3625_v57  ;;  %v3722_v8 = vor.u32 %v3721_v45, %v3720_v24  ;;  %v3725_v28 = vor.u32 %v3724_v60, %v3723_v27  ;;  %v6737_v49 = vmov 1326507024  }
 0x1cd   : > { %v3727_v30 = vshrl.u32 %v6737_v49, %v6235_v33  ;;  %v3000_v46 = vmul.f32 %v2999_v40, %v2995_v0  ;;  %v3007_v3 = vmul.f32 %v3006_v17, %v2995_v0  ;;  %vm3638_vm11 = vc.u32 %v6262_v12, %v6256_v58 }
 0x1ce   : > { %vm3732_vm15 = vcmp.lt.s32.totalorder %v6226_v11, 4  ;;  %vm3012_vm0 = vcmp.lt.s32.totalorder %v6221_v34, 2  ;;  %v3639_v38 = vadd.s32 1, %v3635_v42  ;;  %vm3731_vm5 = vcmp.lt.s32.totalorder %v6226_v11, 3 }
 0x1cf   : > { %v3728_v5 = vor.u32 %v3727_v30, %v3726_v23  ;;  %v6283_v63 = vadd.f32 1.0, %v3000_v46  ;;  %v3008_v57 = vadd.f32 1.0, %v3007_v3  ;;  %vm3730_vm3 = vcmp.lt.s32.totalorder %v6226_v11, 2 }
 0x1d0   : > { %v3737_v0 = vsel %vm3729_vm13, %v6271_v4, %v6273_v6  ;;  %vm3016_vm8 = vcmp.eq.s32.totalorder %v6221_v34, 2  ;;  %v3640_v47 = vsel %vm3638_vm11, %v3639_v38, %v3635_v42  ;;  %v3738_v9 = vsel %vm3732_vm15, %v3725_v28, 920167782 }
 0x1d1   : > { %v3741_v50 = vsel %vm3729_vm13, %v6273_v6, %v3722_v8  ;;  %v6296_v24 = vmul.f32 %v3008_v57, %v2993_v25  ;;  %v3017_v10 = vxor.u32 2147483648, %v6283_v63  ;;  %v6738_v45 = vmul.u32 %v6086_v62, %v6206_v36 }
 0x1d2   : > { %v3739_v29 = vsel %vm3731_vm5, %v3722_v8, %v3738_v9  ;;  %vm3013_vm12 = vcmp.eq.s32.totalorder %v6221_v34, 0  ;;  %v3742_v2 = vsel %vm3732_vm15, %v3728_v5, 1326507024  ;;  %v6739_v25 = vor.u32 8388608, %v6110_v44 }
 0x1d3   : > { %v3641_v19 = vadd.s32 %v3640_v47, %v6738_v45  ;;  %v3740_v27 = vsel %vm3730_vm3, %v3737_v0, %v3739_v29  ;;  %v3014_v60 = vxor.u32 2147483648, %v6296_v24  ;;  %v3018_v62 = vsel %vm3016_vm8, %v3017_v10, %v6296_v24 }
 0x1d4   : > { %v6311_v20 = vshll.u32 %v6739_v25, 8  ;;  %v3743_v23 = vsel %vm3731_vm5, %v3725_v28, %v3742_v2  ;;  %v3770_v44 = vand.u32 65535, %v3740_v27  ;;  %v3771_v28 = vshrl.u32 %v3740_v27, 16 }
 0x1d5   : > { %v3642_v36 = vadd.s32 536870912, %v3641_v19  ;;  %v3744_v40 = vsel %vm3730_vm3, %v3741_v50, %v3743_v23  ;;  %v3015_v49 = vsel %vm3013_vm12, %v6283_v63, %v3014_v60  ;;  %vm3545_vm12 = vcmp.lt.s32.totalorder %v6058_v22, 0 }
 0x1d6   : > { %v3746_v17 = vand.u32 65535, %v6311_v20  ;;  %v3747_v42 = vshrl.u32 %v6311_v20, 16  ;;  %v3748_v46 = vand.u32 65535, %v3744_v40  ;;  %v3749_v3 = vshrl.u32 %v3744_v40, 16 }
 0x1d7   : > { %v6326_v30 = vshrl.u32 %v3642_v36, 30  ;;  %v3019_v38 = vsel %vm3012_vm0, %v3015_v49, %v3018_v62  ;;  %v3713_v62 = vshrl.u32 %v6731_v43, %v6235_v33  ;;  %v3637_v33 = vadd.s32 %v6256_v58, %v6262_v12 }
 0x1d8   : > { %v6332_v5 = vsel %vm3010_vm14, nan, %v3019_v38  ;;  %v3750_v0 = vmul.u32 %v3748_v46, %v3746_v17  ;;  %v3751_v47 = vmul.u32 %v3749_v3, %v3746_v17  ;;  %v6336_v9 = vmul.u32 %v3748_v46, %v3747_v42 }
 0x1d9   : > { %v3644_v57 = vshll.u32 %v6326_v30, 30  ;;  %3485 = vadd.xlane.f32.xlu1 %v6332_v5  ;;  %v6338_v50 = vmul.u32 %v3771_v28, %v3746_v17  ;;  %v6340_v29 = vmul.u32 %v3770_v44, %v3747_v42  ;;  %v3753_v34 = vmul.u32 %v3749_v3, %v3747_v42 }
 0x1da   : > { %v3754_v2 = vshll.u32 %v3751_v47, 16  ;;  %v3772_v27 = vmul.u32 %v3770_v44, %v3746_v17  ;;  %v3756_v36 = vshll.u32 %v6336_v9, 16  ;;  %v3733_v43 = vsel %vm3729_vm13, %v3713_v62, %v6271_v4 }
 0x1db   : > { %v3645_v45 = vsub.s32 %v3641_v19, %v3644_v57  ;;  %v3776_v40 = vshll.u32 %v6338_v50, 16  ;;  %v3734_v19 = vsel %vm3732_vm15, %v3722_v8, 2102212464  ;;  %v3778_v3 = vshll.u32 %v6340_v29, 16 }
 0x1dc   : > { %vm3758_vm4 = vc.u32 %v3750_v0, %v3754_v2  ;;  %v3760_v23 = vadd.s32 %v3754_v2, %v3750_v0  ;;  %v3735_v8 = vsel %vm3731_vm5, %v6273_v6, %v3734_v19  ;;  %v3755_v2 = vshrl.u32 %v3751_v47, 16 }
 0x1dd   : > { %vm3646_vm1 = vcmp.lt.s32.totalorder %v3645_v45, 0  ;;  %v3647_v25 = vsub.s32 0, %v3645_v45  ;;  %v3759_v46 = vsel %vm3758_vm4, 1, %v6733_v39  ;;  %vm3780_vm7 = vc.u32 %v3772_v27, %v3776_v40 }
 0x1de   : > { %v3761_v44 = vadd.s32 %v3759_v46, %v3753_v34  ;;  %vm3762_vm6 = vc.u32 %v3760_v23, %v3756_v36  ;;  %v3782_v57 = vadd.s32 %v3776_v40, %v3772_v27  ;;  %v3474_v34 = vadd.s32 3, %v6084_v31 }
 0x1df   : > { %v3648_v49 = vsel %vm3646_vm1, %v3647_v25, %v3645_v45  ;;  %v3763_v38 = vsel %vm3762_vm6, 1, %v6733_v39  ;;  %v3775_v25 = vmul.u32 %v3771_v28, %v3747_v42  ;;  %v3319_v36 = vadd.s32 3, %v6196_v32 }
 0x1e0   : > { %v3649_v17 = vclz %v3648_v49  ;;  %v3765_v23 = vadd.s32 %v3763_v38, %v3761_v44  ;;  %v3781_v58 = vsel %vm3780_vm7, 1, %v6733_v39  ;;  %v3757_v12 = vshrl.u32 %v6336_v9, 16 }
 0x1e1   : > { %v3777_v4 = vshrl.u32 %v6338_v50, 16  ;;  %vm3784_vm2 = vc.u32 %v3782_v57, %v3778_v3  ;;  %v3475_v62 = vand.u32 3, %v3474_v34  ;;  %v3320_v40 = vand.u32 3, %v3319_v36 }
 0x1e2   : > { %v4406_v0 = vadd.s32 4294967294, %v3649_v17  ;;  %v3779_v6 = vshrl.u32 %v6340_v29, 16  ;;  %v3783_v31 = vadd.s32 %v3781_v58, %v3775_v25  ;;  %v3766_v32 = vadd.s32 %v3765_v23, %v3755_v2 }
 0x1e3   : > { %vm3477_vm13 = vcmp.eq.s32.totalorder %v3475_v62, 0  ;;  %vm3480_vm11 = vcmp.eq.s32.totalorder %v3475_v62, 2  ;;  %v3785_v49 = vsel %vm3784_vm2, 1, %v6733_v39  ;;  %vm3476_vm15 = vcmp.lt.s32.totalorder %v3475_v62, 2 }
 0x1e4   : > { %vm4407_vm10 = vcmp.lt.s32.totalorder %v4406_v0, 0  ;;  %v6740_v9 = vxor.u32 2147483648, %v6158_v48  ;;  %v6741_v17 = vxor.u32 2147483648, %v6149_v7  ;;  %vm3321_vm0 = vcmp.lt.s32.totalorder %v3320_v40, 2 }
 0x1e5   : > { %v3652_v27 = vsel %vm4407_vm10, 0, %v4406_v0  ;;  %vm3322_vm5 = vcmp.eq.s32.totalorder %v3320_v40, 0  ;;  %vm3325_vm8 = vcmp.eq.s32.totalorder %v3320_v40, 2  ;;  %v3767_v36 = vadd.s32 %v3766_v32, %v3757_v12 }
 0x1e6   : > { %v3653_v47 = vsub.s32 32, %v3652_v27  ;;  %v3654_v42 = vshll.u32 %v3645_v45, %v3652_v27  ;;  %v3657_v28 = vsub.s32 4294967266, %v3652_v27  ;;  %v3479_v50 = vsel %vm3477_vm13, %v6149_v7, %v6740_v9 }
 0x1e7   : > { %v3482_v29 = vsel %vm3480_vm11, %v6741_v17, %v6158_v48  ;;  %v3324_v39 = vsel %vm3322_vm5, %v6283_v63, %v3014_v60  ;;  %v3327_v0 = vsel %vm3325_vm8, %v3017_v10, %v6296_v24  ;;  %v3786_v7 = vadd.s32 %v3782_v57, %v3778_v3 }
 0x1e8   : > { %v3655_v19 = vshrl.u32 %v3637_v33, %v3653_v47  ;;  %v3658_v46 = vadd.s32 127, %v3657_v28  ;;  %v3483_v38 = vsel %vm3476_vm15, %v3479_v50, %v3482_v29  ;;  %v3787_v48 = vadd.s32 %v3785_v49, %v3783_v31 }
 0x1e9   : > { %v6377_v33 = vsel %vm3164_vm9, nan, %v3483_v38  ;;  %v3328_v34 = vsel %vm3321_vm0, %v3324_v39, %v3327_v0  ;;  %v3736_v1 = vsel %vm3730_vm3, %v3733_v43, %v3735_v8  ;;  %vm3792_vm9 = vc.u32 %v3767_v36, %v3786_v7 }
 0x1ea   : > { %v3656_v45 = vor.u32 %v3655_v19, %v3654_v42  ;;  %v3659_v44 = vshll.u32 %v3658_v46, 23  ;;  %3491 = vadd.xlane.f32.xlu1 %v6377_v33  ;;  %v6385_v23 = vsel %vm3010_vm14, nan, %v3328_v34  ;;  %v3788_v60 = vadd.s32 %v3787_v48, %v3777_v4 }
 0x1eb   : > { %3489 = vadd.xlane.f32.xlu0 %v6385_v23  ;;  %v3790_v10 = vmul.u32 %v6311_v20, %v3736_v1  ;;  %v6742_v57 = vand.u32 2147483647, %v6058_v22  ;;  %v3667_v4 = vsub.s32 4, %v6326_v30  ;;  %vm3686_vm4 = vweird.f32 %v6058_v22 }
 0x1ec   : > { %v3660_v2 = vor.u32 4788187, %v3659_v44  ;;  %v3663_v25 = vcvt.s32.f32 %v3656_v45  ;;  %v3789_v63 = vadd.s32 %v3788_v60, %v3779_v6  ;;  %v3791_v60 = vadd.s32 %v3786_v7, %v3767_v36 }
 0x1ed   : > { %vm6394_vm1 = vcmp.le.f32.partialorder %v6742_v57, 0.7853982  ;;  %v3668_v42 = vsel %vm3545_vm12, %v3667_v4, %v6326_v30  ;;  %vm3699_vm15 = vcmp.lt.s32.totalorder %v6071_v26, 0 }
 0x1ee   : > { %v3661_v58 = vand.u32 2147483647, %v3660_v2  ;;  %v3793_v3 = vadd.s32 1, %v3789_v63  ;;  %v3670_v49 = vsel %vm6394_vm1, 0, %v3668_v42  ;;  %v6417_v42 = vpop.xlane.xlu1 %786 }
 0x1ef   : > { %v3687_v45 = vand.u32 3, %v3670_v49  ;;  %v3995_v1 = vadd.s32 3, %v3670_v49  ;;  %v6423_v49 = vpop.xlane.xlu0 %782 }
 0x1f0   : > { %v3664_v24 = vmul.f32 %v3663_v25, %v3661_v58  ;;  %v3794_v43 = vsel %vm3792_vm9, %v3793_v3, %v3789_v63 }
 0x1f1   : > { %v3795_v12 = vadd.s32 %v3794_v43, %v3790_v10  ;;  %vm3692_vm3 = vcmp.eq.s32.totalorder %v3687_v45, 2  ;;  %vm3689_vm6 = vcmp.eq.s32.totalorder %v3687_v45, 0  ;;  %vm3688_vm10 = vcmp.lt.s32.totalorder %v3687_v45, 2 }
 0x1f2   : > { %v3665_v11 = vxor.u32 2147483648, %v3664_v24  ;;  %v3996_v52 = vand.u32 3, %v3995_v1 }
 0x1f3   : > { %v3796_v62 = vadd.s32 536870912, %v3795_v12 }
 0x1f4   : > { %v3666_v8 = vsel %vm3545_vm12, %v3665_v11, %v3664_v24  ;;  %vm3997_vm2 = vcmp.lt.s32.totalorder %v3996_v52, 2  ;;  %vm3998_vm13 = vcmp.eq.s32.totalorder %v3996_v52, 0  ;;  %vm4001_vm11 = vcmp.eq.s32.totalorder %v3996_v52, 2 }
 0x1f5   : > { %v3669_v20 = vsel %vm6394_vm1, %v6058_v22, %v3666_v8  ;;  %v6402_v47 = vshrl.u32 %v3796_v62, 30  ;;  %v6745_v22 = vand.u32 2147483647, %v6071_v26  ;;  %vm3840_vm1 = vweird.f32 %v6071_v26 }
 0x1f6   : > { %v3671_v27 = vmul.f32 %v3669_v20, %v3669_v20 }
 0x1f7   : > { %v3798_v32 = vshll.u32 %v6402_v47, 30  ;;  %v3821_v7 = vsub.s32 4, %v6402_v47  ;;  %vm3698_vm0 = vcmp.le.f32.partialorder %v6745_v22, 0.7853982 }
 0x1f8   : > { %v3672_v40 = vmul.f32 -0.001358992, %v3671_v27  ;;  %v3679_v6 = vmul.f32 -0.00019511016, %v3671_v27 }
 0x1f9   : > { %v3799_v9 = vsub.s32 %v3795_v12, %v3798_v32 }
 0x1fa   : > { %v3673_v28 = vadd.f32 0.041655596, %v3672_v40  ;;  %v3680_v31 = vadd.f32 0.008332121, %v3679_v6  ;;  %v6415_v6 = vpop.xlane.xlu2 %1457 }
 0x1fb   : > { %vm3800_vm14 = vcmp.lt.s32.totalorder %v3799_v9, 0  ;;  %v3801_v29 = vsub.s32 0, %v3799_v9 }
 0x1fc   : > { %v3674_v19 = vmul.f32 %v3673_v28, %v3671_v27  ;;  %v3681_v46 = vmul.f32 %v3680_v31, %v3671_v27 }
 0x1fd   : > { %v3802_v39 = vsel %vm3800_vm14, %v3801_v29, %v3799_v9 }
 0x1fe   : > { %v3675_v50 = vadd.f32 -0.4999988, %v3674_v19  ;;  %v3682_v17 = vadd.f32 -0.16666654, %v3681_v46  ;;  %v3803_v0 = vclz %v3802_v39  ;;  %v792_v19 = vmul.f32 %v6417_v42, %v6417_v42  ;;  %v6439_v39 = vpop.xlane.xlu1 %788 }
 0x1ff   : > { %v790_v46 = vmul.f32 %v6423_v49, %v6423_v49 }
 0x200   : > { %v3676_v44 = vmul.f32 %v3675_v50, %v3671_v27  ;;  %v3683_v38 = vmul.f32 %v3682_v17, %v3671_v27  ;;  %v4409_v2 = vadd.s32 4294967294, %v3803_v0  ;;  %v3822_v50 = vsel %vm3699_vm15, %v3821_v7, %v6402_v47  ;;  %v6443_v47 = vpop.xlane.xlu0 %784 }
 0x201   : > { %v6432_v17 = vadd.f32 %v792_v19, %v790_v46  ;;  %v3824_v45 = vsel %vm3698_vm0, 0, %v3822_v50 }
 0x202   : > { %v3677_v30 = vadd.f32 1.0, %v3676_v44  ;;  %v3684_v48 = vadd.f32 1.0, %v3683_v38  ;;  %vm4410_vm7 = vcmp.lt.s32.totalorder %v4409_v2, 0  ;;  %v6437_v38 = vpop.xlane.xlu2 %1459 }
 0x203   : > { %v3806_v24 = vsel %vm4410_vm7, 0, %v4409_v2  ;;  %4500 = vrsqrt.f32 %v6432_v17 }
 0x204   : > { %v3685_v25 = vmul.f32 %v3684_v48, %v3669_v20  ;;  %v3693_v34 = vxor.u32 2147483648, %v3677_v30  ;;  %v3807_v10 = vsub.s32 32, %v3806_v24  ;;  %v3808_v3 = vshll.u32 %v3799_v9, %v3806_v24 }
 0x205   : > { %v3811_v57 = vsub.s32 4294967266, %v3806_v24  ;;  %v793_v48 = vmul.f32 %v6439_v39, %v6439_v39 }
 0x206   : > { %v3690_v58 = vxor.u32 2147483648, %v3685_v25  ;;  %v3694_v63 = vsel %vm3692_vm3, %v3693_v34, %v3685_v25  ;;  %v3809_v8 = vshrl.u32 %v3791_v60, %v3807_v10  ;;  %v4003_v62 = vsel %vm4001_vm11, %v3693_v34, %v3685_v25 }
 0x207   : > { %v3812_v12 = vadd.s32 127, %v3811_v57  ;;  %v791_v25 = vmul.f32 %v6443_v47, %v6443_v47  ;;  %vm802_vm3 = vweird.f32 %v6432_v17 }
 0x208   : > { %v3691_v11 = vsel %vm3689_vm6, %v3677_v30, %v3690_v58  ;;  %v3810_v36 = vor.u32 %v3809_v8, %v3808_v3  ;;  %v4000_v27 = vsel %vm3998_vm13, %v3677_v30, %v3690_v58  ;;  %v4150_v30 = vadd.s32 3, %v3824_v45  ;;  %v6458_v8 = vpop.xlane.xlu1 %1463 }
 0x209   : > { %v3695_v43 = vsel %vm3688_vm10, %v3691_v11, %v3694_v63  ;;  %v3813_v20 = vshll.u32 %v3812_v12, 23  ;;  %v4004_v40 = vsel %vm3997_vm2, %v4000_v27, %v4003_v62  ;;  %v4501_v1 = vpop.eup %4500  ;;  %v6448_v60 = vadd.f32 %v793_v48, %v791_v25 }
 0x20a   : > { %v6411_v4 = vsel %vm3686_vm4, nan, %v3695_v43  ;;  %v3817_v31 = vcvt.s32.f32 %v3810_v36  ;;  %v6421_v32 = vsel %vm3686_vm4, nan, %v4004_v40  ;;  %v6450_v24 = vand.u32 3, %v4150_v30  ;;  %v6456_v43 = vpop.xlane.xlu2 %2133 }
 0x20b   : > { %4161 = vadd.xlane.f32.xlu2 %v6411_v4  ;;  %v3814_v28 = vor.u32 4788187, %v3813_v20  ;;  %4165 = vadd.xlane.f32.xlu1 %v6421_v32  ;;  %v797_v10 = vmul.f32 %v4501_v1, %v6432_v17  ;;  %4502 = vrsqrt.f32 %v6448_v60  ;;  %v6454_v11 = vand.u32 3, %v3824_v45  ;;  %v6461_v20 = vpop.xlane.xlu0 %1461 }
 0x20c   : > { %vm4156_vm5 = vcmp.eq.s32.totalorder %v6450_v24, 2  ;;  %vm4153_vm8 = vcmp.eq.s32.totalorder %v6450_v24, 0  ;;  %v1465_v27 = vmul.f32 %v6415_v6, %v6415_v6  ;;  %v1466_v62 = vmul.f32 %v6437_v38, %v6437_v38 }
 0x20d   : > { %v3815_v9 = vand.u32 2147483647, %v3814_v28  ;;  %v798_v52 = vmul.f32 %v4501_v1, %v797_v10  ;;  %v1468_v40 = vmul.f32 %v6458_v8, %v6458_v8  ;;  %v1467_v28 = vmul.f32 %v6461_v20, %v6461_v20 }
 0x20e   : > { %vm4152_vm9 = vcmp.lt.s32.totalorder %v6450_v24, 2  ;;  %vm803_vm12 = vweird.f32 %v4501_v1  ;;  %vm3842_vm14 = vcmp.lt.s32.totalorder %v6454_v11, 2  ;;  %vm3843_vm4 = vcmp.eq.s32.totalorder %v6454_v11, 0 }
 0x20f   : > { %v3818_v29 = vmul.f32 %v3817_v31, %v3815_v9  ;;  %v799_v36 = vmul.f32 0.5, %v798_v52  ;;  %v6478_v50 = vadd.f32 %v1468_v40, %v1466_v62  ;;  %v6480_v22 = vadd.f32 %v1467_v28, %v1465_v27  ;;  %vm804_vm7 = vmor %vm802_vm3, %vm803_vm12 }
 0x210   : > { %vm3846_vm6 = vcmp.eq.s32.totalorder %v6454_v11, 2  ;;  %vm816_vm10 = vcmp.gt.f32.partialorder %v6432_v17, 0.0  ;;  %vm812_vm2 = vweird.f32 %v6448_v60 }
 0x211   : > { %v3819_v44 = vxor.u32 2147483648, %v3818_v29  ;;  %v800_v46 = vsub.f32 1.5, %v799_v36  ;;  %v6473_v9 = vpop.eup %4502  ;;  %4504 = vrsqrt.f32 %v6478_v50  ;;  %vm1477_vm12 = vweird.f32 %v6480_v22 }
 0x212   : > { %4506 = vrsqrt.f32 %v6480_v22  ;;  %v6493_v10 = vpop.xlane.xlu2 %2139  ;;  %vm813_vm13 = vweird.f32 %v6473_v9  ;;  %vm1491_vm3 = vcmp.gt.f32.partialorder %v6480_v22, 0.0 }
 0x213   : > { %v3820_v0 = vsel %vm3699_vm15, %v3819_v44, %v3818_v29  ;;  %v801_v44 = vmul.f32 %v4501_v1, %v800_v46  ;;  %v2144_v17 = vmul.f32 %v6493_v10, %v6493_v10  ;;  %vm814_vm11 = vmor %vm812_vm2, %vm813_vm13  ;;  %vm817_vm15 = vcmp.gt.f32.partialorder %v6448_v60, 0.0 }
 0x214   : > { %v3823_v2 = vsel %vm3698_vm0, %v6071_v26, %v3820_v0  ;;  %v807_v0 = vmul.f32 %v6473_v9, %v6448_v60  ;;  %vm1487_vm0 = vweird.f32 %v6478_v50 }
 0x215   : > { %v3825_v34 = vmul.f32 %v3823_v2, %v3823_v2  ;;  %v805_v25 = vsel %vm804_vm7, %v4501_v1, %v801_v44  ;;  %v2141_v1 = vmul.f32 %v6456_v43, %v6456_v43 }
 0x217   : > { %v3826_v58 = vmul.f32 -0.001358992, %v3825_v34  ;;  %v3833_v63 = vmul.f32 -0.00019511016, %v3825_v34  ;;  %v4505_v28 = vpop.eup %4504 }
 0x218   : > { %v1482_v44 = vmul.f32 %v4505_v28, %v6478_v50 }
 0x219   : > { %v3827_v3 = vadd.f32 0.041655596, %v3826_v58  ;;  %v3834_v57 = vadd.f32 0.008332121, %v3833_v63  ;;  %v808_v58 = vmul.f32 %v6473_v9, %v807_v0  ;;  %v822_v63 = vmul.f32 %v805_v25, %v6417_v42  ;;  %v4507_v0 = vpop.eup %4506 }
 0x21a   : > { %v1483_v24 = vmul.f32 %v4505_v28, %v1482_v44  ;;  %v1472_v11 = vmul.f32 %v4507_v0, %v6480_v22 }
 0x21b   : > { %v3828_v12 = vmul.f32 %v3827_v3, %v3825_v34  ;;  %v3835_v7 = vmul.f32 %v3834_v57, %v3825_v34  ;;  %v6495_v3 = vpop.xlane.xlu1 %2137 }
 0x21c   : > { %v2143_v36 = vmul.f32 %v6495_v3, %v6495_v3 }
 0x21d   : > { %v3829_v31 = vadd.f32 -0.4999988, %v3828_v12  ;;  %v3836_v19 = vadd.f32 -0.16666654, %v3835_v7  ;;  %v809_v12 = vmul.f32 0.5, %v808_v58  ;;  %v6500_v7 = vpop.xlane.xlu0 %2135 }
 0x21e   : > { %v6517_v46 = vadd.f32 %v2143_v36, %v2141_v1  ;;  %v6555_v1 = vpop.xlane.xlu2 %2813 }
 0x21f   : > { %v3830_v29 = vmul.f32 %v3829_v31, %v3825_v34  ;;  %v3837_v45 = vmul.f32 %v3836_v19, %v3825_v34  ;;  %v818_v34 = vmul.f32 %v805_v25, %v6423_v49  ;;  %v824_v49 = vsel %vm816_vm10, %v822_v63, 0.0 }
 0x220   : > { %v828_v31 = vmul.f32 %v824_v49, %v5143_v41  ;;  %v810_v19 = vsub.f32 1.5, %v809_v12  ;;  %4508 = vrsqrt.f32 %v6517_v46  ;;  %v1473_v12 = vmul.f32 %v4507_v0, %v1472_v11 }
 0x221   : > { %v3831_v30 = vadd.f32 1.0, %v3830_v29  ;;  %v3838_v48 = vadd.f32 1.0, %v3837_v45  ;;  %v820_v42 = vsel %vm816_vm10, %v818_v34, 1.0  ;;  %vm2167_vm2 = vcmp.gt.f32.partialorder %v6517_v46, 0.0 }
 0x222   : > { %v826_v40 = vmul.f32 %v820_v42, %v5147_v51  ;;  %v2142_v51 = vmul.f32 %v6500_v7, %v6500_v7  ;;  %v811_v58 = vmul.f32 %v6473_v9, %v810_v19 }
 0x223   : > { %v3839_v57 = vmul.f32 %v3838_v48, %v3823_v2  ;;  %v3847_v52 = vxor.u32 2147483648, %v3831_v30 }
 0x224   : > { %v830_v25 = vadd.f32 %v828_v31, %v826_v40  ;;  %v815_v26 = vsel %vm814_vm11, %v6473_v9, %v811_v58  ;;  %v6561_v49 = vadd.f32 %v2144_v17, %v2142_v51 }
 0x225   : > { %v3844_v2 = vxor.u32 2147483648, %v3839_v57  ;;  %v4158_v27 = vsel %vm4156_vm5, %v3847_v52, %v3839_v57  ;;  %v3848_v62 = vsel %vm3846_vm6, %v3847_v52, %v3839_v57  ;;  %v819_v63 = vmul.f32 %v815_v26, %v6443_v47  ;;  %v6557_v42 = vpop.xlane.xlu0 %2809 }
 0x226   : > { %832 = vst [vmem:[%s6548_s17] sm:$0xff] %v830_v25  ;;  %v823_v57 = vmul.f32 %v815_v26, %v6439_v39  ;;  %v1484_v52 = vmul.f32 0.5, %v1483_v24  ;;  %vm1488_vm5 = vweird.f32 %v4505_v28  ;;  %4510 = vrsqrt.f32 %v6561_v49  ;;  %v4509_v19 = vpop.eup %4508 }
 0x227   : > { %v4155_v29 = vsel %vm4153_vm8, %v3831_v30, %v3844_v2  ;;  %v3845_v45 = vsel %vm3843_vm4, %v3831_v30, %v3844_v2  ;;  %v821_v9 = vsel %vm817_vm15, %v819_v63, 1.0  ;;  %vm1478_vm8 = vweird.f32 %v4507_v0 }
 0x228   : > { %v4159_v41 = vsel %vm4152_vm9, %v4155_v29, %v4158_v27  ;;  %v3849_v48 = vsel %vm3842_vm14, %v3845_v45, %v3848_v62  ;;  %v825_v36 = vsel %vm817_vm15, %v823_v57, 0.0  ;;  %v1485_v2 = vsub.f32 1.5, %v1484_v52  ;;  %vm1489_vm9 = vmor %vm1487_vm0, %vm1488_vm5 }
 0x229   : > { %v6533_v34 = vsel %vm3840_vm1, nan, %v4159_v41  ;;  %v6537_v30 = vsel %vm3840_vm1, nan, %v3849_v48  ;;  %v1474_v27 = vmul.f32 0.5, %v1473_v12  ;;  %v827_v39 = vmul.f32 %v821_v9, %v5475_v14  ;;  %vm1479_vm1 = vmor %vm1477_vm12, %vm1478_vm8 }
 0x22a   : > { %4167 = vadd.xlane.f32.xlu2 %v6533_v34  ;;  %4163 = vadd.xlane.f32.xlu0 %v6537_v30  ;;  %v829_v47 = vmul.f32 %v825_v36, %v5471_v54  ;;  %v2819_v62 = vmul.f32 %v6555_v1, %v6555_v1  ;;  %v1486_v60 = vmul.f32 %v4505_v28, %v1485_v2  ;;  %vm1492_vm14 = vcmp.gt.f32.partialorder %v6478_v50, 0.0  ;;  %v6587_v50 = vpop.xlane.xlu1 %2811 }
 0x22b   : > { %v1475_v40 = vsub.f32 1.5, %v1474_v27  ;;  %v2817_v31 = vmul.f32 %v6557_v42, %v6557_v42  ;;  %v2148_v54 = vmul.f32 %v4509_v19, %v6517_v46  ;;  %vm2154_vm4 = vweird.f32 %v4509_v19 }
 0x22c   : > { %v831_v17 = vadd.f32 %v829_v47, %v827_v39  ;;  %v1490_v14 = vsel %vm1489_vm9, %v4505_v28, %v1486_v60  ;;  %v4511_v28 = vpop.eup %4510  ;;  %v2818_v12 = vmul.f32 %v6587_v50, %v6587_v50  ;;  %vm2153_vm6 = vweird.f32 %v6517_v46 }
 0x22d   : > { %v1476_v29 = vmul.f32 %v4507_v0, %v1475_v40  ;;  %v1494_v45 = vmul.f32 %v1490_v14, %v6437_v38  ;;  %v1498_v44 = vmul.f32 %v1490_v14, %v6458_v8  ;;  %v6578_v51 = vadd.f32 %v2819_v62, %v2817_v31  ;;  %vm2155_vm7 = vmor %vm2153_vm6, %vm2154_vm4 }
 0x22e   : > { %833 = vst [vmem:[%s6548_s17 + $0x8] sm:$0xff] %v831_v17  ;;  %v2149_v48 = vmul.f32 %v4509_v19, %v2148_v54  ;;  %v2158_v63 = vmul.f32 %v4511_v28, %v6561_v49  ;;  %vm2164_vm10 = vweird.f32 %v4511_v28  ;;  %vm2163_vm13 = vweird.f32 %v6561_v49 }
 0x22f   : > { %v1480_v41 = vsel %vm1479_vm1, %v4507_v0, %v1476_v29  ;;  %v1496_v25 = vsel %vm1492_vm14, %v1494_v45, 1.0  ;;  %v1500_v58 = vsel %vm1492_vm14, %v1498_v44, 0.0  ;;  %v6589_v0 = vpop.xlane.xlu0 %2815  ;;  %4512 = vrsqrt.f32 %v6578_v51  ;;  %vm2165_vm11 = vmor %vm2163_vm13, %vm2164_vm10 }
 0x230   : > { %v1493_v24 = vmul.f32 %v1480_v41, %v6415_v6  ;;  %v1497_v11 = vmul.f32 %v1480_v41, %v6461_v20  ;;  %v1502_v38 = vmul.f32 %v1496_v25, %v5308_v37  ;;  %v1504_v8 = vmul.f32 %v1500_v58, %v5502_v55 }
 0x231   : > { %v2150_v26 = vmul.f32 0.5, %v2149_v48  ;;  %v2159_v52 = vmul.f32 %v4511_v28, %v2158_v63  ;;  %v2820_v9 = vmul.f32 %v6589_v0, %v6589_v0  ;;  %vm2168_vm15 = vcmp.gt.f32.partialorder %v6561_v49, 0.0 }
 0x232   : > { %v1495_v22 = vsel %vm1491_vm3, %v1493_v24, 1.0  ;;  %v1499_v57 = vsel %vm1491_vm3, %v1497_v11, 0.0  ;;  %v1506_v6 = vadd.f32 %v1504_v8, %v1502_v38  ;;  %vm2829_vm5 = vweird.f32 %v6578_v51 }
 0x233   : > { %v1501_v20 = vmul.f32 %v1495_v22, %v5070_v61  ;;  %v1503_v37 = vmul.f32 %v1499_v57, %v5512_v53  ;;  %v2151_v55 = vsub.f32 1.5, %v2150_v26  ;;  %v2160_v27 = vmul.f32 0.5, %v2159_v52 }
 0x234   : > { %4354 = vst [vmem:[%s6548_s17 + $0x18] sm:$0xff] %v1506_v6  ;;  %v2822_v39 = vadd.f32 %v2820_v9, %v2818_v12  ;;  %vm2843_vm9 = vcmp.gt.f32.partialorder %v6578_v51, 0.0  ;;  %v3488_v12 = vpop.xlane.xlu2 %3487 }
 0x235   : > { %v1505_v36 = vadd.f32 %v1503_v37, %v1501_v20  ;;  %v2152_v2 = vmul.f32 %v4509_v19, %v2151_v55  ;;  %v4513_v53 = vpop.eup %4512  ;;  %v2161_v60 = vsub.f32 1.5, %v2160_v27 }
 0x236   : > { %4514 = vrsqrt.f32 %v2822_v39  ;;  %v2824_v40 = vmul.f32 %v4513_v53, %v6578_v51  ;;  %vm2830_vm0 = vweird.f32 %v4513_v53  ;;  %vm2839_vm1 = vweird.f32 %v2822_v39 }
 0x237   : > { %4353 = vst [vmem:[%s6548_s17 + $0x10] sm:$0xff] %v1505_v36  ;;  %v2156_v61 = vsel %vm2155_vm7, %v4509_v19, %v2152_v2  ;;  %v2162_v14 = vmul.f32 %v4511_v28, %v2161_v60  ;;  %vm2831_vm8 = vmor %vm2829_vm5, %vm2830_vm0  ;;  %vm2844_vm3 = vcmp.gt.f32.partialorder %v2822_v39, 0.0  ;;  %v3494_v36 = vmul.f32 %v3488_v12, %v3488_v12 }
 0x238   : > { %v2169_v47 = vmul.f32 %v2156_v61, %v6456_v43  ;;  %v2173_v62 = vmul.f32 %v2156_v61, %v6495_v3  ;;  %v2825_v43 = vmul.f32 %v4513_v53, %v2824_v40 }
 0x239   : > { %v2166_v54 = vsel %vm2165_vm11, %v4511_v28, %v2162_v14 }
 0x23a   : > { %v2171_v31 = vsel %vm2167_vm2, %v2169_v47, 1.0  ;;  %v2175_v17 = vsel %vm2167_vm2, %v2173_v62, 0.0  ;;  %v2170_v45 = vmul.f32 %v2166_v54, %v6500_v7  ;;  %v2174_v46 = vmul.f32 %v2166_v54, %v6493_v10 }
 0x23b   : > { %v2177_v19 = vmul.f32 %v2171_v31, %v5615_v13  ;;  %v2179_v29 = vmul.f32 %v2175_v17, %v5655_v16  ;;  %v2826_v44 = vmul.f32 0.5, %v2825_v43 }
 0x23c   : > { %v4515_v41 = vpop.eup %4514  ;;  %v2172_v48 = vsel %vm2168_vm15, %v2170_v45, 1.0  ;;  %v2176_v25 = vsel %vm2168_vm15, %v2174_v46, 0.0 }
 0x23d   : > { %v2181_v3 = vadd.f32 %v2179_v29, %v2177_v19  ;;  %v2827_v13 = vsub.f32 1.5, %v2826_v44  ;;  %v2834_v58 = vmul.f32 %v4515_v41, %v2822_v39  ;;  %v2178_v16 = vmul.f32 %v2172_v48, %v5772_v56 }
 0x23e   : > { %v2180_v28 = vmul.f32 %v2176_v25, %v5768_v18  ;;  %vm2840_vm12 = vweird.f32 %v4515_v41  ;;  %v6746_v25 = vld [vmem:[#allocation8_spill] sm:$0xff] }
 0x23f   : > { %4369 = vst [vmem:[%s6548_s17 + $0x20] sm:$0xff] %v2181_v3  ;;  %v2828_v24 = vmul.f32 %v4513_v53, %v2827_v13  ;;  %v2835_v7 = vmul.f32 %v4515_v41, %v2834_v58  ;;  %vm2841_vm14 = vmor %vm2839_vm1, %vm2840_vm12 }
 0x240   : > { %v2182_v10 = vadd.f32 %v2180_v28, %v2178_v16 }
 0x241   : > { %v2832_v11 = vsel %vm2831_vm8, %v4513_v53, %v2828_v24  ;;  %v2836_v38 = vmul.f32 0.5, %v2835_v7 }
 0x242   : > { %4370 = vst [vmem:[%s6548_s17 + $0x28] sm:$0xff] %v2182_v10  ;;  %v2845_v49 = vmul.f32 %v2832_v11, %v6557_v42  ;;  %v2849_v8 = vmul.f32 %v2832_v11, %v6555_v1 }
 0x243   : > { %v2837_v26 = vsub.f32 1.5, %v2836_v38 }
 0x244   : > { %v2847_v56 = vsel %vm2843_vm9, %v2845_v49, 1.0  ;;  %v2851_v18 = vsel %vm2843_vm9, %v2849_v8, 0.0 }
 0x245   : > { %v2853_v63 = vmul.f32 %v2847_v56, %v5922_v59  ;;  %v2855_v22 = vmul.f32 %v2851_v18, %v5896_v21  ;;  %v2838_v57 = vmul.f32 %v4515_v41, %v2837_v26 }
 0x247   : > { %v2857_v6 = vadd.f32 %v2855_v22, %v2853_v63  ;;  %v2842_v20 = vsel %vm2841_vm14, %v4515_v41, %v2838_v57 }
 0x248   : > { %v2846_v42 = vmul.f32 %v2842_v20, %v6587_v50  ;;  %v2850_v1 = vmul.f32 %v2842_v20, %v6589_v0 }
 0x249   : > { %4385 = vst [vmem:[%s6548_s17 + $0x30] sm:$0xff] %v2857_v6 }
 0x24a   : > { %v2848_v51 = vsel %vm2844_vm3, %v2846_v42, 1.0  ;;  %v2852_v37 = vsel %vm2844_vm3, %v2850_v1, 0.0 }
 0x24b   : > { %v2854_v55 = vmul.f32 %v2848_v51, %v6039_v15  ;;  %v2856_v59 = vmul.f32 %v2852_v37, %v6200_v35 }
 0x24c   : > { %v3486_v52 = vpop.xlane.xlu1 %3485 }
 0x24d   : > { %v2858_v21 = vadd.f32 %v2856_v59, %v2854_v55  ;;  %v3493_v61 = vmul.f32 %v3486_v52, %v3486_v52 }
 0x24f   : > { %4386 = vst [vmem:[%s6548_s17 + $0x38] sm:$0xff] %v2858_v21 }
 0x25d   : > { %v3492_v9 = vpop.xlane.xlu1 %3491 }
 0x25e   : > { %v3496_v2 = vmul.f32 %v3492_v9, %v3492_v9  ;;  %v3490_v27 = vpop.xlane.xlu0 %3489 }
 0x25f   : > { %v3495_v53 = vmul.f32 %v3490_v27, %v3490_v27 }
 0x260   : > { %v3498_v50 = vadd.f32 %v3496_v2, %v3494_v36 }
 0x261   : > { %v3497_v0 = vadd.f32 %v3495_v53, %v3493_v61 }
 0x262   : > { %4516 = vrsqrt.f32 %v3498_v50  ;;  %vm3515_vm6 = vweird.f32 %v3498_v50  ;;  %vm3520_vm11 = vcmp.gt.f32.partialorder %v3498_v50, 0.0 }
 0x263   : > { %4518 = vrsqrt.f32 %v3497_v0  ;;  %vm3505_vm2 = vweird.f32 %v3497_v0  ;;  %vm3519_vm15 = vcmp.gt.f32.partialorder %v3497_v0, 0.0 }
 0x268   : > { %v4517_v39 = vpop.eup %4516 }
 0x269   : > { %v3510_v47 = vmul.f32 %v4517_v39, %v3498_v50  ;;  %v4519_v62 = vpop.eup %4518  ;;  %vm3516_vm4 = vweird.f32 %v4517_v39 }
 0x26a   : > { %v3500_v60 = vmul.f32 %v4519_v62, %v3497_v0  ;;  %vm3506_vm7 = vweird.f32 %v4519_v62  ;;  %vm3517_vm10 = vmor %vm3515_vm6, %vm3516_vm4 }
 0x26b   : > { %v3511_v15 = vmul.f32 %v4517_v39, %v3510_v47  ;;  %vm3507_vm13 = vmor %vm3505_vm2, %vm3506_vm7 }
 0x26c   : > { %v3501_v40 = vmul.f32 %v4519_v62, %v3500_v60 }
 0x26d   : > { %v3512_v35 = vmul.f32 0.5, %v3511_v15 }
 0x26e   : > { %v3502_v17 = vmul.f32 0.5, %v3501_v40 }
 0x26f   : > { %v3513_v31 = vsub.f32 1.5, %v3512_v35 }
 0x270   : > { %v3503_v19 = vsub.f32 1.5, %v3502_v17 }
 0x271   : > { %v3514_v14 = vmul.f32 %v4517_v39, %v3513_v31 }
 0x272   : > { %v3504_v43 = vmul.f32 %v4519_v62, %v3503_v19 }
 0x273   : > { %v3518_v29 = vsel %vm3517_vm10, %v4517_v39, %v3514_v14 }
 0x274   : > { %v3522_v54 = vmul.f32 %v3518_v29, %v3488_v12  ;;  %v3526_v3 = vmul.f32 %v3518_v29, %v3492_v9  ;;  %v3508_v45 = vsel %vm3507_vm13, %v4519_v62, %v3504_v43 }
 0x275   : > { %v3521_v41 = vmul.f32 %v3508_v45, %v3486_v52  ;;  %v3525_v48 = vmul.f32 %v3508_v45, %v3490_v27 }
 0x276   : > { %v3524_v46 = vsel %vm3520_vm11, %v3522_v54, 1.0  ;;  %v3528_v44 = vsel %vm3520_vm11, %v3526_v3, 0.0 }
 0x277   : > { %v3530_v13 = vmul.f32 %v3524_v46, %v6746_v25  ;;  %v3532_v58 = vmul.f32 %v3528_v44, %v6377_v33  ;;  %v3523_v16 = vsel %vm3519_vm15, %v3521_v41, 1.0  ;;  %v3527_v28 = vsel %vm3519_vm15, %v3525_v48, 0.0 }
 0x278   : > { %v3529_v7 = vmul.f32 %v3523_v16, %v6332_v5  ;;  %v3531_v10 = vmul.f32 %v3527_v28, %v6385_v23 }
 0x279   : > { %v3534_v24 = vadd.f32 %v3532_v58, %v3530_v13 }
 0x27a   : > { %v3533_v11 = vadd.f32 %v3531_v10, %v3529_v7 }
 0x27b   : > { %4402 = vst [vmem:[%s6548_s17 + $0x48] sm:$0xff] %v3534_v24 }
 0x27c   : > { %4401 = vst [vmem:[%s6548_s17 + $0x40] sm:$0xff] %v3533_v11 }
 0x27e   : > { %v4162_v38 = vpop.xlane.xlu2 %4161  ;;  %v4166_v49 = vpop.xlane.xlu1 %4165 }
 0x27f   : > { %v4169_v8 = vmul.f32 %v4162_v38, %v4162_v38  ;;  %v4171_v26 = vmul.f32 %v4166_v49, %v4166_v49 }
 0x281   : > { %v4173_v56 = vadd.f32 %v4171_v26, %v4169_v8 }
 0x283   : > { %4520 = vrsqrt.f32 %v4173_v56  ;;  %vm4181_vm5 = vweird.f32 %v4173_v56  ;;  %vm4195_vm9 = vcmp.gt.f32.partialorder %v4173_v56, 0.0 }
 0x289   : > { %v4521_v18 = vpop.eup %4520 }
 0x28a   : > { %v4176_v63 = vmul.f32 %v4521_v18, %v4173_v56  ;;  %vm4182_vm0 = vweird.f32 %v4521_v18 }
 0x28b   : > { %vm4183_vm8 = vmor %vm4181_vm5, %vm4182_vm0 }
 0x28c   : > { %v4177_v33 = vmul.f32 %v4521_v18, %v4176_v63 }
 0x28e   : > { %v4178_v22 = vmul.f32 0.5, %v4177_v33 }
 0x290   : > { %v4179_v57 = vsub.f32 1.5, %v4178_v22 }
 0x292   : > { %v4180_v6 = vmul.f32 %v4521_v18, %v4179_v57 }
 0x294   : > { %v4184_v5 = vsel %vm4183_vm8, %v4521_v18, %v4180_v6 }
 0x295   : > { %v4197_v23 = vmul.f32 %v4184_v5, %v4162_v38  ;;  %v4201_v20 = vmul.f32 %v4184_v5, %v4166_v49 }
 0x297   : > { %v4199_v42 = vsel %vm4195_vm9, %v4197_v23, 1.0  ;;  %v4203_v1 = vsel %vm4195_vm9, %v4201_v20, 0.0 }
 0x298   : > { %v4205_v51 = vmul.f32 %v4199_v42, %v6411_v4  ;;  %v4207_v37 = vmul.f32 %v4203_v1, %v6421_v32 }
 0x29a   : > { %v4209_v55 = vadd.f32 %v4207_v37, %v4205_v51 }
 0x29c   : > { %4417 = vst [vmem:[%s6548_s17 + $0x50] sm:$0xff] %v4209_v55 }
 0x29d   : > { %v4168_v59 = vpop.xlane.xlu2 %4167  ;;  %v4164_v52 = vpop.xlane.xlu0 %4163 }
 0x29e   : > { %v4172_v21 = vmul.f32 %v4168_v59, %v4168_v59  ;;  %v4170_v12 = vmul.f32 %v4164_v52, %v4164_v52 }
 0x2a0   : > { %v4174_v9 = vadd.f32 %v4172_v21, %v4170_v12 }
 0x2a2   : > { %4522 = vrsqrt.f32 %v4174_v9  ;;  %vm4191_vm1 = vweird.f32 %v4174_v9  ;;  %vm4196_vm3 = vcmp.gt.f32.partialorder %v4174_v9, 0.0 }
 0x2a8   : > { %v4523_v36 = vpop.eup %4522 }
 0x2a9   : > { %v4186_v2 = vmul.f32 %v4523_v36, %v4174_v9  ;;  %vm4192_vm12 = vweird.f32 %v4523_v36 }
 0x2aa   : > { %vm4193_vm14 = vmor %vm4191_vm1, %vm4192_vm12 }
 0x2ab   : > { %v4187_v27 = vmul.f32 %v4523_v36, %v4186_v2 }
 0x2ad   : > { %v4188_v61 = vmul.f32 0.5, %v4187_v27 }
 0x2af   : > { %v4189_v50 = vsub.f32 1.5, %v4188_v61 }
 0x2b1   : > { %v4190_v53 = vmul.f32 %v4523_v36, %v4189_v50 }
 0x2b3   : > { %v4194_v4 = vsel %vm4193_vm14, %v4523_v36, %v4190_v53 }
 0x2b4   : > { %v4198_v32 = vmul.f32 %v4194_v4, %v4164_v52  ;;  %v4202_v0 = vmul.f32 %v4194_v4, %v4168_v59 }
 0x2b6   : > { %v4200_v39 = vsel %vm4196_vm3, %v4198_v32, 1.0  ;;  %v4204_v47 = vsel %vm4196_vm3, %v4202_v0, 0.0 }
 0x2b7   : > { %v4206_v62 = vmul.f32 %v4200_v39, %v6537_v30  ;;  %v4208_v15 = vmul.f32 %v4204_v47, %v6533_v34 }
 0x2b9   : > { %v4210_v60 = vadd.f32 %v4208_v15, %v4206_v62 }
 0x2bb   : > { %4418 = vst [vmem:[%s6548_s17 + $0x58] sm:$0xff] %v4210_v60 }
 0x2bc   : > { %4585 = shalt.err (!%p4582_p13)
}
 0x2bd   : > { %s4651_s5 = smov 128   ;;  %s4652_s12 = smov 8  }
 0x2be   : > { %4429 = dma.vmem_to_hbm [thread:$0]  (%p4714_p9), %s4230_s25, 1536, %s4232_s26, %s4215_s9, %s4651_s5, %s4651_s5, %s4652_s12  }
 0x2bf PF: > { %s4246_s13 = sand.u32 1, %s4620_s6   ;;  %p4436_p0 = pnand %p4322_p12, %p4721_p11 }
 0x2c0   : > { %s4247_s15 = scalar_lea.sflag [#allocation4], %s4246_s13 }
 0x2c1   : > { %p4437_p1 = pneg %p4436_p0 }
 0x2c3   : > { %4615 = dma.done.wait (%p4437_p1), %s4247_s15, 1536  }
 0x2c4   : > { %4617 = vsyncadd (%p4437_p1), %s4247_s15, 4294965760  ;;  %s17_s11 = sadd.s32 1, %s4640_s11   ;;  %s6747_s6 = smov %s4624_s7 }
 0x2c5   : > { %p14_p2 = scmp.ge.s32.totalorder %s17_s11, 4   ;;  %s6748_s7 = smov %s4628_s8 }
 0x2c6   : > { %s6749_s8 = smov %s4719_s20  ;;  %s6750_s9 = smov %s4636_s10 }
 0x2c7   : > { %s6751_s10 = smov %s6753_s14  ;;  %16 = sbr.rel (!%p14_p2) target bundleno = 6 (0x6), region = 80 }
 0x2cc   :  { %4253 = vsyncpa [#allocation3], 1 }
 0x2cd   :  { %4255 = vsyncpa [#allocation3 + $0x1], 1 }
 0x2ce   :  { %4256 = vsyncpa [#allocation4], 1 }
 0x2cf   :  { %4258 = vsyncpa [#allocation4 + $0x1], 1 }

</bundles_post_ra>
